<compile_context>
chip_gen: v7x
topology: tpu7x:2x2x1
jax: 0.10.0
libtpu: 0.0.40
codegen_flags: <defaults>
</compile_context>

<pallas_src>
import functools

import jax
import jax.numpy as jnp
from jax import lax
from jax.experimental import pallas as pl
from jax.experimental.pallas import tpu as pltpu


def _round_up(v, m):
    return (v + m - 1) // m * m


# ---------------------------------------------------------------------------
# Fused ASPP kernel (one grid step = one (batch, row-tile))
# ---------------------------------------------------------------------------
def _aspp_fused_kernel(x_hbm, w0_ref, wk_ref, wproj_ref, bias_ref, pool_ref,
                       o_ref, xbuf, copy_sem, *,
                       n_h, tile_h, W, Cin, Cout, dils, dmax, pad_l):
    b = pl.program_id(0)
    hi = pl.program_id(1)
    R = len(dils)
    strip_h = tile_h + 2 * dmax
    M = tile_h * W
    f32 = jnp.float32
    bf16 = jnp.bfloat16

    # ---- double-buffered halo-strip fetch: prefetch the next row-tile of this
    # ---- batch into the other slot while computing the current one ----------
    def start_fetch(hh, slot):
        row0 = pl.multiple_of(hh * tile_h, tile_h)
        pltpu.make_async_copy(x_hbm.at[b, pl.ds(row0, strip_h)],
                              xbuf.at[slot], copy_sem.at[slot]).start()

    slot = hi % 2

    @pl.when(hi == 0)                       # first tile of this batch: nothing prefetched yet
    def _():
        start_fetch(hi, 0)

    if n_h > 1:
        @pl.when(hi + 1 < n_h)              # prefetch next strip into the other slot
        def _():
            start_fetch(hi + 1, (hi + 1) % 2)

    # Wait for the current strip (shape-matching dummy src for the descriptor).
    pltpu.make_async_copy(x_hbm.at[b, pl.ds(0, strip_h)],
                          xbuf.at[slot], copy_sem.at[slot]).wait()

    def tap(ro, co):                        # (tile_h, W, Cin) window -> (M, Cin)
        return xbuf[slot, ro:ro + tile_h, co:co + W, :].reshape(M, Cin)

    # ---- branch 0: 1x1 conv (BN scale pre-folded) + ReLU, immediately projected
    y0 = jnp.dot(tap(dmax, pad_l), w0_ref[...], preferred_element_type=f32)
    y0 = jnp.maximum(y0 + bias_ref[0:1, :], 0.0)
    acc = jnp.dot(y0.astype(bf16), wproj_ref[0:Cout, :], preferred_element_type=f32)

    # ---- atrous 3x3 branches: per-tap accumulation (no im2col concat temp) ---
    for i, d in enumerate(dils):
        yi = None
        for ky in range(3):
            for kx in range(3):
                k = ky * 3 + kx
                p = jnp.dot(tap(dmax + (ky - 1) * d, pad_l + (kx - 1) * d),
                            wk_ref[i, k], preferred_element_type=f32)
                yi = p if yi is None else yi + p
        yi = jnp.maximum(yi + bias_ref[i + 1:i + 2, :], 0.0)
        acc = acc + jnp.dot(yi.astype(bf16),
                            wproj_ref[(i + 1) * Cout:(i + 2) * Cout, :],
                            preferred_element_type=f32)

    # ---- pooling branch arrives as a per-batch bias row (bproj already added) -
    out = jnp.maximum(acc + pool_ref[0], 0.0)
    o_ref[...] = out.reshape(1, tile_h, W, Cout).astype(o_ref.dtype)


# ---------------------------------------------------------------------------
# Tile-height selection: divisor of H in [8,32], prefer >=4 (then >=2) row-tiles,
# keep the double-buffered halo strip inside a VMEM budget.
# ---------------------------------------------------------------------------
def _pick_tile_h(H, Wp, Cin, dmax, budget_bytes=24 << 20):
    divs = [t for t in range(1, H + 1) if H % t == 0 and t <= 64]
    in_range = [t for t in divs if 8 <= t <= 32] or divs

    def fits(t):
        return 2 * (t + 2 * dmax) * Wp * Cin * 2 <= budget_bytes

    for min_steps in (4, 2, 1):
        cand = [t for t in in_range if H // t >= min_steps and fits(t)]
        if cand:
            return max(cand)
    return min(in_range)


# ---------------------------------------------------------------------------
# Wrapper
# ---------------------------------------------------------------------------
def aspp_forward(x_nchw, params):
    """ASPP forward.  Input NCHW (PyTorch convention) f32, output NCHW f32."""
    rates = params["rates"]
    R = len(rates)
    assert R >= 1
    dmax = max(rates)

    # Cast to bf16 BEFORE the layout transpose so transpose/pad move half the bytes.
    x = jnp.transpose(x_nchw.astype(jnp.bfloat16), (0, 2, 3, 1))      # NHWC bf16
    B, H, W, Cin = x.shape
    Cout = params["w0"].shape[1]

    # Column padding: left pad rounded to a sublane multiple (8) so the 1x1 branch
    # and center taps read aligned column windows; padded width also 8-aligned.
    pad_l = _round_up(dmax, 8)
    Wp = _round_up(W + pad_l + dmax, 8)
    pad_r = Wp - W - pad_l

    tile_h = _pick_tile_h(H, Wp, Cin, dmax)
    n_h = H // tile_h
    strip_h = tile_h + 2 * dmax

    # Pad ONCE with the max dilation (all rates index into the same padded array).
    xp = jnp.pad(x, ((0, 0), (dmax, dmax), (pad_l, pad_r), (0, 0)))

    # Global-average-pool branch is spatially constant -> fold it (plus the
    # projection bias) into a single per-batch bias row added in the kernel epilogue.
    xmean = jnp.mean(x.astype(jnp.float32), axis=(1, 2)).astype(jnp.bfloat16)
    yp = jnp.maximum(
        jnp.dot(xmean, params["wp"], preferred_element_type=jnp.float32)
        + params["bp"], 0.0)
    pool_contrib = (
        jnp.dot(yp.astype(jnp.bfloat16),
                params["wproj"][(R + 1) * Cout:(R + 2) * Cout, :],
                preferred_element_type=jnp.float32)
        + params["bproj"][None, :]).reshape(B, 1, Cout)               # (B,1,Cout) f32

    wk = params["wk"].reshape(R, 9, Cin, Cout)                        # per-tap weight slabs
    wproj_main = params["wproj"][:(R + 1) * Cout, :]                  # pool slice handled above
    bias_all = jnp.concatenate([params["b0"][None, :], params["bk"]], axis=0)  # (R+1,Cout)

    kernel = functools.partial(
        _aspp_fused_kernel, n_h=n_h, tile_h=tile_h, W=W, Cin=Cin, Cout=Cout,
        dils=tuple(rates), dmax=dmax, pad_l=pad_l)

    # VMEM budget: 2-slot strip + (double-buffered) weights + output tiles + f32 temps.
    M = tile_h * W
    est = (2 * strip_h * Wp * Cin * 2
           + 2 * (Cin * Cout + R * 9 * Cin * Cout + (R + 1) * Cout * Cout) * 2
           + 2 * (R + 2) * Cout * 4
           + 2 * tile_h * W * Cout * 2
           + 2 * M * Cout * 4 + 2 * M * Cin * 2)
    vmem_limit = int(min(100 * 1024 * 1024, max(32 * 1024 * 1024, 1.5 * est)))

    out = pl.pallas_call(
        kernel,
        out_shape=jax.ShapeDtypeStruct((B, H, W, Cout), jnp.bfloat16),
        grid=(B, n_h),
        in_specs=[
            pl.BlockSpec(memory_space=pl.ANY),                        # padded x stays in HBM
            pl.BlockSpec((Cin, Cout), lambda b, h: (0, 0)),
            pl.BlockSpec((R, 9, Cin, Cout), lambda b, h: (0, 0, 0, 0)),
            pl.BlockSpec(((R + 1) * Cout, Cout), lambda b, h: (0, 0)),
            pl.BlockSpec((R + 1, Cout), lambda b, h: (0, 0)),
            pl.BlockSpec((1, 1, Cout), lambda b, h: (b, 0, 0)),       # per-batch pool row
        ],
        out_specs=pl.BlockSpec((1, tile_h, W, Cout), lambda b, h: (b, h, 0, 0)),
        scratch_shapes=[
            pltpu.VMEM((2, strip_h, Wp, Cin), jnp.bfloat16),          # 2-slot halo strip
            pltpu.SemaphoreType.DMA((2,)),
        ],
        compiler_params=pltpu.CompilerParams(
            # Batch axis feeds both v7x TensorCores; the row axis stays "arbitrary"
            # so the cross-step strip prefetch order is well defined per core.
            dimension_semantics=("parallel", "arbitrary"),
            vmem_limit_bytes=vmem_limit),
    )(xp, params["w0"], wk, wproj_main, bias_all, pool_contrib)

    # bf16 writeback + bf16 transpose; cast to f32 only at the end.
    return jnp.transpose(out, (0, 3, 1, 2)).astype(jnp.float32)


# ---------------------------------------------------------------------------
# Parameter construction (deterministic, synthetic; eval-mode BN folded into weights)
# ---------------------------------------------------------------------------
def _fold_bn(gamma, beta, mean, var, eps=1e-5):
    scale = gamma / jnp.sqrt(var + eps)
    bias = beta - mean * scale
    return scale, bias


def _bn_params(key, c):
    k1, k2, k3, k4 = jax.random.split(key, 4)
    gamma = jax.random.uniform(k1, (c,), jnp.float32, 0.5, 1.5)
    beta = 0.1 * jax.random.normal(k2, (c,), jnp.float32)
    mean = 0.1 * jax.random.normal(k3, (c,), jnp.float32)
    var = jax.random.uniform(k4, (c,), jnp.float32, 0.5, 1.5)
    return _fold_bn(gamma, beta, mean, var)


def init_aspp_params(key, in_channels, out_channels, atrous_rates):
    R = len(atrous_rates)
    keys = jax.random.split(key, 2 * (R + 3))
    ki = iter(keys)
    p = {"rates": tuple(int(r) for r in atrous_rates)}

    w0 = 0.1 * jax.random.normal(next(ki), (in_channels, out_channels), jnp.float32)
    s0, b0 = _bn_params(next(ki), out_channels)
    p["w0"], p["b0"] = (w0 * s0).astype(jnp.bfloat16), b0

    wks, bks = [], []
    for _ in atrous_rates:
        w = 0.1 * jax.random.normal(next(ki), (3, 3, in_channels, out_channels), jnp.float32)
        s, bb = _bn_params(next(ki), out_channels)
        wks.append((w * s).astype(jnp.bfloat16))
        bks.append(bb)
    p["wk"] = jnp.stack(wks, axis=0)          # (R, 3, 3, Cin, Cout) bf16 (HWIO per rate)
    p["bk"] = jnp.stack(bks, axis=0)          # (R, Cout) f32

    wp = 0.1 * jax.random.normal(next(ki), (in_channels, out_channels), jnp.float32)
    sp, bp = _bn_params(next(ki), out_channels)
    p["wp"], p["bp"] = (wp * sp).astype(jnp.bfloat16), bp

    cat_c = out_channels * (R + 2)
    wj = 0.1 * jax.random.normal(next(ki), (cat_c, out_channels), jnp.float32)
    sj, bj = _bn_params(next(ki), out_channels)
    p["wproj"], p["bproj"] = (wj * sj).astype(jnp.bfloat16), bj
    return p


# ---------------------------------------------------------------------------
# Pure-JAX reference (same bf16-weight / f32-accumulate numerics) for verification
# ---------------------------------------------------------------------------
def aspp_reference(x_nchw, params):
    x = jnp.transpose(x_nchw, (0, 2, 3, 1)).astype(jnp.bfloat16)
    dn = ("NHWC", "HWIO", "NHWC")
    f32 = jnp.float32
    rates = params["rates"]
    Cout = params["w0"].shape[1]

    def conv1x1(inp, w):
        return lax.conv_general_dilated(inp, w.reshape(1, 1, *w.shape), (1, 1), "VALID",
                                        dimension_numbers=dn, preferred_element_type=f32)

    res = [jnp.maximum(conv1x1(x, params["w0"]) + params["b0"], 0.0)]
    for i, d in enumerate(rates):
        y = lax.conv_general_dilated(x, params["wk"][i], (1, 1), [(d, d), (d, d)],
                                     rhs_dilation=(d, d), dimension_numbers=dn,
                                     preferred_element_type=f32)
        res.append(jnp.maximum(y + params["bk"][i], 0.0))
    xm = jnp.mean(x.astype(f32), axis=(1, 2), keepdims=True).astype(jnp.bfloat16)
    yp = jnp.maximum(conv1x1(xm, params["wp"]) + params["bp"], 0.0)
    res.append(jnp.broadcast_to(yp, x.shape[:3] + (Cout,)))
    cat = jnp.concatenate(res, axis=-1).astype(jnp.bfloat16)
    out = jnp.maximum(conv1x1(cat, params["wproj"]) + params["bproj"], 0.0)
    return jnp.transpose(out, (0, 3, 1, 2))


# ---------------------------------------------------------------------------
if __name__ == "__main__":
    key = jax.random.PRNGKey(0)
    kx, kp = jax.random.split(key)

    # Small shapes (the module's own example is (2, 256, 100, 80)); channels are
    # chosen as 128 so the channel axis fills the 128-lane vregs (lane-dense I/O).
    B, Cin, H, W = 2, 128, 16, 16
    Cout = 128
    atrous_rates = (1, 2, 3)

    x = jax.random.normal(kx, (B, Cin, H, W), jnp.float32)
    params = init_aspp_params(kp, Cin, Cout, atrous_rates)

    fwd = jax.jit(lambda inp: aspp_forward(inp, params))
    out = fwd(x)
    jax.block_until_ready(out)

    ref = aspp_reference(x, params)
    assert out.shape == (B, Cout, H, W), out.shape
    err = float(jnp.max(jnp.abs(out - ref)))
    # Tolerance reflects the bf16 output writeback (kernel) vs f32 reference output.
    assert jnp.allclose(out, ref, atol=2e-2, rtol=2e-2), err

    print("KERNEL_OK")
</pallas_src>

<mosaic_0001>
module attributes {stable_mosaic.version = 11 : i64} {
  func.func @_aspp_fused_kernel(%arg0: i32, %arg1: i32, %arg2: memref<2x22x32x128xbf16, #tpu.memory_space<any>>, %arg3: memref<128x128xbf16, #tpu.memory_space<vmem>>, %arg4: memref<3x9x128x128xbf16, #tpu.memory_space<vmem>>, %arg5: memref<512x128xbf16, #tpu.memory_space<vmem>>, %arg6: memref<4x128xf32, #tpu.memory_space<vmem>>, %arg7: memref<1x1x128xf32, #tpu.memory_space<vmem>>, %arg8: memref<1x8x16x128xbf16, #tpu.memory_space<vmem>>, %arg9: memref<2x14x32x128xbf16, #tpu.memory_space<vmem>>, %arg10: memref<2x!tpu.dma_semaphore, #tpu.memory_space<semaphore_mem>>) attributes {dimension_semantics = [#tpu.dimension_semantics<parallel>, #tpu.dimension_semantics<arbitrary>], iteration_bounds = array<i64: 2, 2>, scalar_prefetch = 0 : i64, scratch_operands = 2 : i64, tpu.core_type = #tpu.core_type<tc>, window_params = [{}, {pipeline_mode = #tpu.pipeline_mode<synchronous>, transform_indices = @transform_1, window_bounds = array<i64: 128, 128>}, {pipeline_mode = #tpu.pipeline_mode<synchronous>, transform_indices = @transform_2, window_bounds = array<i64: 3, 9, 128, 128>}, {pipeline_mode = #tpu.pipeline_mode<synchronous>, transform_indices = @transform_3, window_bounds = array<i64: 512, 128>}, {pipeline_mode = #tpu.pipeline_mode<synchronous>, transform_indices = @transform_4, window_bounds = array<i64: 4, 128>}, {transform_indices = @transform_5, window_bounds = array<i64: 1, 1, 128>}, {transform_indices = @transform_6, window_bounds = array<i64: 1, 8, 16, 128>}]} {
    %c2_i32 = arith.constant 2 : i32
    %c0_i32 = arith.constant 0 : i32
    %0 = arith.cmpi eq, %c2_i32, %c0_i32 : i32
    %c1_i32 = arith.constant 1 : i32
    %1 = arith.select %0, %c1_i32, %c2_i32 : i32
    %2 = arith.remsi %arg1, %1 : i32
    %c0_i32_0 = arith.constant 0 : i32
    %3 = arith.cmpi ne, %2, %c0_i32_0 : i32
    %c0_i32_1 = arith.constant 0 : i32
    %4 = arith.cmpi slt, %2, %c0_i32_1 : i32
    %c0_i32_2 = arith.constant 0 : i32
    %5 = arith.cmpi slt, %1, %c0_i32_2 : i32
    %6 = arith.xori %4, %5 : i1
    %7 = arith.andi %6, %3 : i1
    %8 = arith.addi %2, %1 : i32
    %9 = arith.select %7, %8, %2 : i32
    %c0_i32_3 = arith.constant 0 : i32
    %10 = arith.cmpi eq, %arg1, %c0_i32_3 : i32
    %11 = arith.extui %10 : i1 to i32
    %c0_i32_4 = arith.constant 0 : i32
    %12 = arith.cmpi ne, %11, %c0_i32_4 : i32
    scf.if %12 {
      %c8_i32 = arith.constant 8 : i32
      %286 = arith.muli %arg1, %c8_i32 : i32
      %287 = tpu.assume_multiple %286, 8 : i32
      %c0_i32_252 = arith.constant 0 : i32
      %c0_i32_253 = arith.constant 0 : i32
      %c0_i32_254 = arith.constant 0 : i32
      %c0_i32_255 = arith.constant 0 : i32
      %288 = tpu.memref_slice %arg2[%arg0, %287, %c0_i32_254, %c0_i32_255] : memref<2x22x32x128xbf16, #tpu.memory_space<any>> -> memref<1x14x32x128xbf16, #tpu.memory_space<any>>
      %289 = tpu.memref_squeeze %288 : memref<1x14x32x128xbf16, #tpu.memory_space<any>> -> memref<14x32x128xbf16, #tpu.memory_space<any>>
      %c0_i32_256 = arith.constant 0 : i32
      %c0_i32_257 = arith.constant 0 : i32
      %c0_i32_258 = arith.constant 0 : i32
      %290 = tpu.memref_slice %arg9[%c0_i32_252, %c0_i32_256, %c0_i32_257, %c0_i32_258] : memref<2x14x32x128xbf16, #tpu.memory_space<vmem>> -> memref<1x14x32x128xbf16, #tpu.memory_space<vmem>>
      %291 = tpu.memref_squeeze %290 : memref<1x14x32x128xbf16, #tpu.memory_space<vmem>> -> memref<14x32x128xbf16, #tpu.memory_space<vmem>>
      %292 = tpu.memref_slice %arg10[%c0_i32_253] : memref<2x!tpu.dma_semaphore, #tpu.memory_space<semaphore_mem>> -> memref<1x!tpu.dma_semaphore, #tpu.memory_space<semaphore_mem>>
      %293 = tpu.memref_squeeze %292 : memref<1x!tpu.dma_semaphore, #tpu.memory_space<semaphore_mem>> -> memref<!tpu.dma_semaphore, #tpu.memory_space<semaphore_mem>>
      tpu.enqueue_dma source(%289 : memref<14x32x128xbf16, #tpu.memory_space<any>>) target(%291 : memref<14x32x128xbf16, #tpu.memory_space<vmem>>) target_semaphore(%293 : memref<!tpu.dma_semaphore, #tpu.memory_space<semaphore_mem>>)
    } else {
    }
    %c1_i32_5 = arith.constant 1 : i32
    %13 = arith.addi %arg1, %c1_i32_5 : i32
    %c2_i32_6 = arith.constant 2 : i32
    %14 = arith.cmpi slt, %13, %c2_i32_6 : i32
    %15 = arith.extui %14 : i1 to i32
    %c0_i32_7 = arith.constant 0 : i32
    %16 = arith.cmpi ne, %15, %c0_i32_7 : i32
    scf.if %16 {
      %c1_i32_252 = arith.constant 1 : i32
      %286 = arith.addi %arg1, %c1_i32_252 : i32
      %c1_i32_253 = arith.constant 1 : i32
      %287 = arith.addi %arg1, %c1_i32_253 : i32
      %c2_i32_254 = arith.constant 2 : i32
      %c0_i32_255 = arith.constant 0 : i32
      %288 = arith.cmpi eq, %c2_i32_254, %c0_i32_255 : i32
      %c1_i32_256 = arith.constant 1 : i32
      %289 = arith.select %288, %c1_i32_256, %c2_i32_254 : i32
      %290 = arith.remsi %287, %289 : i32
      %c0_i32_257 = arith.constant 0 : i32
      %291 = arith.cmpi ne, %290, %c0_i32_257 : i32
      %c0_i32_258 = arith.constant 0 : i32
      %292 = arith.cmpi slt, %290, %c0_i32_258 : i32
      %c0_i32_259 = arith.constant 0 : i32
      %293 = arith.cmpi slt, %289, %c0_i32_259 : i32
      %294 = arith.xori %292, %293 : i1
      %295 = arith.andi %294, %291 : i1
      %296 = arith.addi %290, %289 : i32
      %297 = arith.select %295, %296, %290 : i32
      %c8_i32 = arith.constant 8 : i32
      %298 = arith.muli %286, %c8_i32 : i32
      %299 = tpu.assume_multiple %298, 8 : i32
      %c0_i32_260 = arith.constant 0 : i32
      %c0_i32_261 = arith.constant 0 : i32
      %300 = tpu.memref_slice %arg2[%arg0, %299, %c0_i32_260, %c0_i32_261] : memref<2x22x32x128xbf16, #tpu.memory_space<any>> -> memref<1x14x32x128xbf16, #tpu.memory_space<any>>
      %301 = tpu.memref_squeeze %300 : memref<1x14x32x128xbf16, #tpu.memory_space<any>> -> memref<14x32x128xbf16, #tpu.memory_space<any>>
      %c0_i32_262 = arith.constant 0 : i32
      %c0_i32_263 = arith.constant 0 : i32
      %c0_i32_264 = arith.constant 0 : i32
      %302 = tpu.memref_slice %arg9[%297, %c0_i32_262, %c0_i32_263, %c0_i32_264] : memref<2x14x32x128xbf16, #tpu.memory_space<vmem>> -> memref<1x14x32x128xbf16, #tpu.memory_space<vmem>>
      %303 = tpu.memref_squeeze %302 : memref<1x14x32x128xbf16, #tpu.memory_space<vmem>> -> memref<14x32x128xbf16, #tpu.memory_space<vmem>>
      %304 = tpu.memref_slice %arg10[%297] : memref<2x!tpu.dma_semaphore, #tpu.memory_space<semaphore_mem>> -> memref<1x!tpu.dma_semaphore, #tpu.memory_space<semaphore_mem>>
      %305 = tpu.memref_squeeze %304 : memref<1x!tpu.dma_semaphore, #tpu.memory_space<semaphore_mem>> -> memref<!tpu.dma_semaphore, #tpu.memory_space<semaphore_mem>>
      tpu.enqueue_dma source(%301 : memref<14x32x128xbf16, #tpu.memory_space<any>>) target(%303 : memref<14x32x128xbf16, #tpu.memory_space<vmem>>) target_semaphore(%305 : memref<!tpu.dma_semaphore, #tpu.memory_space<semaphore_mem>>)
    } else {
    }
    %c0_i32_8 = arith.constant 0 : i32
    %c0_i32_9 = arith.constant 0 : i32
    %c0_i32_10 = arith.constant 0 : i32
    %17 = tpu.memref_slice %arg2[%arg0, %c0_i32_8, %c0_i32_9, %c0_i32_10] : memref<2x22x32x128xbf16, #tpu.memory_space<any>> -> memref<1x14x32x128xbf16, #tpu.memory_space<any>>
    %18 = tpu.memref_squeeze %17 : memref<1x14x32x128xbf16, #tpu.memory_space<any>> -> memref<14x32x128xbf16, #tpu.memory_space<any>>
    %c0_i32_11 = arith.constant 0 : i32
    %c0_i32_12 = arith.constant 0 : i32
    %c0_i32_13 = arith.constant 0 : i32
    %19 = tpu.memref_slice %arg9[%9, %c0_i32_11, %c0_i32_12, %c0_i32_13] : memref<2x14x32x128xbf16, #tpu.memory_space<vmem>> -> memref<1x14x32x128xbf16, #tpu.memory_space<vmem>>
    %20 = tpu.memref_squeeze %19 : memref<1x14x32x128xbf16, #tpu.memory_space<vmem>> -> memref<14x32x128xbf16, #tpu.memory_space<vmem>>
    %21 = tpu.memref_slice %arg10[%9] : memref<2x!tpu.dma_semaphore, #tpu.memory_space<semaphore_mem>> -> memref<1x!tpu.dma_semaphore, #tpu.memory_space<semaphore_mem>>
    %22 = tpu.memref_squeeze %21 : memref<1x!tpu.dma_semaphore, #tpu.memory_space<semaphore_mem>> -> memref<!tpu.dma_semaphore, #tpu.memory_space<semaphore_mem>>
    tpu.wait_dma2 semaphore(%22 : memref<!tpu.dma_semaphore, #tpu.memory_space<semaphore_mem>>) src(%18 : memref<14x32x128xbf16, #tpu.memory_space<any>>) dst(%20 : memref<14x32x128xbf16, #tpu.memory_space<vmem>>)
    %23 = arith.index_cast %9 : i32 to index
    %c3 = arith.constant 3 : index
    %c8 = arith.constant 8 : index
    %c0 = arith.constant 0 : index
    %24 = vector.load %arg9[%23, %c3, %c8, %c0] : memref<2x14x32x128xbf16, #tpu.memory_space<vmem>>, vector<1x8x16x128xbf16>
    %25 = vector.shape_cast %24 : vector<1x8x16x128xbf16> to vector<8x16x128xbf16>
    %26 = vector.shape_cast %25 : vector<8x16x128xbf16> to vector<128x128xbf16>
    %c0_14 = arith.constant 0 : index
    %c0_15 = arith.constant 0 : index
    %27 = vector.load %arg3[%c0_14, %c0_15] : memref<128x128xbf16, #tpu.memory_space<vmem>>, vector<128x128xbf16>
    %cst = arith.constant dense<0.000000e+00> : vector<128x128xf32>
    %28 = tpu.matmul %26, %27, %cst {dimension_numbers = #tpu.dot_dimension_numbers<[1], [0], [0], [1], [0, 0, 1, 1], [], []>} : vector<128x128xbf16>, vector<128x128xbf16>, vector<128x128xf32> -> vector<128x128xf32>
    %c0_16 = arith.constant 0 : index
    %c0_17 = arith.constant 0 : index
    %29 = vector.load %arg6[%c0_16, %c0_17] : memref<4x128xf32, #tpu.memory_space<vmem>>, vector<1x128xf32>
    %30 = vector.broadcast %29 : vector<1x128xf32> to vector<128x128xf32>
    %31 = arith.addf %28, %30 : vector<128x128xf32>
    %cst_18 = arith.constant 0.000000e+00 : f32
    %32 = vector.broadcast %cst_18 : f32 to vector<128x128xf32>
    %33 = arith.maximumf %31, %32 : vector<128x128xf32>
    %34 = arith.truncf %33 : vector<128x128xf32> to vector<128x128xbf16>
    %c0_19 = arith.constant 0 : index
    %c0_20 = arith.constant 0 : index
    %35 = vector.load %arg5[%c0_19, %c0_20] : memref<512x128xbf16, #tpu.memory_space<vmem>>, vector<128x128xbf16>
    %cst_21 = arith.constant dense<0.000000e+00> : vector<128x128xf32>
    %36 = tpu.matmul %34, %35, %cst_21 {dimension_numbers = #tpu.dot_dimension_numbers<[1], [0], [0], [1], [0, 0, 1, 1], [], []>} : vector<128x128xbf16>, vector<128x128xbf16>, vector<128x128xf32> -> vector<128x128xf32>
    %37 = arith.index_cast %9 : i32 to index
    %c2 = arith.constant 2 : index
    %c7 = arith.constant 7 : index
    %c0_22 = arith.constant 0 : index
    %38 = vector.load %arg9[%37, %c2, %c7, %c0_22] : memref<2x14x32x128xbf16, #tpu.memory_space<vmem>>, vector<1x8x16x128xbf16>
    %39 = vector.shape_cast %38 : vector<1x8x16x128xbf16> to vector<8x16x128xbf16>
    %40 = vector.shape_cast %39 : vector<8x16x128xbf16> to vector<128x128xbf16>
    %c0_23 = arith.constant 0 : index
    %c0_24 = arith.constant 0 : index
    %c0_25 = arith.constant 0 : index
    %c0_26 = arith.constant 0 : index
    %41 = vector.load %arg4[%c0_23, %c0_24, %c0_25, %c0_26] : memref<3x9x128x128xbf16, #tpu.memory_space<vmem>>, vector<1x1x128x128xbf16>
    %42 = vector.shape_cast %41 : vector<1x1x128x128xbf16> to vector<128x128xbf16>
    %cst_27 = arith.constant dense<0.000000e+00> : vector<128x128xf32>
    %43 = tpu.matmul %40, %42, %cst_27 {dimension_numbers = #tpu.dot_dimension_numbers<[1], [0], [0], [1], [0, 0, 1, 1], [], []>} : vector<128x128xbf16>, vector<128x128xbf16>, vector<128x128xf32> -> vector<128x128xf32>
    %44 = arith.index_cast %9 : i32 to index
    %c2_28 = arith.constant 2 : index
    %c8_29 = arith.constant 8 : index
    %c0_30 = arith.constant 0 : index
    %45 = vector.load %arg9[%44, %c2_28, %c8_29, %c0_30] : memref<2x14x32x128xbf16, #tpu.memory_space<vmem>>, vector<1x8x16x128xbf16>
    %46 = vector.shape_cast %45 : vector<1x8x16x128xbf16> to vector<8x16x128xbf16>
    %47 = vector.shape_cast %46 : vector<8x16x128xbf16> to vector<128x128xbf16>
    %c0_31 = arith.constant 0 : index
    %c1 = arith.constant 1 : index
    %c0_32 = arith.constant 0 : index
    %c0_33 = arith.constant 0 : index
    %48 = vector.load %arg4[%c0_31, %c1, %c0_32, %c0_33] : memref<3x9x128x128xbf16, #tpu.memory_space<vmem>>, vector<1x1x128x128xbf16>
    %49 = vector.shape_cast %48 : vector<1x1x128x128xbf16> to vector<128x128xbf16>
    %cst_34 = arith.constant dense<0.000000e+00> : vector<128x128xf32>
    %50 = tpu.matmul %47, %49, %cst_34 {dimension_numbers = #tpu.dot_dimension_numbers<[1], [0], [0], [1], [0, 0, 1, 1], [], []>} : vector<128x128xbf16>, vector<128x128xbf16>, vector<128x128xf32> -> vector<128x128xf32>
    %51 = arith.addf %43, %50 : vector<128x128xf32>
    %52 = arith.index_cast %9 : i32 to index
    %c2_35 = arith.constant 2 : index
    %c9 = arith.constant 9 : index
    %c0_36 = arith.constant 0 : index
    %53 = vector.load %arg9[%52, %c2_35, %c9, %c0_36] : memref<2x14x32x128xbf16, #tpu.memory_space<vmem>>, vector<1x8x16x128xbf16>
    %54 = vector.shape_cast %53 : vector<1x8x16x128xbf16> to vector<8x16x128xbf16>
    %55 = vector.shape_cast %54 : vector<8x16x128xbf16> to vector<128x128xbf16>
    %c0_37 = arith.constant 0 : index
    %c2_38 = arith.constant 2 : index
    %c0_39 = arith.constant 0 : index
    %c0_40 = arith.constant 0 : index
    %56 = vector.load %arg4[%c0_37, %c2_38, %c0_39, %c0_40] : memref<3x9x128x128xbf16, #tpu.memory_space<vmem>>, vector<1x1x128x128xbf16>
    %57 = vector.shape_cast %56 : vector<1x1x128x128xbf16> to vector<128x128xbf16>
    %cst_41 = arith.constant dense<0.000000e+00> : vector<128x128xf32>
    %58 = tpu.matmul %55, %57, %cst_41 {dimension_numbers = #tpu.dot_dimension_numbers<[1], [0], [0], [1], [0, 0, 1, 1], [], []>} : vector<128x128xbf16>, vector<128x128xbf16>, vector<128x128xf32> -> vector<128x128xf32>
    %59 = arith.addf %51, %58 : vector<128x128xf32>
    %60 = arith.index_cast %9 : i32 to index
    %c3_42 = arith.constant 3 : index
    %c7_43 = arith.constant 7 : index
    %c0_44 = arith.constant 0 : index
    %61 = vector.load %arg9[%60, %c3_42, %c7_43, %c0_44] : memref<2x14x32x128xbf16, #tpu.memory_space<vmem>>, vector<1x8x16x128xbf16>
    %62 = vector.shape_cast %61 : vector<1x8x16x128xbf16> to vector<8x16x128xbf16>
    %63 = vector.shape_cast %62 : vector<8x16x128xbf16> to vector<128x128xbf16>
    %c0_45 = arith.constant 0 : index
    %c3_46 = arith.constant 3 : index
    %c0_47 = arith.constant 0 : index
    %c0_48 = arith.constant 0 : index
    %64 = vector.load %arg4[%c0_45, %c3_46, %c0_47, %c0_48] : memref<3x9x128x128xbf16, #tpu.memory_space<vmem>>, vector<1x1x128x128xbf16>
    %65 = vector.shape_cast %64 : vector<1x1x128x128xbf16> to vector<128x128xbf16>
    %cst_49 = arith.constant dense<0.000000e+00> : vector<128x128xf32>
    %66 = tpu.matmul %63, %65, %cst_49 {dimension_numbers = #tpu.dot_dimension_numbers<[1], [0], [0], [1], [0, 0, 1, 1], [], []>} : vector<128x128xbf16>, vector<128x128xbf16>, vector<128x128xf32> -> vector<128x128xf32>
    %67 = arith.addf %59, %66 : vector<128x128xf32>
    %68 = arith.index_cast %9 : i32 to index
    %c3_50 = arith.constant 3 : index
    %c8_51 = arith.constant 8 : index
    %c0_52 = arith.constant 0 : index
    %69 = vector.load %arg9[%68, %c3_50, %c8_51, %c0_52] : memref<2x14x32x128xbf16, #tpu.memory_space<vmem>>, vector<1x8x16x128xbf16>
    %70 = vector.shape_cast %69 : vector<1x8x16x128xbf16> to vector<8x16x128xbf16>
    %71 = vector.shape_cast %70 : vector<8x16x128xbf16> to vector<128x128xbf16>
    %c0_53 = arith.constant 0 : index
    %c4 = arith.constant 4 : index
    %c0_54 = arith.constant 0 : index
    %c0_55 = arith.constant 0 : index
    %72 = vector.load %arg4[%c0_53, %c4, %c0_54, %c0_55] : memref<3x9x128x128xbf16, #tpu.memory_space<vmem>>, vector<1x1x128x128xbf16>
    %73 = vector.shape_cast %72 : vector<1x1x128x128xbf16> to vector<128x128xbf16>
    %cst_56 = arith.constant dense<0.000000e+00> : vector<128x128xf32>
    %74 = tpu.matmul %71, %73, %cst_56 {dimension_numbers = #tpu.dot_dimension_numbers<[1], [0], [0], [1], [0, 0, 1, 1], [], []>} : vector<128x128xbf16>, vector<128x128xbf16>, vector<128x128xf32> -> vector<128x128xf32>
    %75 = arith.addf %67, %74 : vector<128x128xf32>
    %76 = arith.index_cast %9 : i32 to index
    %c3_57 = arith.constant 3 : index
    %c9_58 = arith.constant 9 : index
    %c0_59 = arith.constant 0 : index
    %77 = vector.load %arg9[%76, %c3_57, %c9_58, %c0_59] : memref<2x14x32x128xbf16, #tpu.memory_space<vmem>>, vector<1x8x16x128xbf16>
    %78 = vector.shape_cast %77 : vector<1x8x16x128xbf16> to vector<8x16x128xbf16>
    %79 = vector.shape_cast %78 : vector<8x16x128xbf16> to vector<128x128xbf16>
    %c0_60 = arith.constant 0 : index
    %c5 = arith.constant 5 : index
    %c0_61 = arith.constant 0 : index
    %c0_62 = arith.constant 0 : index
    %80 = vector.load %arg4[%c0_60, %c5, %c0_61, %c0_62] : memref<3x9x128x128xbf16, #tpu.memory_space<vmem>>, vector<1x1x128x128xbf16>
    %81 = vector.shape_cast %80 : vector<1x1x128x128xbf16> to vector<128x128xbf16>
    %cst_63 = arith.constant dense<0.000000e+00> : vector<128x128xf32>
    %82 = tpu.matmul %79, %81, %cst_63 {dimension_numbers = #tpu.dot_dimension_numbers<[1], [0], [0], [1], [0, 0, 1, 1], [], []>} : vector<128x128xbf16>, vector<128x128xbf16>, vector<128x128xf32> -> vector<128x128xf32>
    %83 = arith.addf %75, %82 : vector<128x128xf32>
    %84 = arith.index_cast %9 : i32 to index
    %c4_64 = arith.constant 4 : index
    %c7_65 = arith.constant 7 : index
    %c0_66 = arith.constant 0 : index
    %85 = vector.load %arg9[%84, %c4_64, %c7_65, %c0_66] : memref<2x14x32x128xbf16, #tpu.memory_space<vmem>>, vector<1x8x16x128xbf16>
    %86 = vector.shape_cast %85 : vector<1x8x16x128xbf16> to vector<8x16x128xbf16>
    %87 = vector.shape_cast %86 : vector<8x16x128xbf16> to vector<128x128xbf16>
    %c0_67 = arith.constant 0 : index
    %c6 = arith.constant 6 : index
    %c0_68 = arith.constant 0 : index
    %c0_69 = arith.constant 0 : index
    %88 = vector.load %arg4[%c0_67, %c6, %c0_68, %c0_69] : memref<3x9x128x128xbf16, #tpu.memory_space<vmem>>, vector<1x1x128x128xbf16>
    %89 = vector.shape_cast %88 : vector<1x1x128x128xbf16> to vector<128x128xbf16>
    %cst_70 = arith.constant dense<0.000000e+00> : vector<128x128xf32>
    %90 = tpu.matmul %87, %89, %cst_70 {dimension_numbers = #tpu.dot_dimension_numbers<[1], [0], [0], [1], [0, 0, 1, 1], [], []>} : vector<128x128xbf16>, vector<128x128xbf16>, vector<128x128xf32> -> vector<128x128xf32>
    %91 = arith.addf %83, %90 : vector<128x128xf32>
    %92 = arith.index_cast %9 : i32 to index
    %c4_71 = arith.constant 4 : index
    %c8_72 = arith.constant 8 : index
    %c0_73 = arith.constant 0 : index
    %93 = vector.load %arg9[%92, %c4_71, %c8_72, %c0_73] : memref<2x14x32x128xbf16, #tpu.memory_space<vmem>>, vector<1x8x16x128xbf16>
    %94 = vector.shape_cast %93 : vector<1x8x16x128xbf16> to vector<8x16x128xbf16>
    %95 = vector.shape_cast %94 : vector<8x16x128xbf16> to vector<128x128xbf16>
    %c0_74 = arith.constant 0 : index
    %c7_75 = arith.constant 7 : index
    %c0_76 = arith.constant 0 : index
    %c0_77 = arith.constant 0 : index
    %96 = vector.load %arg4[%c0_74, %c7_75, %c0_76, %c0_77] : memref<3x9x128x128xbf16, #tpu.memory_space<vmem>>, vector<1x1x128x128xbf16>
    %97 = vector.shape_cast %96 : vector<1x1x128x128xbf16> to vector<128x128xbf16>
    %cst_78 = arith.constant dense<0.000000e+00> : vector<128x128xf32>
    %98 = tpu.matmul %95, %97, %cst_78 {dimension_numbers = #tpu.dot_dimension_numbers<[1], [0], [0], [1], [0, 0, 1, 1], [], []>} : vector<128x128xbf16>, vector<128x128xbf16>, vector<128x128xf32> -> vector<128x128xf32>
    %99 = arith.addf %91, %98 : vector<128x128xf32>
    %100 = arith.index_cast %9 : i32 to index
    %c4_79 = arith.constant 4 : index
    %c9_80 = arith.constant 9 : index
    %c0_81 = arith.constant 0 : index
    %101 = vector.load %arg9[%100, %c4_79, %c9_80, %c0_81] : memref<2x14x32x128xbf16, #tpu.memory_space<vmem>>, vector<1x8x16x128xbf16>
    %102 = vector.shape_cast %101 : vector<1x8x16x128xbf16> to vector<8x16x128xbf16>
    %103 = vector.shape_cast %102 : vector<8x16x128xbf16> to vector<128x128xbf16>
    %c0_82 = arith.constant 0 : index
    %c8_83 = arith.constant 8 : index
    %c0_84 = arith.constant 0 : index
    %c0_85 = arith.constant 0 : index
    %104 = vector.load %arg4[%c0_82, %c8_83, %c0_84, %c0_85] : memref<3x9x128x128xbf16, #tpu.memory_space<vmem>>, vector<1x1x128x128xbf16>
    %105 = vector.shape_cast %104 : vector<1x1x128x128xbf16> to vector<128x128xbf16>
    %cst_86 = arith.constant dense<0.000000e+00> : vector<128x128xf32>
    %106 = tpu.matmul %103, %105, %cst_86 {dimension_numbers = #tpu.dot_dimension_numbers<[1], [0], [0], [1], [0, 0, 1, 1], [], []>} : vector<128x128xbf16>, vector<128x128xbf16>, vector<128x128xf32> -> vector<128x128xf32>
    %107 = arith.addf %99, %106 : vector<128x128xf32>
    %c1_87 = arith.constant 1 : index
    %c0_88 = arith.constant 0 : index
    %108 = vector.load %arg6[%c1_87, %c0_88] : memref<4x128xf32, #tpu.memory_space<vmem>>, vector<1x128xf32>
    %109 = vector.broadcast %108 : vector<1x128xf32> to vector<128x128xf32>
    %110 = arith.addf %107, %109 : vector<128x128xf32>
    %cst_89 = arith.constant 0.000000e+00 : f32
    %111 = vector.broadcast %cst_89 : f32 to vector<128x128xf32>
    %112 = arith.maximumf %110, %111 : vector<128x128xf32>
    %113 = arith.truncf %112 : vector<128x128xf32> to vector<128x128xbf16>
    %c128 = arith.constant 128 : index
    %c0_90 = arith.constant 0 : index
    %114 = vector.load %arg5[%c128, %c0_90] : memref<512x128xbf16, #tpu.memory_space<vmem>>, vector<128x128xbf16>
    %cst_91 = arith.constant dense<0.000000e+00> : vector<128x128xf32>
    %115 = tpu.matmul %113, %114, %cst_91 {dimension_numbers = #tpu.dot_dimension_numbers<[1], [0], [0], [1], [0, 0, 1, 1], [], []>} : vector<128x128xbf16>, vector<128x128xbf16>, vector<128x128xf32> -> vector<128x128xf32>
    %116 = arith.addf %36, %115 : vector<128x128xf32>
    %117 = arith.index_cast %9 : i32 to index
    %c1_92 = arith.constant 1 : index
    %c6_93 = arith.constant 6 : index
    %c0_94 = arith.constant 0 : index
    %118 = vector.load %arg9[%117, %c1_92, %c6_93, %c0_94] : memref<2x14x32x128xbf16, #tpu.memory_space<vmem>>, vector<1x8x16x128xbf16>
    %119 = vector.shape_cast %118 : vector<1x8x16x128xbf16> to vector<8x16x128xbf16>
    %120 = vector.shape_cast %119 : vector<8x16x128xbf16> to vector<128x128xbf16>
    %c1_95 = arith.constant 1 : index
    %c0_96 = arith.constant 0 : index
    %c0_97 = arith.constant 0 : index
    %c0_98 = arith.constant 0 : index
    %121 = vector.load %arg4[%c1_95, %c0_96, %c0_97, %c0_98] : memref<3x9x128x128xbf16, #tpu.memory_space<vmem>>, vector<1x1x128x128xbf16>
    %122 = vector.shape_cast %121 : vector<1x1x128x128xbf16> to vector<128x128xbf16>
    %cst_99 = arith.constant dense<0.000000e+00> : vector<128x128xf32>
    %123 = tpu.matmul %120, %122, %cst_99 {dimension_numbers = #tpu.dot_dimension_numbers<[1], [0], [0], [1], [0, 0, 1, 1], [], []>} : vector<128x128xbf16>, vector<128x128xbf16>, vector<128x128xf32> -> vector<128x128xf32>
    %124 = arith.index_cast %9 : i32 to index
    %c1_100 = arith.constant 1 : index
    %c8_101 = arith.constant 8 : index
    %c0_102 = arith.constant 0 : index
    %125 = vector.load %arg9[%124, %c1_100, %c8_101, %c0_102] : memref<2x14x32x128xbf16, #tpu.memory_space<vmem>>, vector<1x8x16x128xbf16>
    %126 = vector.shape_cast %125 : vector<1x8x16x128xbf16> to vector<8x16x128xbf16>
    %127 = vector.shape_cast %126 : vector<8x16x128xbf16> to vector<128x128xbf16>
    %c1_103 = arith.constant 1 : index
    %c1_104 = arith.constant 1 : index
    %c0_105 = arith.constant 0 : index
    %c0_106 = arith.constant 0 : index
    %128 = vector.load %arg4[%c1_103, %c1_104, %c0_105, %c0_106] : memref<3x9x128x128xbf16, #tpu.memory_space<vmem>>, vector<1x1x128x128xbf16>
    %129 = vector.shape_cast %128 : vector<1x1x128x128xbf16> to vector<128x128xbf16>
    %cst_107 = arith.constant dense<0.000000e+00> : vector<128x128xf32>
    %130 = tpu.matmul %127, %129, %cst_107 {dimension_numbers = #tpu.dot_dimension_numbers<[1], [0], [0], [1], [0, 0, 1, 1], [], []>} : vector<128x128xbf16>, vector<128x128xbf16>, vector<128x128xf32> -> vector<128x128xf32>
    %131 = arith.addf %123, %130 : vector<128x128xf32>
    %132 = arith.index_cast %9 : i32 to index
    %c1_108 = arith.constant 1 : index
    %c10 = arith.constant 10 : index
    %c0_109 = arith.constant 0 : index
    %133 = vector.load %arg9[%132, %c1_108, %c10, %c0_109] : memref<2x14x32x128xbf16, #tpu.memory_space<vmem>>, vector<1x8x16x128xbf16>
    %134 = vector.shape_cast %133 : vector<1x8x16x128xbf16> to vector<8x16x128xbf16>
    %135 = vector.shape_cast %134 : vector<8x16x128xbf16> to vector<128x128xbf16>
    %c1_110 = arith.constant 1 : index
    %c2_111 = arith.constant 2 : index
    %c0_112 = arith.constant 0 : index
    %c0_113 = arith.constant 0 : index
    %136 = vector.load %arg4[%c1_110, %c2_111, %c0_112, %c0_113] : memref<3x9x128x128xbf16, #tpu.memory_space<vmem>>, vector<1x1x128x128xbf16>
    %137 = vector.shape_cast %136 : vector<1x1x128x128xbf16> to vector<128x128xbf16>
    %cst_114 = arith.constant dense<0.000000e+00> : vector<128x128xf32>
    %138 = tpu.matmul %135, %137, %cst_114 {dimension_numbers = #tpu.dot_dimension_numbers<[1], [0], [0], [1], [0, 0, 1, 1], [], []>} : vector<128x128xbf16>, vector<128x128xbf16>, vector<128x128xf32> -> vector<128x128xf32>
    %139 = arith.addf %131, %138 : vector<128x128xf32>
    %140 = arith.index_cast %9 : i32 to index
    %c3_115 = arith.constant 3 : index
    %c6_116 = arith.constant 6 : index
    %c0_117 = arith.constant 0 : index
    %141 = vector.load %arg9[%140, %c3_115, %c6_116, %c0_117] : memref<2x14x32x128xbf16, #tpu.memory_space<vmem>>, vector<1x8x16x128xbf16>
    %142 = vector.shape_cast %141 : vector<1x8x16x128xbf16> to vector<8x16x128xbf16>
    %143 = vector.shape_cast %142 : vector<8x16x128xbf16> to vector<128x128xbf16>
    %c1_118 = arith.constant 1 : index
    %c3_119 = arith.constant 3 : index
    %c0_120 = arith.constant 0 : index
    %c0_121 = arith.constant 0 : index
    %144 = vector.load %arg4[%c1_118, %c3_119, %c0_120, %c0_121] : memref<3x9x128x128xbf16, #tpu.memory_space<vmem>>, vector<1x1x128x128xbf16>
    %145 = vector.shape_cast %144 : vector<1x1x128x128xbf16> to vector<128x128xbf16>
    %cst_122 = arith.constant dense<0.000000e+00> : vector<128x128xf32>
    %146 = tpu.matmul %143, %145, %cst_122 {dimension_numbers = #tpu.dot_dimension_numbers<[1], [0], [0], [1], [0, 0, 1, 1], [], []>} : vector<128x128xbf16>, vector<128x128xbf16>, vector<128x128xf32> -> vector<128x128xf32>
    %147 = arith.addf %139, %146 : vector<128x128xf32>
    %148 = arith.index_cast %9 : i32 to index
    %c3_123 = arith.constant 3 : index
    %c8_124 = arith.constant 8 : index
    %c0_125 = arith.constant 0 : index
    %149 = vector.load %arg9[%148, %c3_123, %c8_124, %c0_125] : memref<2x14x32x128xbf16, #tpu.memory_space<vmem>>, vector<1x8x16x128xbf16>
    %150 = vector.shape_cast %149 : vector<1x8x16x128xbf16> to vector<8x16x128xbf16>
    %151 = vector.shape_cast %150 : vector<8x16x128xbf16> to vector<128x128xbf16>
    %c1_126 = arith.constant 1 : index
    %c4_127 = arith.constant 4 : index
    %c0_128 = arith.constant 0 : index
    %c0_129 = arith.constant 0 : index
    %152 = vector.load %arg4[%c1_126, %c4_127, %c0_128, %c0_129] : memref<3x9x128x128xbf16, #tpu.memory_space<vmem>>, vector<1x1x128x128xbf16>
    %153 = vector.shape_cast %152 : vector<1x1x128x128xbf16> to vector<128x128xbf16>
    %cst_130 = arith.constant dense<0.000000e+00> : vector<128x128xf32>
    %154 = tpu.matmul %151, %153, %cst_130 {dimension_numbers = #tpu.dot_dimension_numbers<[1], [0], [0], [1], [0, 0, 1, 1], [], []>} : vector<128x128xbf16>, vector<128x128xbf16>, vector<128x128xf32> -> vector<128x128xf32>
    %155 = arith.addf %147, %154 : vector<128x128xf32>
    %156 = arith.index_cast %9 : i32 to index
    %c3_131 = arith.constant 3 : index
    %c10_132 = arith.constant 10 : index
    %c0_133 = arith.constant 0 : index
    %157 = vector.load %arg9[%156, %c3_131, %c10_132, %c0_133] : memref<2x14x32x128xbf16, #tpu.memory_space<vmem>>, vector<1x8x16x128xbf16>
    %158 = vector.shape_cast %157 : vector<1x8x16x128xbf16> to vector<8x16x128xbf16>
    %159 = vector.shape_cast %158 : vector<8x16x128xbf16> to vector<128x128xbf16>
    %c1_134 = arith.constant 1 : index
    %c5_135 = arith.constant 5 : index
    %c0_136 = arith.constant 0 : index
    %c0_137 = arith.constant 0 : index
    %160 = vector.load %arg4[%c1_134, %c5_135, %c0_136, %c0_137] : memref<3x9x128x128xbf16, #tpu.memory_space<vmem>>, vector<1x1x128x128xbf16>
    %161 = vector.shape_cast %160 : vector<1x1x128x128xbf16> to vector<128x128xbf16>
    %cst_138 = arith.constant dense<0.000000e+00> : vector<128x128xf32>
    %162 = tpu.matmul %159, %161, %cst_138 {dimension_numbers = #tpu.dot_dimension_numbers<[1], [0], [0], [1], [0, 0, 1, 1], [], []>} : vector<128x128xbf16>, vector<128x128xbf16>, vector<128x128xf32> -> vector<128x128xf32>
    %163 = arith.addf %155, %162 : vector<128x128xf32>
    %164 = arith.index_cast %9 : i32 to index
    %c5_139 = arith.constant 5 : index
    %c6_140 = arith.constant 6 : index
    %c0_141 = arith.constant 0 : index
    %165 = vector.load %arg9[%164, %c5_139, %c6_140, %c0_141] : memref<2x14x32x128xbf16, #tpu.memory_space<vmem>>, vector<1x8x16x128xbf16>
    %166 = vector.shape_cast %165 : vector<1x8x16x128xbf16> to vector<8x16x128xbf16>
    %167 = vector.shape_cast %166 : vector<8x16x128xbf16> to vector<128x128xbf16>
    %c1_142 = arith.constant 1 : index
    %c6_143 = arith.constant 6 : index
    %c0_144 = arith.constant 0 : index
    %c0_145 = arith.constant 0 : index
    %168 = vector.load %arg4[%c1_142, %c6_143, %c0_144, %c0_145] : memref<3x9x128x128xbf16, #tpu.memory_space<vmem>>, vector<1x1x128x128xbf16>
    %169 = vector.shape_cast %168 : vector<1x1x128x128xbf16> to vector<128x128xbf16>
    %cst_146 = arith.constant dense<0.000000e+00> : vector<128x128xf32>
    %170 = tpu.matmul %167, %169, %cst_146 {dimension_numbers = #tpu.dot_dimension_numbers<[1], [0], [0], [1], [0, 0, 1, 1], [], []>} : vector<128x128xbf16>, vector<128x128xbf16>, vector<128x128xf32> -> vector<128x128xf32>
    %171 = arith.addf %163, %170 : vector<128x128xf32>
    %172 = arith.index_cast %9 : i32 to index
    %c5_147 = arith.constant 5 : index
    %c8_148 = arith.constant 8 : index
    %c0_149 = arith.constant 0 : index
    %173 = vector.load %arg9[%172, %c5_147, %c8_148, %c0_149] : memref<2x14x32x128xbf16, #tpu.memory_space<vmem>>, vector<1x8x16x128xbf16>
    %174 = vector.shape_cast %173 : vector<1x8x16x128xbf16> to vector<8x16x128xbf16>
    %175 = vector.shape_cast %174 : vector<8x16x128xbf16> to vector<128x128xbf16>
    %c1_150 = arith.constant 1 : index
    %c7_151 = arith.constant 7 : index
    %c0_152 = arith.constant 0 : index
    %c0_153 = arith.constant 0 : index
    %176 = vector.load %arg4[%c1_150, %c7_151, %c0_152, %c0_153] : memref<3x9x128x128xbf16, #tpu.memory_space<vmem>>, vector<1x1x128x128xbf16>
    %177 = vector.shape_cast %176 : vector<1x1x128x128xbf16> to vector<128x128xbf16>
    %cst_154 = arith.constant dense<0.000000e+00> : vector<128x128xf32>
    %178 = tpu.matmul %175, %177, %cst_154 {dimension_numbers = #tpu.dot_dimension_numbers<[1], [0], [0], [1], [0, 0, 1, 1], [], []>} : vector<128x128xbf16>, vector<128x128xbf16>, vector<128x128xf32> -> vector<128x128xf32>
    %179 = arith.addf %171, %178 : vector<128x128xf32>
    %180 = arith.index_cast %9 : i32 to index
    %c5_155 = arith.constant 5 : index
    %c10_156 = arith.constant 10 : index
    %c0_157 = arith.constant 0 : index
    %181 = vector.load %arg9[%180, %c5_155, %c10_156, %c0_157] : memref<2x14x32x128xbf16, #tpu.memory_space<vmem>>, vector<1x8x16x128xbf16>
    %182 = vector.shape_cast %181 : vector<1x8x16x128xbf16> to vector<8x16x128xbf16>
    %183 = vector.shape_cast %182 : vector<8x16x128xbf16> to vector<128x128xbf16>
    %c1_158 = arith.constant 1 : index
    %c8_159 = arith.constant 8 : index
    %c0_160 = arith.constant 0 : index
    %c0_161 = arith.constant 0 : index
    %184 = vector.load %arg4[%c1_158, %c8_159, %c0_160, %c0_161] : memref<3x9x128x128xbf16, #tpu.memory_space<vmem>>, vector<1x1x128x128xbf16>
    %185 = vector.shape_cast %184 : vector<1x1x128x128xbf16> to vector<128x128xbf16>
    %cst_162 = arith.constant dense<0.000000e+00> : vector<128x128xf32>
    %186 = tpu.matmul %183, %185, %cst_162 {dimension_numbers = #tpu.dot_dimension_numbers<[1], [0], [0], [1], [0, 0, 1, 1], [], []>} : vector<128x128xbf16>, vector<128x128xbf16>, vector<128x128xf32> -> vector<128x128xf32>
    %187 = arith.addf %179, %186 : vector<128x128xf32>
    %c2_163 = arith.constant 2 : index
    %c0_164 = arith.constant 0 : index
    %188 = vector.load %arg6[%c2_163, %c0_164] : memref<4x128xf32, #tpu.memory_space<vmem>>, vector<1x128xf32>
    %189 = vector.broadcast %188 : vector<1x128xf32> to vector<128x128xf32>
    %190 = arith.addf %187, %189 : vector<128x128xf32>
    %cst_165 = arith.constant 0.000000e+00 : f32
    %191 = vector.broadcast %cst_165 : f32 to vector<128x128xf32>
    %192 = arith.maximumf %190, %191 : vector<128x128xf32>
    %193 = arith.truncf %192 : vector<128x128xf32> to vector<128x128xbf16>
    %c256 = arith.constant 256 : index
    %c0_166 = arith.constant 0 : index
    %194 = vector.load %arg5[%c256, %c0_166] : memref<512x128xbf16, #tpu.memory_space<vmem>>, vector<128x128xbf16>
    %cst_167 = arith.constant dense<0.000000e+00> : vector<128x128xf32>
    %195 = tpu.matmul %193, %194, %cst_167 {dimension_numbers = #tpu.dot_dimension_numbers<[1], [0], [0], [1], [0, 0, 1, 1], [], []>} : vector<128x128xbf16>, vector<128x128xbf16>, vector<128x128xf32> -> vector<128x128xf32>
    %196 = arith.addf %116, %195 : vector<128x128xf32>
    %197 = arith.index_cast %9 : i32 to index
    %c0_168 = arith.constant 0 : index
    %c5_169 = arith.constant 5 : index
    %c0_170 = arith.constant 0 : index
    %198 = vector.load %arg9[%197, %c0_168, %c5_169, %c0_170] : memref<2x14x32x128xbf16, #tpu.memory_space<vmem>>, vector<1x8x16x128xbf16>
    %199 = vector.shape_cast %198 : vector<1x8x16x128xbf16> to vector<8x16x128xbf16>
    %200 = vector.shape_cast %199 : vector<8x16x128xbf16> to vector<128x128xbf16>
    %c2_171 = arith.constant 2 : index
    %c0_172 = arith.constant 0 : index
    %c0_173 = arith.constant 0 : index
    %c0_174 = arith.constant 0 : index
    %201 = vector.load %arg4[%c2_171, %c0_172, %c0_173, %c0_174] : memref<3x9x128x128xbf16, #tpu.memory_space<vmem>>, vector<1x1x128x128xbf16>
    %202 = vector.shape_cast %201 : vector<1x1x128x128xbf16> to vector<128x128xbf16>
    %cst_175 = arith.constant dense<0.000000e+00> : vector<128x128xf32>
    %203 = tpu.matmul %200, %202, %cst_175 {dimension_numbers = #tpu.dot_dimension_numbers<[1], [0], [0], [1], [0, 0, 1, 1], [], []>} : vector<128x128xbf16>, vector<128x128xbf16>, vector<128x128xf32> -> vector<128x128xf32>
    %204 = arith.index_cast %9 : i32 to index
    %c0_176 = arith.constant 0 : index
    %c8_177 = arith.constant 8 : index
    %c0_178 = arith.constant 0 : index
    %205 = vector.load %arg9[%204, %c0_176, %c8_177, %c0_178] : memref<2x14x32x128xbf16, #tpu.memory_space<vmem>>, vector<1x8x16x128xbf16>
    %206 = vector.shape_cast %205 : vector<1x8x16x128xbf16> to vector<8x16x128xbf16>
    %207 = vector.shape_cast %206 : vector<8x16x128xbf16> to vector<128x128xbf16>
    %c2_179 = arith.constant 2 : index
    %c1_180 = arith.constant 1 : index
    %c0_181 = arith.constant 0 : index
    %c0_182 = arith.constant 0 : index
    %208 = vector.load %arg4[%c2_179, %c1_180, %c0_181, %c0_182] : memref<3x9x128x128xbf16, #tpu.memory_space<vmem>>, vector<1x1x128x128xbf16>
    %209 = vector.shape_cast %208 : vector<1x1x128x128xbf16> to vector<128x128xbf16>
    %cst_183 = arith.constant dense<0.000000e+00> : vector<128x128xf32>
    %210 = tpu.matmul %207, %209, %cst_183 {dimension_numbers = #tpu.dot_dimension_numbers<[1], [0], [0], [1], [0, 0, 1, 1], [], []>} : vector<128x128xbf16>, vector<128x128xbf16>, vector<128x128xf32> -> vector<128x128xf32>
    %211 = arith.addf %203, %210 : vector<128x128xf32>
    %212 = arith.index_cast %9 : i32 to index
    %c0_184 = arith.constant 0 : index
    %c11 = arith.constant 11 : index
    %c0_185 = arith.constant 0 : index
    %213 = vector.load %arg9[%212, %c0_184, %c11, %c0_185] : memref<2x14x32x128xbf16, #tpu.memory_space<vmem>>, vector<1x8x16x128xbf16>
    %214 = vector.shape_cast %213 : vector<1x8x16x128xbf16> to vector<8x16x128xbf16>
    %215 = vector.shape_cast %214 : vector<8x16x128xbf16> to vector<128x128xbf16>
    %c2_186 = arith.constant 2 : index
    %c2_187 = arith.constant 2 : index
    %c0_188 = arith.constant 0 : index
    %c0_189 = arith.constant 0 : index
    %216 = vector.load %arg4[%c2_186, %c2_187, %c0_188, %c0_189] : memref<3x9x128x128xbf16, #tpu.memory_space<vmem>>, vector<1x1x128x128xbf16>
    %217 = vector.shape_cast %216 : vector<1x1x128x128xbf16> to vector<128x128xbf16>
    %cst_190 = arith.constant dense<0.000000e+00> : vector<128x128xf32>
    %218 = tpu.matmul %215, %217, %cst_190 {dimension_numbers = #tpu.dot_dimension_numbers<[1], [0], [0], [1], [0, 0, 1, 1], [], []>} : vector<128x128xbf16>, vector<128x128xbf16>, vector<128x128xf32> -> vector<128x128xf32>
    %219 = arith.addf %211, %218 : vector<128x128xf32>
    %220 = arith.index_cast %9 : i32 to index
    %c3_191 = arith.constant 3 : index
    %c5_192 = arith.constant 5 : index
    %c0_193 = arith.constant 0 : index
    %221 = vector.load %arg9[%220, %c3_191, %c5_192, %c0_193] : memref<2x14x32x128xbf16, #tpu.memory_space<vmem>>, vector<1x8x16x128xbf16>
    %222 = vector.shape_cast %221 : vector<1x8x16x128xbf16> to vector<8x16x128xbf16>
    %223 = vector.shape_cast %222 : vector<8x16x128xbf16> to vector<128x128xbf16>
    %c2_194 = arith.constant 2 : index
    %c3_195 = arith.constant 3 : index
    %c0_196 = arith.constant 0 : index
    %c0_197 = arith.constant 0 : index
    %224 = vector.load %arg4[%c2_194, %c3_195, %c0_196, %c0_197] : memref<3x9x128x128xbf16, #tpu.memory_space<vmem>>, vector<1x1x128x128xbf16>
    %225 = vector.shape_cast %224 : vector<1x1x128x128xbf16> to vector<128x128xbf16>
    %cst_198 = arith.constant dense<0.000000e+00> : vector<128x128xf32>
    %226 = tpu.matmul %223, %225, %cst_198 {dimension_numbers = #tpu.dot_dimension_numbers<[1], [0], [0], [1], [0, 0, 1, 1], [], []>} : vector<128x128xbf16>, vector<128x128xbf16>, vector<128x128xf32> -> vector<128x128xf32>
    %227 = arith.addf %219, %226 : vector<128x128xf32>
    %228 = arith.index_cast %9 : i32 to index
    %c3_199 = arith.constant 3 : index
    %c8_200 = arith.constant 8 : index
    %c0_201 = arith.constant 0 : index
    %229 = vector.load %arg9[%228, %c3_199, %c8_200, %c0_201] : memref<2x14x32x128xbf16, #tpu.memory_space<vmem>>, vector<1x8x16x128xbf16>
    %230 = vector.shape_cast %229 : vector<1x8x16x128xbf16> to vector<8x16x128xbf16>
    %231 = vector.shape_cast %230 : vector<8x16x128xbf16> to vector<128x128xbf16>
    %c2_202 = arith.constant 2 : index
    %c4_203 = arith.constant 4 : index
    %c0_204 = arith.constant 0 : index
    %c0_205 = arith.constant 0 : index
    %232 = vector.load %arg4[%c2_202, %c4_203, %c0_204, %c0_205] : memref<3x9x128x128xbf16, #tpu.memory_space<vmem>>, vector<1x1x128x128xbf16>
    %233 = vector.shape_cast %232 : vector<1x1x128x128xbf16> to vector<128x128xbf16>
    %cst_206 = arith.constant dense<0.000000e+00> : vector<128x128xf32>
    %234 = tpu.matmul %231, %233, %cst_206 {dimension_numbers = #tpu.dot_dimension_numbers<[1], [0], [0], [1], [0, 0, 1, 1], [], []>} : vector<128x128xbf16>, vector<128x128xbf16>, vector<128x128xf32> -> vector<128x128xf32>
    %235 = arith.addf %227, %234 : vector<128x128xf32>
    %236 = arith.index_cast %9 : i32 to index
    %c3_207 = arith.constant 3 : index
    %c11_208 = arith.constant 11 : index
    %c0_209 = arith.constant 0 : index
    %237 = vector.load %arg9[%236, %c3_207, %c11_208, %c0_209] : memref<2x14x32x128xbf16, #tpu.memory_space<vmem>>, vector<1x8x16x128xbf16>
    %238 = vector.shape_cast %237 : vector<1x8x16x128xbf16> to vector<8x16x128xbf16>
    %239 = vector.shape_cast %238 : vector<8x16x128xbf16> to vector<128x128xbf16>
    %c2_210 = arith.constant 2 : index
    %c5_211 = arith.constant 5 : index
    %c0_212 = arith.constant 0 : index
    %c0_213 = arith.constant 0 : index
    %240 = vector.load %arg4[%c2_210, %c5_211, %c0_212, %c0_213] : memref<3x9x128x128xbf16, #tpu.memory_space<vmem>>, vector<1x1x128x128xbf16>
    %241 = vector.shape_cast %240 : vector<1x1x128x128xbf16> to vector<128x128xbf16>
    %cst_214 = arith.constant dense<0.000000e+00> : vector<128x128xf32>
    %242 = tpu.matmul %239, %241, %cst_214 {dimension_numbers = #tpu.dot_dimension_numbers<[1], [0], [0], [1], [0, 0, 1, 1], [], []>} : vector<128x128xbf16>, vector<128x128xbf16>, vector<128x128xf32> -> vector<128x128xf32>
    %243 = arith.addf %235, %242 : vector<128x128xf32>
    %244 = arith.index_cast %9 : i32 to index
    %c6_215 = arith.constant 6 : index
    %c5_216 = arith.constant 5 : index
    %c0_217 = arith.constant 0 : index
    %245 = vector.load %arg9[%244, %c6_215, %c5_216, %c0_217] : memref<2x14x32x128xbf16, #tpu.memory_space<vmem>>, vector<1x8x16x128xbf16>
    %246 = vector.shape_cast %245 : vector<1x8x16x128xbf16> to vector<8x16x128xbf16>
    %247 = vector.shape_cast %246 : vector<8x16x128xbf16> to vector<128x128xbf16>
    %c2_218 = arith.constant 2 : index
    %c6_219 = arith.constant 6 : index
    %c0_220 = arith.constant 0 : index
    %c0_221 = arith.constant 0 : index
    %248 = vector.load %arg4[%c2_218, %c6_219, %c0_220, %c0_221] : memref<3x9x128x128xbf16, #tpu.memory_space<vmem>>, vector<1x1x128x128xbf16>
    %249 = vector.shape_cast %248 : vector<1x1x128x128xbf16> to vector<128x128xbf16>
    %cst_222 = arith.constant dense<0.000000e+00> : vector<128x128xf32>
    %250 = tpu.matmul %247, %249, %cst_222 {dimension_numbers = #tpu.dot_dimension_numbers<[1], [0], [0], [1], [0, 0, 1, 1], [], []>} : vector<128x128xbf16>, vector<128x128xbf16>, vector<128x128xf32> -> vector<128x128xf32>
    %251 = arith.addf %243, %250 : vector<128x128xf32>
    %252 = arith.index_cast %9 : i32 to index
    %c6_223 = arith.constant 6 : index
    %c8_224 = arith.constant 8 : index
    %c0_225 = arith.constant 0 : index
    %253 = vector.load %arg9[%252, %c6_223, %c8_224, %c0_225] : memref<2x14x32x128xbf16, #tpu.memory_space<vmem>>, vector<1x8x16x128xbf16>
    %254 = vector.shape_cast %253 : vector<1x8x16x128xbf16> to vector<8x16x128xbf16>
    %255 = vector.shape_cast %254 : vector<8x16x128xbf16> to vector<128x128xbf16>
    %c2_226 = arith.constant 2 : index
    %c7_227 = arith.constant 7 : index
    %c0_228 = arith.constant 0 : index
    %c0_229 = arith.constant 0 : index
    %256 = vector.load %arg4[%c2_226, %c7_227, %c0_228, %c0_229] : memref<3x9x128x128xbf16, #tpu.memory_space<vmem>>, vector<1x1x128x128xbf16>
    %257 = vector.shape_cast %256 : vector<1x1x128x128xbf16> to vector<128x128xbf16>
    %cst_230 = arith.constant dense<0.000000e+00> : vector<128x128xf32>
    %258 = tpu.matmul %255, %257, %cst_230 {dimension_numbers = #tpu.dot_dimension_numbers<[1], [0], [0], [1], [0, 0, 1, 1], [], []>} : vector<128x128xbf16>, vector<128x128xbf16>, vector<128x128xf32> -> vector<128x128xf32>
    %259 = arith.addf %251, %258 : vector<128x128xf32>
    %260 = arith.index_cast %9 : i32 to index
    %c6_231 = arith.constant 6 : index
    %c11_232 = arith.constant 11 : index
    %c0_233 = arith.constant 0 : index
    %261 = vector.load %arg9[%260, %c6_231, %c11_232, %c0_233] : memref<2x14x32x128xbf16, #tpu.memory_space<vmem>>, vector<1x8x16x128xbf16>
    %262 = vector.shape_cast %261 : vector<1x8x16x128xbf16> to vector<8x16x128xbf16>
    %263 = vector.shape_cast %262 : vector<8x16x128xbf16> to vector<128x128xbf16>
    %c2_234 = arith.constant 2 : index
    %c8_235 = arith.constant 8 : index
    %c0_236 = arith.constant 0 : index
    %c0_237 = arith.constant 0 : index
    %264 = vector.load %arg4[%c2_234, %c8_235, %c0_236, %c0_237] : memref<3x9x128x128xbf16, #tpu.memory_space<vmem>>, vector<1x1x128x128xbf16>
    %265 = vector.shape_cast %264 : vector<1x1x128x128xbf16> to vector<128x128xbf16>
    %cst_238 = arith.constant dense<0.000000e+00> : vector<128x128xf32>
    %266 = tpu.matmul %263, %265, %cst_238 {dimension_numbers = #tpu.dot_dimension_numbers<[1], [0], [0], [1], [0, 0, 1, 1], [], []>} : vector<128x128xbf16>, vector<128x128xbf16>, vector<128x128xf32> -> vector<128x128xf32>
    %267 = arith.addf %259, %266 : vector<128x128xf32>
    %c3_239 = arith.constant 3 : index
    %c0_240 = arith.constant 0 : index
    %268 = vector.load %arg6[%c3_239, %c0_240] : memref<4x128xf32, #tpu.memory_space<vmem>>, vector<1x128xf32>
    %269 = vector.broadcast %268 : vector<1x128xf32> to vector<128x128xf32>
    %270 = arith.addf %267, %269 : vector<128x128xf32>
    %cst_241 = arith.constant 0.000000e+00 : f32
    %271 = vector.broadcast %cst_241 : f32 to vector<128x128xf32>
    %272 = arith.maximumf %270, %271 : vector<128x128xf32>
    %273 = arith.truncf %272 : vector<128x128xf32> to vector<128x128xbf16>
    %c384 = arith.constant 384 : index
    %c0_242 = arith.constant 0 : index
    %274 = vector.load %arg5[%c384, %c0_242] : memref<512x128xbf16, #tpu.memory_space<vmem>>, vector<128x128xbf16>
    %cst_243 = arith.constant dense<0.000000e+00> : vector<128x128xf32>
    %275 = tpu.matmul %273, %274, %cst_243 {dimension_numbers = #tpu.dot_dimension_numbers<[1], [0], [0], [1], [0, 0, 1, 1], [], []>} : vector<128x128xbf16>, vector<128x128xbf16>, vector<128x128xf32> -> vector<128x128xf32>
    %276 = arith.addf %196, %275 : vector<128x128xf32>
    %c0_244 = arith.constant 0 : index
    %c0_245 = arith.constant 0 : index
    %c0_246 = arith.constant 0 : index
    %277 = vector.load %arg7[%c0_244, %c0_245, %c0_246] : memref<1x1x128xf32, #tpu.memory_space<vmem>>, vector<1x1x128xf32>
    %278 = vector.shape_cast %277 : vector<1x1x128xf32> to vector<1x128xf32>
    %279 = vector.broadcast %278 : vector<1x128xf32> to vector<128x128xf32>
    %280 = arith.addf %276, %279 : vector<128x128xf32>
    %cst_247 = arith.constant 0.000000e+00 : f32
    %281 = vector.broadcast %cst_247 : f32 to vector<128x128xf32>
    %282 = arith.maximumf %280, %281 : vector<128x128xf32>
    %283 = vector.shape_cast %282 : vector<128x128xf32> to vector<1x8x16x128xf32>
    %284 = arith.truncf %283 : vector<1x8x16x128xf32> to vector<1x8x16x128xbf16>
    %c0_248 = arith.constant 0 : index
    %c0_249 = arith.constant 0 : index
    %c0_250 = arith.constant 0 : index
    %c0_251 = arith.constant 0 : index
    %285 = vector.load %arg8[%c0_248, %c0_249, %c0_250, %c0_251] : memref<1x8x16x128xbf16, #tpu.memory_space<vmem>>, vector<1x8x16x128xbf16>
    tpu.vector_store %arg8[%c0_248, %c0_249, %c0_250, %c0_251], %284 {strides = array<i32>} : memref<1x8x16x128xbf16, #tpu.memory_space<vmem>>, vector<1x8x16x128xbf16>,
    return
  }
  func.func @transform_1(%arg0: i32, %arg1: i32) -> (i32, i32) {
    %c0_i32 = arith.constant 0 : i32
    %c0_i32_0 = arith.constant 0 : i32
    %c0_i32_1 = arith.constant 0 : i32
    return %c0_i32, %c0_i32_0 : i32, i32
  }
  func.func @transform_2(%arg0: i32, %arg1: i32) -> (i32, i32, i32, i32) {
    %c0_i32 = arith.constant 0 : i32
    %c0_i32_0 = arith.constant 0 : i32
    %c0_i32_1 = arith.constant 0 : i32
    %c0_i32_2 = arith.constant 0 : i32
    %c0_i32_3 = arith.constant 0 : i32
    return %c0_i32, %c0_i32_0, %c0_i32_1, %c0_i32_2 : i32, i32, i32, i32
  }
  func.func @transform_3(%arg0: i32, %arg1: i32) -> (i32, i32) {
    %c0_i32 = arith.constant 0 : i32
    %c0_i32_0 = arith.constant 0 : i32
    %c0_i32_1 = arith.constant 0 : i32
    return %c0_i32, %c0_i32_0 : i32, i32
  }
  func.func @transform_4(%arg0: i32, %arg1: i32) -> (i32, i32) {
    %c0_i32 = arith.constant 0 : i32
    %c0_i32_0 = arith.constant 0 : i32
    %c0_i32_1 = arith.constant 0 : i32
    return %c0_i32, %c0_i32_0 : i32, i32
  }
  func.func @transform_5(%arg0: i32, %arg1: i32) -> (i32, i32, i32) {
    %c0_i32 = arith.constant 0 : i32
    %c0_i32_0 = arith.constant 0 : i32
    %c0_i32_1 = arith.constant 0 : i32
    return %arg0, %c0_i32, %c0_i32_0 : i32, i32, i32
  }
  func.func @transform_6(%arg0: i32, %arg1: i32) -> (i32, i32, i32, i32) {
    %c0_i32 = arith.constant 0 : i32
    %c0_i32_0 = arith.constant 0 : i32
    %c0_i32_1 = arith.constant 0 : i32
    return %arg0, %arg1, %c0_i32, %c0_i32_0 : i32, i32, i32, i32
  }
}

</mosaic_0001>

<bundles_post_ra>
// kernel: _lambda_.1
= control target key start
LH: loop header
LB: loop body
LE: loop exit
PB: predicated region body
PF: predicated region fallthrough
CT: control target
= control target key end

     0   :  { %11 = vsyncpa [#allocation5], 0  ;;  %s12731_s21 = smov 0   ;;  %s12733_s22 = smov 0   ;;  %s15171_s0 = inlined_call_operand.vmem [shape: bf16[2,22,32,128], index: 0, kind: input, shape index: {}]   ;;  %s15172_s1 = inlined_call_operand.vmem [shape: bf16[128,128], index: 1, kind: input, shape index: {}]   ;;  %s15173_s2 = inlined_call_operand.vmem [shape: bf16[3,9,128,128], index: 2, kind: input, shape index: {}]   ;;  %s15174_s3 = inlined_call_operand.hbm [shape: bf16[512,128], index: 3, kind: input, shape index: {}]   ;;  %s15175_s4 = inlined_call_operand.vmem [shape: f32[4,128], index: 4, kind: input, shape index: {}]   ;;  %s15176_s5 = inlined_call_operand.vmem [shape: f32[2,1,128], index: 5, kind: input, shape index: {}]   ;;  %s15177_s6 = inlined_call_operand.vmem [shape: bf16[2,16,16,128], index: 6, kind: output, shape index: {}]  }
   0x1   :  { %s12735_s23 = smov 0   ;;  %s12737_s24 = smov 0  }
   0x2   :  { %s12739_s25 = smov 0  }
   0x3 LB: > { %s9206_s26 = sadd.s32 4294967295, %s12691_s25   ;;  %s26_s27 = sadd.s32 1, %s12683_s23  ;;  %s12691_s25 = sphi %s12739_s25, %s17_s25   ;;  %s12687_s24 = sphi %s12737_s24, %s15216_s24   ;;  %s12683_s23 = sphi %s12735_s23, %s15215_s23   ;;  %s12679_s22 = sphi %s12733_s22, %s15214_s22   ;;  %s12675_s21 = sphi %s12731_s21, %s15213_s21  }
   0x4   : > { %p27_p0 = scmp.ge.s32.totalorder %s26_s27, 2  ;;  %s29_s28 = sadd.s32 1, %s12687_s24 }
   0x5   : > { %p9208_p1 = scmp.ge.s32.totalorder %s12691_s25, 1  ;;  %p172_p2 = scmp.lt.s32.totalorder %s12691_s25, 5 }
   0x6   : > { %s15218_s27 = smov (%p27_p0, %s26_s27), 0  ;;  %s15220_s28 = smov (!%p27_p0, %s29_s28), %s12687_s24 }
   0x7   : > { %p12764_p3 = pnand %p9208_p1, %p172_p2  ;;  %p31_p4 = scmp.ge.s32.totalorder %s15220_s28, 2 }
   0x8   : > { %p12768_p5 = scmp.eq.s32.totalorder %s9206_s26, 0  ;;  %s12693_s7 = smov [#allocation4]  }
   0x9   : > { %s15189_s29 = scalar_select %p12764_p3, 1, 0 }
   0xa   : > { %s15190_s30 = scalar_select %p12768_p5, 1, 0 }
   0xb   : > { %p12274_p6 = pneg %p12764_p3  ;;  %s15222_s28 = smov (%p31_p4, %s15220_s28), 0 }
   0xc   : > { %s190_s8 = sshll.u32 %s12693_s7, 4  ;;  %s12619_s12 = scalar_lea.hbm %s15174_s3, 4096  ;;  %s191_s8 = int_to_ptr.vmem [resolvable:$true] %s190_s8 }
   0xd   : > { %p12778_p7 = pnand %p12768_p5, %p12274_p6  ;;  %p12620_p8 = scmp.ne.s32.totalorder %s15174_s3, %s12619_s12 }
   0xe   : > { %p12626_p12 = scmp.lt.u32.totalorder %s12619_s12, %s15174_s3 }
   0xf   : > { %p12621_p9 = pneg %p12778_p7 }
  0x11   : > { %p12622_p10 = pnand %p12621_p9, %p12620_p8 }
  0x13   : > { %p12623_p11 = pneg %p12622_p10 }
  0x15   : > { %p12628_p13 = pnand %p12626_p12, %p12623_p11 }
  0x17   : > { %12631 = shalt.err (!%p12628_p13)
}
  0x18   : > { %s12632_s17 = scalar_lea.vmem %s191_s8, 4096  ;;  %p12640_p4 = scmp.lt.s32.totalorder %s191_s8, %s191_s8 }
  0x19   : > { %p12633_p0 = scmp.ne.s32.totalorder %s191_s8, %s12632_s17  ;;  %p12641_p6 = scmp.lt.s32.totalorder %s12632_s17, %s12632_s17 }
  0x1b   : > { %p12635_p1 = pnand %p12633_p0, %p12621_p9  ;;  %p12642_p5 = por %p12641_p6, %p12640_p4 }
  0x1d   : > { %p12636_p2 = pneg %p12635_p1 }
  0x1f   : > { %p12643_p3 = pnand %p12642_p5, %p12636_p2 }
  0x21   : > { %12646 = shalt.err (!%p12643_p3)
}
  0x22   : > { %s12694_s18 = smov 64   ;;  %s12695_s19 = smov 4  }
  0x23   : > { %12277 = dma.hbm_to_vmem [thread:$0]  (!%p12778_p7), %s15174_s3, 4096, %s191_s8, [#allocation5], %s12694_s18, %s12694_s18, %s12695_s19  }
  0x24   : > { %p15192_p8 = scmp.ne.s32.totalorder %s15189_s29, 0 }
  0x26   : > { %215 = sbr.rel (%p15192_p8) target bundleno = 1385 (0x569), region = 40 }
  0x2d   : > { %p15193_p10 = scmp.ne.s32.totalorder %s15190_s30, 0 }
  0x2f   : > { %12668 = dma.done.wait (%p15193_p10), [#allocation5], 4096  }
  0x30   : > { %12670 = vsyncadd (%p15193_p10), [#allocation5], 4294963200  ;;  %p246_p3 = scmp.lt.s32.totalorder %s12679_s22, 1  ;;  %s9213_s7 = sshll.u32 %s12675_s21, 3 }
  0x31   : > { %p252_p5 = scmp.lt.s32.totalorder %s9213_s7, 15  ;;  %p261_p9 = scmp.lt.s32.totalorder %s12675_s21, 0 }
  0x32   : > { %s12808_s8 = scalar_select %p246_p3, %s12679_s22, 1 }
  0x33   : > { %s15224_s7 = smov (!%p252_p5, %s9213_s7), 15  ;;  %s262_s12 = ssub.s32 0, %s12675_s21 }
  0x34   : > { %s248_s30 = scalar_lea.vmem %s15176_s5, %s12808_s8  ;;  %s9215_s10 = sshll.u32 %s12808_s8, 5 }
  0x35   : > { %s9214_s11 = sshll.u32 %s15224_s7, 1  ;;  %s9217_s14 = smin.u32 %s12675_s21, %s262_s12 }
  0x36   : > { %s256_s13 = sadd.s32 %s9215_s10, %s9214_s11  ;;  %s264_s16 = sand.u32 1, %s9217_s14  }
  0x37   : > { %s9216_s15 = sshll.u32 %s256_s13, 2  ;;  %s265_s20 = ssub.s32 0, %s264_s16 }
  0x38   : > { %s12820_s19 = scalar_lea.vmem %s15177_s6, %s9216_s15  ;;  %s15226_s20 = smov (!%p261_p9, %s265_s20), %s264_s16 }
  0x39   : > { %p9219_p7 = scmp.lt.s32.totalorder %s15226_s20, 0  ;;  %s271_s26 = sadd.s32 2, %s15226_s20 }
  0x3a   : > { %p9220_p11 = scmp.ne.s32.totalorder %s12675_s21, 0 }
  0x3b   : > { %s15228_s26 = smov (!%p9219_p7, %s271_s26), %s15226_s20  ;;  %s10236_s7 = sshll.u32 (!%p9220_p11), %s12675_s21, 5 }
  0x3c   : > { %276 = sbr.rel (%p9220_p11) target bundleno = 82 (0x52), region = 48 }
  0x3d   : > { %s279_s29 = smul.u32 (!%p9220_p11), 88, %s12679_s22 }
  0x3f   : > { %s280_s9 = sadd.s32 (!%p9220_p11), %s10236_s7, %s279_s29 }
  0x40   : > { %s9223_s10 = sshll.u32 (!%p9220_p11), %s280_s9, 2 }
  0x41   : > { %s12830_s13 = scalar_lea.vmem (!%p9220_p11), %s15171_s0, %s9223_s10 }
  0x42   : > { %v315_v0 = vld [vmem:[%s12830_s13] sm:$0xff] (!%p9220_p11)  ;;  %v317_v1 = vld [vmem:[%s12830_s13 + $0x8] sm:$0xff] (!%p9220_p11)  ;;  %v319_v2 = vld [vmem:[%s12830_s13 + $0x10] sm:$0xff] (!%p9220_p11) }
  0x43   : > { %316 = vst [vmem:[#allocation2] sm:$0xff] %v315_v0  ;;  %318 = vst [vmem:[#allocation2 + $0x8] sm:$0xff] %v317_v1  ;;  %v321_v3 = vld [vmem:[%s12830_s13 + $0x18] sm:$0xff]  ;;  %v323_v4 = vld [vmem:[%s12830_s13 + $0x20] sm:$0xff] }
  0x44   : > { %320 = vst [vmem:[#allocation2 + $0x10] sm:$0xff] %v319_v2  ;;  %v325_v5 = vld [vmem:[%s12830_s13 + $0x28] sm:$0xff]  ;;  %322 = vst [vmem:[#allocation2 + $0x18] sm:$0xff] %v321_v3  ;;  %v327_v6 = vld [vmem:[%s12830_s13 + $0x30] sm:$0xff] }
  0x45   : > { %324 = vst [vmem:[#allocation2 + $0x20] sm:$0xff] %v323_v4  ;;  %326 = vst [vmem:[#allocation2 + $0x28] sm:$0xff] %v325_v5  ;;  %v329_v7 = vld [vmem:[%s12830_s13 + $0x38] sm:$0xff]  ;;  %v331_v8 = vld [vmem:[%s12830_s13 + $0x40] sm:$0xff] }
  0x46   : > { %328 = vst [vmem:[#allocation2 + $0x30] sm:$0xff] %v327_v6  ;;  %330 = vst [vmem:[#allocation2 + $0x38] sm:$0xff] %v329_v7  ;;  %v333_v9 = vld [vmem:[%s12830_s13 + $0x48] sm:$0xff]  ;;  %v335_v10 = vld [vmem:[%s12830_s13 + $0x50] sm:$0xff] }
  0x47   : > { %332 = vst [vmem:[#allocation2 + $0x40] sm:$0xff] %v331_v8  ;;  %v337_v11 = vld [vmem:[%s12830_s13 + $0x58] sm:$0xff]  ;;  %334 = vst [vmem:[#allocation2 + $0x48] sm:$0xff] %v333_v9  ;;  %v339_v12 = vld [vmem:[%s12830_s13 + $0x60] sm:$0xff] }
  0x48   : > { %336 = vst [vmem:[#allocation2 + $0x50] sm:$0xff] %v335_v10  ;;  %338 = vst [vmem:[#allocation2 + $0x58] sm:$0xff] %v337_v11  ;;  %v341_v13 = vld [vmem:[%s12830_s13 + $0x68] sm:$0xff]  ;;  %v343_v14 = vld [vmem:[%s12830_s13 + $0x70] sm:$0xff] }
  0x49   : > { %340 = vst [vmem:[#allocation2 + $0x60] sm:$0xff] %v339_v12  ;;  %342 = vst [vmem:[#allocation2 + $0x68] sm:$0xff] %v341_v13  ;;  %v345_v15 = vld [vmem:[%s12830_s13 + $0x78] sm:$0xff]  ;;  %v347_v16 = vld [vmem:[%s12830_s13 + $0x80] sm:$0xff] }
  0x4a   : > { %344 = vst [vmem:[#allocation2 + $0x70] sm:$0xff] %v343_v14  ;;  %v349_v17 = vld [vmem:[%s12830_s13 + $0x88] sm:$0xff]  ;;  %346 = vst [vmem:[#allocation2 + $0x78] sm:$0xff] %v345_v15  ;;  %v351_v18 = vld [vmem:[%s12830_s13 + $0x90] sm:$0xff] }
  0x4b   : > { %348 = vst [vmem:[#allocation2 + $0x80] sm:$0xff] %v347_v16  ;;  %350 = vst [vmem:[#allocation2 + $0x88] sm:$0xff] %v349_v17  ;;  %v353_v19 = vld [vmem:[%s12830_s13 + $0x98] sm:$0xff]  ;;  %v355_v20 = vld [vmem:[%s12830_s13 + $0xa0] sm:$0xff] }
  0x4c   : > { %352 = vst [vmem:[#allocation2 + $0x90] sm:$0xff] %v351_v18  ;;  %354 = vst [vmem:[#allocation2 + $0x98] sm:$0xff] %v353_v19  ;;  %v357_v21 = vld [vmem:[%s12830_s13 + $0xa8] sm:$0xff]  ;;  %v359_v22 = vld [vmem:[%s12830_s13 + $0xb0] sm:$0xff] }
  0x4d   : > { %356 = vst [vmem:[#allocation2 + $0xa0] sm:$0xff] %v355_v20  ;;  %v361_v23 = vld [vmem:[%s12830_s13 + $0xb8] sm:$0xff]  ;;  %358 = vst [vmem:[#allocation2 + $0xa8] sm:$0xff] %v357_v21  ;;  %v363_v24 = vld [vmem:[%s12830_s13 + $0xc0] sm:$0xff] }
  0x4e   : > { %360 = vst [vmem:[#allocation2 + $0xb0] sm:$0xff] %v359_v22  ;;  %362 = vst [vmem:[#allocation2 + $0xb8] sm:$0xff] %v361_v23  ;;  %v365_v25 = vld [vmem:[%s12830_s13 + $0xc8] sm:$0xff]  ;;  %v367_v26 = vld [vmem:[%s12830_s13 + $0xd0] sm:$0xff] }
  0x4f   : > { %364 = vst [vmem:[#allocation2 + $0xc0] sm:$0xff] %v363_v24  ;;  %366 = vst [vmem:[#allocation2 + $0xc8] sm:$0xff] %v365_v25  ;;  %v369_v27 = vld [vmem:[%s12830_s13 + $0xd8] sm:$0xff] }
  0x50   : > { %368 = vst [vmem:[#allocation2 + $0xd0] sm:$0xff] %v367_v26  ;;  %370 = vst [vmem:[#allocation2 + $0xd8] sm:$0xff] %v369_v27 }
  0x51   : > { %378 = vsyncadd [#allocation3], 3584 }
  0x52 PF: > { %s379_s14 = sadd.s32 1, %s12675_s21 }
  0x53   : > { %p9224_p12 = scmp.ge.s32.totalorder %s379_s14, 2 }
  0x54   : > { %p384_p13 = scmp.lt.s32.totalorder (!%p9224_p12), %s379_s14, 0  ;;  %s385_s15 = ssub.s32 (!%p9224_p12), 0, %s379_s14 }
  0x55   : > { %383 = sbr.rel (%p9224_p12) target bundleno = 114 (0x72), region = 86  ;;  %s9225_s16 = smin.u32 (!%p9224_p12), %s385_s15, %s379_s14 }
  0x56   : > { %s9228_s17 = sshll.u32 (!%p9224_p12), %s12675_s21, 5  ;;  %s387_s18 = sand.u32 (!%p9224_p12), 1, %s9225_s16  }
  0x57   : > { %s9104_s20 = smul.u32 (!%p9224_p12), 88, %s12679_s22  ;;  %s388_s7 = ssub.s32 (!%p9224_p12), 0, %s387_s18 }
  0x59   : > { %s9105_s29 = sadd.s32 (!%p9224_p12), %s9228_s17, %s9104_s20 }
  0x5a   : > { %s9229_s10 = sshll.u32 (!%p9224_p12), %s9105_s29, 2 }
  0x5b   : > { %s12868_s13 = scalar_lea.vmem (!%p9224_p12), %s15171_s0, %s9229_s10 }
  0x5c   : > { %s15230_s7 = smov (!%p384_p13, %s388_s7), %s387_s18  ;;  %v9231_v28 = vld [vmem:[%s12868_s13 + $0x80] sm:$0xff]  ;;  %v9232_v29 = vld [vmem:[%s12868_s13 + $0x88] sm:$0xff]  ;;  %v9233_v30 = vld [vmem:[%s12868_s13 + $0x90] sm:$0xff] }
  0x5d   : > { %p9227_p0 = scmp.lt.s32.totalorder %s15230_s7, 0  ;;  %s394_s9 = sadd.s32 2, %s15230_s7  ;;  %v9234_v31 = vld [vmem:[%s12868_s13 + $0x98] sm:$0xff]  ;;  %v9235_v32 = vld [vmem:[%s12868_s13 + $0xa0] sm:$0xff]  ;;  %v9236_v33 = vld [vmem:[%s12868_s13 + $0xa8] sm:$0xff] }
  0x5e   : > { %v9237_v34 = vld [vmem:[%s12868_s13 + $0xb0] sm:$0xff]  ;;  %v9238_v35 = vld [vmem:[%s12868_s13 + $0xb8] sm:$0xff]  ;;  %v9239_v36 = vld [vmem:[%s12868_s13 + $0xc0] sm:$0xff] }
  0x5f   : > { %s15232_s9 = smov (!%p9227_p0, %s394_s9), %s15230_s7  ;;  %v9240_v37 = vld [vmem:[%s12868_s13 + $0xc8] sm:$0xff]  ;;  %v9241_v38 = vld [vmem:[%s12868_s13 + $0xd0] sm:$0xff]  ;;  %v9242_v39 = vld [vmem:[%s12868_s13 + $0xd8] sm:$0xff] }
  0x60   : > { %s10237_s21 = smul.u32 224, %s15232_s9  ;;  %v9243_v40 = vld [vmem:[%s12868_s13 + $0xe0] sm:$0xff]  ;;  %v9244_v41 = vld [vmem:[%s12868_s13 + $0xe8] sm:$0xff]  ;;  %v9245_v42 = vld [vmem:[%s12868_s13 + $0xf0] sm:$0xff]  ;;  %s405_s14 = scalar_lea.sflag [#allocation3], %s15232_s9 }
  0x61   : > { %v9246_v43 = vld [vmem:[%s12868_s13 + $0xf8] sm:$0xff]  ;;  %v9247_v44 = vld [vmem:[%s12868_s13 + $0x100] sm:$0xff]  ;;  %v9248_v45 = vld [vmem:[%s12868_s13 + $0x108] sm:$0xff] }
  0x62   : > { %s12880_s22 = scalar_lea.vmem [#allocation2], %s10237_s21  ;;  %v9249_v46 = vld [vmem:[%s12868_s13 + $0x110] sm:$0xff]  ;;  %v9250_v47 = vld [vmem:[%s12868_s13 + $0x118] sm:$0xff]  ;;  %v9251_v48 = vld [vmem:[%s12868_s13 + $0x120] sm:$0xff] }
  0x63   : > { %439 = vst [vmem:[%s12880_s22] sm:$0xff] %v9231_v28  ;;  %441 = vst [vmem:[%s12880_s22 + $0x8] sm:$0xff] %v9232_v29  ;;  %v9252_v49 = vld [vmem:[%s12868_s13 + $0x128] sm:$0xff]  ;;  %v9253_v50 = vld [vmem:[%s12868_s13 + $0x130] sm:$0xff] }
  0x64   : > { %443 = vst [vmem:[%s12880_s22 + $0x10] sm:$0xff] %v9233_v30  ;;  %445 = vst [vmem:[%s12880_s22 + $0x18] sm:$0xff] %v9234_v31  ;;  %v9254_v51 = vld [vmem:[%s12868_s13 + $0x138] sm:$0xff]  ;;  %v9255_v52 = vld [vmem:[%s12868_s13 + $0x140] sm:$0xff] }
  0x65   : > { %447 = vst [vmem:[%s12880_s22 + $0x20] sm:$0xff] %v9235_v32  ;;  %449 = vst [vmem:[%s12880_s22 + $0x28] sm:$0xff] %v9236_v33  ;;  %v9256_v53 = vld [vmem:[%s12868_s13 + $0x148] sm:$0xff]  ;;  %v9257_v54 = vld [vmem:[%s12868_s13 + $0x150] sm:$0xff] }
  0x66   : > { %451 = vst [vmem:[%s12880_s22 + $0x30] sm:$0xff] %v9237_v34  ;;  %453 = vst [vmem:[%s12880_s22 + $0x38] sm:$0xff] %v9238_v35  ;;  %v9258_v55 = vld [vmem:[%s12868_s13 + $0x158] sm:$0xff] }
  0x67   : > { %455 = vst [vmem:[%s12880_s22 + $0x40] sm:$0xff] %v9239_v36  ;;  %457 = vst [vmem:[%s12880_s22 + $0x48] sm:$0xff] %v9240_v37 }
  0x68   : > { %459 = vst [vmem:[%s12880_s22 + $0x50] sm:$0xff] %v9241_v38  ;;  %461 = vst [vmem:[%s12880_s22 + $0x58] sm:$0xff] %v9242_v39 }
  0x69   : > { %463 = vst [vmem:[%s12880_s22 + $0x60] sm:$0xff] %v9243_v40  ;;  %465 = vst [vmem:[%s12880_s22 + $0x68] sm:$0xff] %v9244_v41 }
  0x6a   : > { %467 = vst [vmem:[%s12880_s22 + $0x70] sm:$0xff] %v9245_v42  ;;  %469 = vst [vmem:[%s12880_s22 + $0x78] sm:$0xff] %v9246_v43 }
  0x6b   : > { %471 = vst [vmem:[%s12880_s22 + $0x80] sm:$0xff] %v9247_v44  ;;  %473 = vst [vmem:[%s12880_s22 + $0x88] sm:$0xff] %v9248_v45 }
  0x6c   : > { %475 = vst [vmem:[%s12880_s22 + $0x90] sm:$0xff] %v9249_v46  ;;  %477 = vst [vmem:[%s12880_s22 + $0x98] sm:$0xff] %v9250_v47 }
  0x6d   : > { %479 = vst [vmem:[%s12880_s22 + $0xa0] sm:$0xff] %v9251_v48  ;;  %481 = vst [vmem:[%s12880_s22 + $0xa8] sm:$0xff] %v9252_v49 }
  0x6e   : > { %483 = vst [vmem:[%s12880_s22 + $0xb0] sm:$0xff] %v9253_v50  ;;  %485 = vst [vmem:[%s12880_s22 + $0xb8] sm:$0xff] %v9254_v51 }
  0x6f   : > { %487 = vst [vmem:[%s12880_s22 + $0xc0] sm:$0xff] %v9255_v52  ;;  %489 = vst [vmem:[%s12880_s22 + $0xc8] sm:$0xff] %v9256_v53 }
  0x70   : > { %491 = vst [vmem:[%s12880_s22 + $0xd0] sm:$0xff] %v9257_v54  ;;  %493 = vst [vmem:[%s12880_s22 + $0xd8] sm:$0xff] %v9258_v55 }
  0x71   : > { %501 = vsyncadd %s405_s14, 3584 }
  0x72 PF: > { %s502_s15 = scalar_lea.sflag [#allocation3], %s15228_s26 }
  0x73   : > { %12671 = dma.done.wait %s502_s15, 3584 }
  0x74   : > { %12672 = vsyncadd %s502_s15, 4294963712  ;;  %v12323_v56 = vld [vmem:[%s15173_s2 + $0x80] sm:$0xff]   ;;  %v12324_v57 = vld [vmem:[%s15173_s2 + $0x88] sm:$0xff]   ;;  %s9260_s7 = smul.u32 224, %s15228_s26  ;;  %vm1334_vm0 = vsmask.f32 3328 }
  0x75   : > { %10910 = vmatprep.subr.bf16.mxu1 %v12323_v56  ;;  %v12325_v58 = vld [vmem:[%s15173_s2 + $0x90] sm:$0xff]   ;;  %v12326_v59 = vld [vmem:[%s15173_s2 + $0x98] sm:$0xff]   ;;  %v12327_v6 = vld [vmem:[%s15173_s2 + $0xa0] sm:$0xff]   ;;  %vm802_vm1 = vsmask.f32 4352  ;;  %vm544_vm2 = vcmask 1043456  }
  0x76   : > { %10911 = vmatpush3.bf16.msra.mxu1 %v12323_v56  ;;  %s12944_s12 = scalar_lea.vmem [#allocation2], %s9260_s7  ;;  %v12328_v13 = vld [vmem:[%s15173_s2 + $0xa8] sm:$0xff]   ;;  %v12329_v24 = vld [vmem:[%s15173_s2 + $0xb0] sm:$0xff]   ;;  %v12330_v33 = vld [vmem:[%s15173_s2 + $0xb8] sm:$0xff]   ;;  %vm6065_vm3 = vsmask.f32 5376 }
  0x77   : > { %10912 = vmatprep.subr.bf16.mxu1 %v12324_v57  ;;  %v12947_v60 = vld [vmem:[%s12944_s12 + $0x20] sm:$0xf0]  ;;  %v9343_v61 = vld [vmem:[%s12944_s12 + $0x28] sm:$0x1f]  ;;  %v9304_v9 = vld [vmem:[%s12944_s12 + $0x30] sm:$0xf0] }
  0x78   : > { %v1336_v62 = vshrl.u32 %v12947_v60, 16  ;;  %v1339_v63 = vshll.u32 %v12947_v60, 16  ;;  %v1344_v0 = vshrl.u32 %v9343_v61, 16  ;;  %v1347_v1 = vshll.u32 %v9343_v61, 16  ;;  %v9344_v10 = vld [vmem:[%s12944_s12 + $0x38] sm:$0x1f] }
  0x79   : > { %v9305_v12 = vld [vmem:[%s12944_s12 + $0x40] sm:$0xf0]  ;;  %v9345_v14 = vld [vmem:[%s12944_s12 + $0x48] sm:$0x1f]  ;;  %v1353_v15 = vshrl.u32 %v9304_v9, 16  ;;  %v1356_v16 = vshll.u32 %v9304_v9, 16 }
  0x7a   : > { %10913 = vmatpush3.bf16.msra.mxu1 %v12324_v57  ;;  %v1338_v2 = vrot.slane %v1336_v62, 4  ;;  %v1341_v3 = vrot.slane %v1339_v63, 5  ;;  %v1346_v4 = vrot.slane %v1344_v0, 4  ;;  %v1349_v5 = vrot.slane %v1347_v1, 5  ;;  %v9306_v23 = vld [vmem:[%s12944_s12 + $0x50] sm:$0xf0] }
  0x7b   : > { %10914 = vmatprep.subr.bf16.mxu1 %v12325_v58  ;;  %v1361_v17 = vshrl.u32 %v9344_v10, 16  ;;  %v1364_v18 = vshll.u32 %v9344_v10, 16  ;;  %v1370_v19 = vshrl.u32 %v9305_v12, 16  ;;  %v1373_v20 = vshll.u32 %v9305_v12, 16  ;;  %v9346_v28 = vld [vmem:[%s12944_s12 + $0x58] sm:$0x1f] }
  0x7c   : > { %v1342_v7 = vor.u32 %v1341_v3, %v1338_v2  ;;  %v1350_v8 = vor.u32 %v1349_v5, %v1346_v4  ;;  %v1378_v21 = vshrl.u32 %v9345_v14, 16  ;;  %v1381_v22 = vshll.u32 %v9345_v14, 16  ;;  %v9307_v36 = vld [vmem:[%s12944_s12 + $0x60] sm:$0xf0]  ;;  %v9347_v39 = vld [vmem:[%s12944_s12 + $0x68] sm:$0x1f] }
  0x7d   : > { %v1355_v25 = vrot.slane %v1353_v15, 4  ;;  %v1358_v26 = vrot.slane %v1356_v16, 5  ;;  %v1363_v27 = vrot.slane %v1361_v17, 4  ;;  %v1366_v29 = vrot.slane %v1364_v18, 5  ;;  %v12331_v44 = vld [vmem:[%s15173_s2 + $0xc0] sm:$0xff]   ;;  %v12332_v57 = vld [vmem:[%s15173_s2 + $0xc8] sm:$0xff]  }
  0x7e   : > { %10915 = vmatpush3.bf16.msra.mxu1 %v12325_v58  ;;  %v1351_v11 = vsel %vm1334_vm0, %v1342_v7, %v1350_v8  ;;  %v1372_v30 = vrot.slane %v1370_v19, 4  ;;  %v1375_v31 = vrot.slane %v1373_v20, 5  ;;  %v1387_v32 = vshrl.u32 %v9306_v23, 16  ;;  %v9308_v51 = vld [vmem:[%s12944_s12 + $0x70] sm:$0xf0] }
  0x7f   : > { %10916 = vmatprep.subr.bf16.mxu1 %v12326_v59  ;;  %10926 = vmatprep.mubr.bf16.mxu1 %v1351_v11  ;;  %v1380_v34 = vrot.slane %v1378_v21, 4  ;;  %v1383_v35 = vrot.slane %v1381_v22, 5  ;;  %v1390_v37 = vshll.u32 %v9306_v23, 16  ;;  %v1395_v38 = vshrl.u32 %v9346_v28, 16  ;;  %v9348_v54 = vld [vmem:[%s12944_s12 + $0x78] sm:$0x1f] }
  0x80   : > { %v1359_v40 = vor.u32 %v1358_v26, %v1355_v25  ;;  %v1367_v41 = vor.u32 %v1366_v29, %v1363_v27  ;;  %v1376_v42 = vor.u32 %v1375_v31, %v1372_v30  ;;  %v1389_v43 = vrot.slane %v1387_v32, 4  ;;  %v9309_v56 = vld [vmem:[%s12944_s12 + $0x80] sm:$0xf0]  ;;  %v9349_v63 = vld [vmem:[%s12944_s12 + $0x88] sm:$0x1f]  ;;  %v12333_v9 = vld [vmem:[%s15173_s2 + $0xd0] sm:$0xff]  }
  0x81   : > { %v1384_v45 = vor.u32 %v1383_v35, %v1380_v34  ;;  %v1398_v46 = vshll.u32 %v9346_v28, 16  ;;  %v1404_v47 = vshrl.u32 %v9307_v36, 16  ;;  %v1407_v48 = vshll.u32 %v9307_v36, 16  ;;  %v9310_v4 = vld [vmem:[%s12944_s12 + $0x90] sm:$0xf0]  ;;  %v12347_v25 = vld [vmem:[%s15172_s1] sm:$0xff]  }
  0x82   : > { %10917 = vmatpush3.bf16.msra.mxu1 %v12326_v59  ;;  %v1412_v49 = vshrl.u32 %v9347_v39, 16  ;;  %v1415_v50 = vshll.u32 %v9347_v39, 16  ;;  %v1392_v52 = vrot.slane %v1390_v37, 5  ;;  %v1397_v53 = vrot.slane %v1395_v38, 4  ;;  %v9350_v14 = vld [vmem:[%s12944_s12 + $0x98] sm:$0x1f]  ;;  %10814 = vmatprep.subr.bf16.mxu0 %v12347_v25 }
  0x83   : > { %10918 = vmatprep.subr.bf16.mxu1 %v12327_v6  ;;  %v1368_v55 = vsel %vm1334_vm0, %v1359_v40, %v1367_v41  ;;  %v1385_v58 = vsel %vm1334_vm0, %v1376_v42, %v1384_v45  ;;  %v1400_v59 = vrot.slane %v1398_v46, 5  ;;  %v1406_v61 = vrot.slane %v1404_v47, 4  ;;  %v12334_v31 = vld [vmem:[%s15173_s2 + $0xd8] sm:$0xff]   ;;  %v9375_v36 = vld [vmem:[%s12944_s12 + $0x30] sm:$0xf8]  ;;  %10815 = vmatpush3.bf16.msra.mxu0 %v12347_v25 }
  0x84   : > { %v1421_v62 = vshrl.u32 %v9308_v51, 16  ;;  %v1409_v0 = vrot.slane %v1407_v48, 5  ;;  %v1414_v1 = vrot.slane %v1412_v49, 4  ;;  %v1417_v2 = vrot.slane %v1415_v50, 5  ;;  %v13003_v35 = vld [vmem:[%s12944_s12 + $0x38] sm:$0xf] }
  0x85   : > { %v1424_v3 = vshll.u32 %v9308_v51, 16  ;;  %v1429_v5 = vshrl.u32 %v9348_v54, 16  ;;  %v1438_v7 = vshrl.u32 %v9309_v56, 16  ;;  %v1441_v8 = vshll.u32 %v9309_v56, 16  ;;  %v13007_v39 = vld [vmem:[%s12944_s12 + $0x48] sm:$0xf] }
  0x86   : > { %10919 = vmatpush3.bf16.msra.mxu1 %v12327_v6  ;;  %v1432_v6 = vshll.u32 %v9348_v54, 16  ;;  %v1446_v10 = vshrl.u32 %v9349_v63, 16  ;;  %v1449_v11 = vshll.u32 %v9349_v63, 16  ;;  %v1393_v12 = vor.u32 %v1392_v52, %v1389_v43  ;;  %v9376_v40 = vld [vmem:[%s12944_s12 + $0x40] sm:$0xf8]  ;;  %v12349_v50 = vld [vmem:[%s15172_s1 + $0x8] sm:$0xff]  }
  0x87   : > { %10920 = vmatprep.subr.bf16.mxu1 %v12328_v13  ;;  %v1455_v15 = vshrl.u32 %v9310_v4, 16  ;;  %v1458_v16 = vshll.u32 %v9310_v4, 16  ;;  %v1410_v17 = vor.u32 %v1409_v0, %v1406_v61  ;;  %v1418_v18 = vor.u32 %v1417_v2, %v1414_v1  ;;  %v9377_v45 = vld [vmem:[%s12944_s12 + $0x50] sm:$0xf8]  ;;  %v12335_v51 = vld [vmem:[%s15173_s2 + $0xe0] sm:$0xff]   ;;  %10816 = vmatprep.subr.bf16.mxu0 %v12349_v50  ;;  %v12336_v63 = vld [vmem:[%s15173_s2 + $0xe8] sm:$0xff]  }
  0x88   : > { %v1423_v19 = vrot.slane %v1421_v62, 4  ;;  %v1426_v20 = vrot.slane %v1424_v3, 5  ;;  %v1431_v21 = vrot.slane %v1429_v5, 4  ;;  %v1434_v22 = vrot.slane %v1432_v6, 5  ;;  %v13026_v56 = vld [vmem:[%s12944_s12 + $0x58] sm:$0xf]  ;;  %10817 = vmatpush3.bf16.msra.mxu0 %v12349_v50 }
  0x89   : > { %v1440_v23 = vrot.slane %v1438_v7, 4  ;;  %v1448_v26 = vrot.slane %v1446_v10, 4  ;;  %v1451_v27 = vrot.slane %v1449_v11, 5  ;;  %v1463_v28 = vshrl.u32 %v9350_v14, 16  ;;  %v13030_v61 = vld [vmem:[%s12944_s12 + $0x68] sm:$0xf] }
  0x8a   : > { %10921 = vmatpush3.bf16.msra.mxu1 %v12328_v13  ;;  %v1401_v13 = vor.u32 %v1400_v59, %v1397_v53  ;;  %v1466_v29 = vshll.u32 %v9350_v14, 16  ;;  %v12997_v32 = vrot.slane %v1455_v15, 4  ;;  %v1419_v34 = vsel %vm1334_vm0, %v1410_v17, %v1418_v18  ;;  %v9378_v62 = vld [vmem:[%s12944_s12 + $0x60] sm:$0xf8]  ;;  %v12351_v17 = vld [vmem:[%s15172_s1 + $0x10] sm:$0xff]  }
  0x8b   : > { %10922 = vmatprep.subr.bf16.mxu1 %v12329_v24  ;;  %v1427_v37 = vor.u32 %v1426_v20, %v1423_v19  ;;  %v1435_v38 = vor.u32 %v1434_v22, %v1431_v21  ;;  %v1452_v42 = vor.u32 %v1451_v27, %v1448_v26  ;;  %v13010_v43 = vrot.slane %v1463_v28, 4  ;;  %v13059_v20 = vld [vmem:[%s12944_s12 + $0x78] sm:$0xf]  ;;  %v9379_v25 = vld [vmem:[%s12944_s12 + $0x70] sm:$0xf8]  ;;  %10818 = vmatprep.subr.bf16.mxu0 %v12351_v17 }
  0x8c   : > { %v1402_v30 = vsel %vm1334_vm0, %v1393_v12, %v1401_v13  ;;  %v1666_v46 = vshrl.u32 %v9375_v36, 16  ;;  %v1669_v47 = vshll.u32 %v9375_v36, 16  ;;  %v1674_v48 = vshrl.u32 %v13003_v35, 16  ;;  %v12337_v12 = vld [vmem:[%s15173_s2 + $0xf0] sm:$0xff]   ;;  %10819 = vmatpush3.bf16.msra.mxu0 %v12351_v17 }
  0x8d   : > { %v1677_v49 = vshll.u32 %v13003_v35, 16  ;;  %v1683_v52 = vshrl.u32 %v9376_v40, 16  ;;  %v1686_v53 = vshll.u32 %v9376_v40, 16  ;;  %v1691_v54 = vshrl.u32 %v13007_v39, 16 }
  0x8e   : > { %10923 = vmatpush3.bf16.msra.mxu1 %v12329_v24  ;;  %v1443_v24 = vrot.slane %v1441_v8, 5  ;;  %v1436_v59 = vsel %vm1334_vm0, %v1427_v37, %v1435_v38  ;;  %v1668_v1 = vrot.slane %v1666_v46, 3  ;;  %v1671_v2 = vrot.slane %v1669_v47, 4  ;;  %v13076_v37 = vld [vmem:[%s12944_s12 + $0x88] sm:$0xf] }
  0x8f   : > { %10924 = vmatprep.subr.bf16.mxu1 %v12330_v33  ;;  %v1676_v3 = vrot.slane %v1674_v48, 3  ;;  %v1679_v4 = vrot.slane %v1677_v49, 4  ;;  %v13037_v5 = vrot.slane %v1691_v54, 3  ;;  %v1708_v6 = vshrl.u32 %v13026_v56, 16  ;;  %v13079_v38 = vld [vmem:[%s12944_s12 + $0x30] sm:$0xf0] }
  0x90   : > { %v1444_v41 = vor.u32 %v1443_v24, %v1440_v23  ;;  %v1711_v7 = vshll.u32 %v13026_v56, 16  ;;  %v13041_v8 = vrot.slane %v1683_v52, 3  ;;  %v1717_v10 = vshrl.u32 %v9378_v62, 16  ;;  %v9380_v47 = vld [vmem:[%s12944_s12 + $0x80] sm:$0xf8] }
  0x91   : > { %v1725_v11 = vshrl.u32 %v13030_v61, 16  ;;  %v1672_v21 = vor.u32 %v1671_v2, %v1668_v1  ;;  %v1680_v22 = vor.u32 %v1679_v4, %v1676_v3  ;;  %v1710_v23 = vrot.slane %v1708_v6, 3  ;;  %v13110_v3 = vld [vmem:[%s12944_s12 + $0x98] sm:$0xf] }
  0x92   : > { %10925 = vmatpush3.bf16.msra.mxu1 %v12330_v33  ;;  %v12999_v33 = vrot.slane %v1458_v16, 5  ;;  %v1453_v0 = vsel %vm1334_vm0, %v1444_v41, %v1452_v42  ;;  %v1720_v16 = vshll.u32 %v9378_v62, 16  ;;  %v1713_v24 = vrot.slane %v1711_v7, 4  ;;  %v12357_v7 = vld [vmem:[%s15172_s1 + $0x28] sm:$0xff]  }
  0x93   : > { %10942 = vmatprep.subr.bf16.mxu1 %v12331_v44  ;;  %v13062_v26 = vrot.slane %v1717_v10, 3  ;;  %v13064_v27 = vrot.slane %v1725_v11, 3  ;;  %v1728_v28 = vshll.u32 %v13030_v61, 16  ;;  %v1737_v36 = vshll.u32 %v9379_v25, 16  ;;  %v9382_v11 = vld [vmem:[%s12944_s12 + $0xa0] sm:$0xf8] }
  0x94   : > { %v1461_v18 = vor.u32 %v12999_v33, %v12997_v32  ;;  %v1742_v32 = vshrl.u32 %v13059_v20, 16  ;;  %v1745_v40 = vshll.u32 %v13059_v20, 16  ;;  %v545_v41 = vrot.slane %v13079_v38, 4 }
  0x95   : > { %10927 = vmatmul.mubr.bf16.vlgmr.msra.gmra.mrb[0].mxu1 %v1368_v55  ;;  %v1694_v55 = vshll.u32 %v13007_v39, 16  ;;  %v1759_v48 = vshrl.u32 %v13076_v37, 16  ;;  %v1751_v62 = vshrl.u32 %v9380_v47, 16  ;;  %v1754_v1 = vshll.u32 %v9380_v47, 16 }
  0x96   : > { %10943 = vmatpush3.bf16.msra.mxu1 %v12331_v44  ;;  %10930 = vmatprep.mubr.bf16.mxu1 %v1385_v58  ;;  %v13012_v44 = vrot.slane %v1466_v29, 5  ;;  %v1703_v58 = vshll.u32 %v9377_v45, 16  ;;  %v546_v29 = vrot.slane %v13003_v35, 4  ;;  %v1681_v35 = vsel %vm802_vm1, %v1672_v21, %v1680_v22  ;;  %v12359_v21 = vld [vmem:[%s15172_s1 + $0x30] sm:$0xff]   ;;  %v12342_v22 = vld [vmem:[%s15173_s2 + $0x118] sm:$0xff]  }
  0x97   : > { %10944 = vmatprep.subr.bf16.mxu1 %v12332_v57  ;;  %v1696_v13 = vrot.slane %v1694_v55, 4  ;;  %v1744_v46 = vrot.slane %v1742_v32, 3  ;;  %v1747_v54 = vrot.slane %v1745_v40, 4  ;;  %v12353_v55 = vld [vmem:[%s15172_s1 + $0x18] sm:$0xff]   ;;  %v1761_v2 = vrot.slane %v1759_v48, 3 }
  0x98   : > { %v1705_v15 = vrot.slane %v1703_v58, 4  ;;  %v1469_v19 = vor.u32 %v13012_v44, %v13010_v43  ;;  %v12339_v44 = vld [vmem:[%s15173_s2 + $0x100] sm:$0xff]   ;;  %v13093_v49 = vsel %vm544_vm2, %v545_v41, %v546_v29  ;;  %v9381_v58 = vld [vmem:[%s12944_s12 + $0x90] sm:$0xf8]  ;;  %10820 = vmatprep.subr.bf16.mxu0 %v12353_v55  ;;  %v1762_v4 = vshll.u32 %v13076_v37, 16 }
  0x99   : > { %v1697_v43 = vor.u32 %v1696_v13, %v13037_v5  ;;  %10830 = vmatprep.mubr.bf16.mxu0 %v13093_v49  ;;  %10821 = vmatpush3.bf16.msra.mxu0 %v12353_v55  ;;  %v1768_v5 = vshrl.u32 %v9381_v58, 16  ;;  %v1771_v6 = vshll.u32 %v9381_v58, 16  ;;  %v1748_v13 = vor.u32 %v1747_v54, %v1744_v46  ;;  %v12363_v46 = vld [vmem:[%s15173_s2 + $0x40] sm:$0xff]  }
  0x9a   : > { %10945 = vmatpush3.bf16.msra.mxu1 %v12332_v57  ;;  %v1700_v57 = vshrl.u32 %v9377_v45, 16  ;;  %v1470_v33 = vsel %vm1334_vm0, %v1461_v18, %v1469_v19  ;;  %v1730_v45 = vrot.slane %v1728_v28, 4  ;;  %v1756_v17 = vrot.slane %v1754_v1, 4  ;;  %v13179_v1 = vld [vmem:[%s12944_s12 + $0x70] sm:$0xf0] }
  0x9b   : > { %10946 = vmatprep.subr.bf16.mxu1 %v12333_v9  ;;  %v1764_v18 = vrot.slane %v1762_v4, 4  ;;  %v1770_v19 = vrot.slane %v1768_v5, 3  ;;  %v12346_v5 = vld [vmem:[%s15173_s2 + $0x138] sm:$0xff]   ;;  %vm6614_vm4 = vsmask.f32 2304  ;;  %vm3786_vm5 = vcmask 1044480  }
  0x9c   : > { %v13049_v14 = vrot.slane %v1700_v57, 3  ;;  %v12340_v57 = vld [vmem:[%s15173_s2 + $0x108] sm:$0xff]   ;;  %vm4239_vm6 = vcmask 1042432  }
  0x9d   : > { %10931 = vmatmul.mubr.bf16.gmra.mrb[4].mxu1 %v1402_v30  ;;  %v12338_v30 = vld [vmem:[%s15173_s2 + $0xf8] sm:$0xff]  }
  0x9e   : > { %10947 = vmatpush3.bf16.msra.mxu1 %v12333_v9  ;;  %10934 = vmatprep.mubr.bf16.mxu1 %v1419_v34  ;;  %v13043_v9 = vrot.slane %v1686_v53, 4  ;;  %v1734_v34 = vshrl.u32 %v9379_v25, 16  ;;  %v1706_v50 = vor.u32 %v1705_v15, %v13049_v14  ;;  %v1739_v53 = vrot.slane %v1737_v36, 4 }
  0x9f   : > { %10948 = vmatprep.subr.bf16.mxu1 %v12334_v31  ;;  %v1753_v14 = vrot.slane %v1751_v62, 3  ;;  %v1776_v15 = vshrl.u32 %v13110_v3, 16  ;;  %v1785_v25 = vshrl.u32 %v9382_v11, 16  ;;  %v12345_v62 = vld [vmem:[%s15173_s2 + $0x130] sm:$0xff]  }
  0xa0   : > { %v1689_v42 = vor.u32 %v13043_v9, %v13041_v8  ;;  %v1736_v52 = vrot.slane %v1734_v34, 3  ;;  %v1731_v9 = vor.u32 %v1730_v45, %v13064_v27  ;;  %v13148_v45 = vld [vmem:[%s12944_s12 + $0x50] sm:$0xf0] }
  0xa1   : > { %v1778_v28 = vrot.slane %v1776_v15, 3  ;;  %v1757_v32 = vor.u32 %v1756_v17, %v1753_v14  ;;  %v551_v55 = vrot.slane %v13148_v45, 4  ;;  %v12348_v14 = vld [vmem:[%s15173_s2 + $0x140] sm:$0xff]   ;;  %v2177_v17 = vshll.u32 %v13079_v38, 16 }
  0xa2   : > { %10949 = vmatpush3.bf16.msra.mxu1 %v12334_v31  ;;  %v13071_v31 = vrot.slane %v1720_v16, 4  ;;  %v1740_v10 = vor.u32 %v1739_v53, %v1736_v52  ;;  %v1779_v16 = vshll.u32 %v13110_v3, 16  ;;  %v549_v52 = vrot.slane %v13007_v39, 4  ;;  %v12344_v53 = vld [vmem:[%s15173_s2 + $0x128] sm:$0xff]  }
  0xa3   : > { %10950 = vmatprep.subr.bf16.mxu1 %v12335_v51  ;;  %v12365_v39 = vld [vmem:[%s15173_s2 + $0x48] sm:$0xff]  }
  0xa4   : > { %v1723_v8 = vor.u32 %v13071_v31, %v13062_v26  ;;  %v1749_v27 = vsel %vm802_vm1, %v1740_v10, %v1748_v13  ;;  %v1781_v29 = vrot.slane %v1779_v16, 4  ;;  %v12361_v31 = vld [vmem:[%s15172_s1 + $0x38] sm:$0xff]   ;;  %v13194_v10 = vld [vmem:[%s12944_s12 + $0x80] sm:$0xf0]  ;;  %v561_v16 = vrot.slane %v13076_v37, 4 }
  0xa5   : > { %10935 = vmatmul.mubr.bf16.gmra.mrb[8].mxu1 %v1436_v59  ;;  %v1698_v59 = vsel %vm802_vm1, %v1689_v42, %v1697_v43  ;;  %v1787_v42 = vrot.slane %v1785_v25, 3  ;;  %v13145_v43 = vld [vmem:[%s12944_s12 + $0x40] sm:$0xf0]  ;;  %v9431_v13 = vld [vmem:[%s12944_s12 + $0x38] sm:$0x1f]  ;;  %v564_v25 = vrot.slane %v13110_v3, 4 }
  0xa6   : > { %10951 = vmatpush3.bf16.msra.mxu1 %v12335_v51  ;;  %10938 = vmatprep.mubr.bf16.mxu1 %v1453_v0  ;;  %v1714_v51 = vor.u32 %v1713_v24, %v1710_v23  ;;  %v1773_v23 = vrot.slane %v1771_v6, 4  ;;  %v13132_v24 = vld [vmem:[%s12944_s12 + $0xa8] sm:$0xf]  ;;  %v1732_v26 = vsel %vm802_vm1, %v1723_v8, %v1731_v9  ;;  %v1782_v41 = vor.u32 %v1781_v29, %v1778_v28  ;;  %v12371_v3 = vld [vmem:[%s15173_s2 + $0x60] sm:$0xff]  }
  0xa7   : > { %10952 = vmatprep.subr.bf16.mxu1 %v12336_v63  ;;  %v1793_v34 = vshrl.u32 %v13132_v24, 16  ;;  %v1796_v36 = vshll.u32 %v13132_v24, 16  ;;  %v557_v8 = vrot.slane %v13179_v1, 4  ;;  %v558_v9 = vrot.slane %v13059_v20, 4  ;;  %v12369_v20 = vld [vmem:[%s15173_s2 + $0x58] sm:$0xff]  }
  0xa8   : > { %v1715_v0 = vsel %vm802_vm1, %v1706_v50, %v1714_v51  ;;  %v1774_v40 = vor.u32 %v1773_v23, %v1770_v19  ;;  %v548_v51 = vrot.slane %v13145_v43, 4  ;;  %v2182_v19 = vshrl.u32 %v9431_v13, 16  ;;  %v9432_v37 = vld [vmem:[%s12944_s12 + $0x48] sm:$0x1f] }
  0xa9   : > { %v1795_v48 = vrot.slane %v1793_v34, 3  ;;  %v1798_v50 = vrot.slane %v1796_v36, 4  ;;  %v2191_v29 = vshrl.u32 %v13145_v43, 16  ;;  %v2199_v36 = vshrl.u32 %v9432_v37, 16 }
  0xaa   : > { %10953 = vmatpush3.bf16.msra.mxu1 %v12336_v63  ;;  %v12355_v63 = vld [vmem:[%s15172_s1 + $0x20] sm:$0xff]   ;;  %v1783_v54 = vsel %vm802_vm1, %v1774_v40, %v1782_v41  ;;  %v2208_v40 = vshrl.u32 %v13148_v45, 16  ;;  %v2211_v41 = vshll.u32 %v13148_v45, 16 }
  0xab   : > { %10954 = vmatprep.subr.bf16.mxu1 %v12337_v12  ;;  %10822 = vmatprep.subr.bf16.mxu0 %v12355_v63  ;;  %v13258_v45 = vrot.slane %v2191_v29, 4  ;;  %v13324_v29 = vld [vmem:[%s12944_s12 + $0x48] sm:$0xf] }
  0xac   : > { %10823 = vmatpush3.bf16.msra.mxu0 %v12355_v63  ;;  %v13169_v63 = vsel %vm544_vm2, %v548_v51, %v549_v52  ;;  %v13263_v52 = vld [vmem:[%s12944_s12 + $0x28] sm:$0xf] }
  0xad   : > { %10939 = vmatmul.mubr.bf16.gmra.mrb[12].mxu1 %v1470_v33  ;;  %10824 = vmatprep.subr.bf16.mxu0 %v12357_v7  ;;  %v1765_v33 = vor.u32 %v1764_v18, %v1761_v2  ;;  %v12367_v2 = vld [vmem:[%s15173_s2 + $0x50] sm:$0xff]   ;;  %v13217_v18 = vsel %vm544_vm2, %v557_v8, %v558_v9 }
  0xae   : > { %10955 = vmatpush3.bf16.msra.mxu1 %v12337_v12  ;;  %10958 = vmatprep.mubr.bf16.mxu1 %v1681_v35  ;;  %v12341_v12 = vld [vmem:[%s15173_s2 + $0x110] sm:$0xff]   ;;  %v12343_v35 = vld [vmem:[%s15173_s2 + $0x120] sm:$0xff]   ;;  %15194 = vst [vmem:[#allocation10_spill] sm:$0xff] %v13217_v18 }
  0xaf   : > { %10956 = vmatprep.subr.bf16.mxu1 %v12338_v30  ;;  %v1766_v47 = vsel %vm802_vm1, %v1757_v32, %v1765_v33  ;;  %v9433_v32 = vld [vmem:[%s12944_s12 + $0x58] sm:$0x1f]  ;;  %v13240_v33 = vrot.slane %v2182_v19, 4  ;;  %v2259_v19 = vshrl.u32 %v13194_v10, 16 }
  0xb0   : > { %10825 = vmatpush3.bf16.msra.mxu0 %v12357_v7  ;;  %v555_v7 = vrot.slane %v13030_v61, 4  ;;  %v2174_v61 = vshrl.u32 %v13079_v38, 16  ;;  %v12350_v38 = vld [vmem:[%s15173_s2 + $0x148] sm:$0xff]  }
  0xb1   : > { %10826 = vmatprep.subr.bf16.mxu0 %v12359_v21 }
  0xb2   : > { %10957 = vmatpush3.bf16.msra.mxu1 %v12338_v30  ;;  %v1788_v30 = vshll.u32 %v9382_v11, 16  ;;  %v13197_v11 = vld [vmem:[%s12944_s12 + $0x90] sm:$0xf0]  ;;  %v13230_v28 = vrot.slane %v2174_v61, 4  ;;  %v2245_v61 = vshll.u32 %v13179_v1, 16 }
  0xb3   : > { %10974 = vmatprep.subr.bf16.mxu1 %v12339_v44  ;;  %v563_v23 = vrot.slane %v13197_v11, 4 }
  0xb4   : > { %10827 = vmatpush3.bf16.msra.mxu0 %v12359_v21  ;;  %v2185_v21 = vshll.u32 %v9431_v13, 16 }
  0xb5   : > { %10959 = vmatmul.mubr.bf16.vlgmr.msra.gmra.mrb[0].mxu1 %v1698_v59  ;;  %10828 = vmatprep.subr.bf16.mxu0 %v12361_v31  ;;  %v1799_v59 = vor.u32 %v1798_v50, %v1795_v48  ;;  %v2219_v48 = vshll.u32 %v9433_v32, 16 }
  0xb6   : > { %10975 = vmatpush3.bf16.msra.mxu1 %v12339_v44  ;;  %10962 = vmatprep.mubr.bf16.mxu1 %v1715_v0  ;;  %v1790_v44 = vrot.slane %v1788_v30, 4  ;;  %v13175_v0 = vld [vmem:[%s12944_s12 + $0x60] sm:$0xf0]  ;;  %v13236_v30 = vrot.slane %v2177_v17, 5  ;;  %v13242_v34 = vrot.slane %v2185_v21, 5 }
  0xb7   : > { %10976 = vmatprep.subr.bf16.mxu1 %v12340_v57  ;;  %v554_v6 = vrot.slane %v13175_v0, 4  ;;  %v2225_v50 = vshrl.u32 %v13175_v0, 16  ;;  %v2228_v51 = vshll.u32 %v13175_v0, 16  ;;  %v12354_v0 = vld [vmem:[%s15173_s2 + $0x158] sm:$0xff]   ;;  %v12356_v21 = vld [vmem:[%s15173_s2 + $0x160] sm:$0xff]  }
  0xb8   : > { %10829 = vmatpush3.bf16.msra.mxu0 %v12361_v31  ;;  %v1791_v58 = vor.u32 %v1790_v44, %v1787_v42  ;;  %v2194_v31 = vshll.u32 %v13145_v43, 16  ;;  %v12352_v42 = vld [vmem:[%s15173_s2 + $0x150] sm:$0xff]   ;;  %v2216_v44 = vshrl.u32 %v9433_v32, 16  ;;  %v13330_v32 = vrot.slane %v2245_v61, 5 }
  0xb9   : > { %10846 = vmatprep.subr.bf16.mxu0 %v12363_v46  ;;  %v13212_v15 = vsel %vm544_vm2, %v554_v6, %v555_v7  ;;  %v988_v6 = vrot.slane %v13263_v52, 4  ;;  %v13291_v7 = vrot.slane %v2219_v48, 5  ;;  %v13293_v8 = vrot.slane %v2225_v50, 4  ;;  %v12358_v50 = vld [vmem:[%s15173_s2 + $0x168] sm:$0xff]  }
  0xba   : > { %10977 = vmatpush3.bf16.msra.mxu1 %v12340_v57  ;;  %v552_v57 = vrot.slane %v13026_v56, 4  ;;  %v1800_v4 = vsel %vm802_vm1, %v1791_v58, %v1799_v59  ;;  %v13277_v58 = vrot.slane %v2211_v41, 5  ;;  %v13295_v9 = vrot.slane %v2228_v51, 5 }
  0xbb   : > { %10978 = vmatprep.subr.bf16.mxu1 %v12341_v12  ;;  %10831 = vmatmul.mubr.bf16.vlgmr.msra.gmra.mrb[0].mxu0 %v13169_v63  ;;  %v994_v48 = vrot.slane %v13324_v29, 4 }
  0xbc   : > { %v13172_v56 = vsel %vm544_vm2, %v551_v55, %v552_v57  ;;  %10847 = vmatpush3.bf16.msra.mxu0 %v12363_v46  ;;  %v9434_v46 = vld [vmem:[%s12944_s12 + $0x68] sm:$0x1f]  ;;  %v13270_v55 = vrot.slane %v2199_v36, 4 }
  0xbd   : > { %10963 = vmatmul.mubr.bf16.gmra.mrb[4].mxu1 %v1732_v26  ;;  %10834 = vmatprep.mubr.bf16.mxu0 %v13172_v56  ;;  %v567_v26 = vrot.slane %v13132_v24, 4  ;;  %v2233_v59 = vshrl.u32 %v9434_v46, 16  ;;  %v2236_v13 = vshll.u32 %v9434_v46, 16  ;;  %v2276_v24 = vshrl.u32 %v13197_v11, 16  ;;  %v12580_v46 = vld [vmem:[%s12944_s12 + $0x40] sm:$0xf0] }
  0xbe   : > { %10979 = vmatpush3.bf16.msra.mxu1 %v12341_v12  ;;  %10966 = vmatprep.mubr.bf16.mxu1 %v1749_v27  ;;  %v13200_v12 = vld [vmem:[%s12944_s12 + $0xa0] sm:$0xf0] }
  0xbf   : > { %10980 = vmatprep.subr.bf16.mxu1 %v12342_v22  ;;  %10848 = vmatprep.subr.bf16.mxu0 %v12365_v39  ;;  %v566_v27 = vrot.slane %v13200_v12, 4  ;;  %v2296_v61 = vshll.u32 %v13200_v12, 16 }
  0xc0   : > { %10849 = vmatpush3.bf16.msra.mxu0 %v12365_v39  ;;  %v13275_v39 = vrot.slane %v2208_v40, 4 }
  0xc1   : > { %10850 = vmatprep.subr.bf16.mxu0 %v12367_v2 }
  0xc2   : > { %10981 = vmatpush3.bf16.msra.mxu1 %v12342_v22  ;;  %v560_v22 = vrot.slane %v13194_v10, 4 }
  0xc3   : > { %10982 = vmatprep.subr.bf16.mxu1 %v12343_v35  ;;  %10835 = vmatmul.mubr.bf16.gmra.mrb[4].mxu0 %v13212_v15 }
  0xc4   : > { %10851 = vmatpush3.bf16.msra.mxu0 %v12367_v2  ;;  %10838 = vmatprep.mubr.bf16.mxu0 %v13217_v18  ;;  %v13251_v43 = vsel %vm544_vm2, %v560_v22, %v561_v16  ;;  %v13284_v2 = vrot.slane %v2216_v44, 4  ;;  %v13300_v16 = vrot.slane %v2233_v59, 4  ;;  %v2262_v22 = vshll.u32 %v13194_v10, 16  ;;  %v12379_v44 = vld [vmem:[%s15173_s2] sm:$0xff]  }
  0xc5   : > { %10967 = vmatmul.mubr.bf16.gmra.mrb[8].mxu1 %v1766_v47  ;;  %10852 = vmatprep.subr.bf16.mxu0 %v12369_v20  ;;  %15195 = vst [vmem:[#allocation11_spill] sm:$0xff] %v13251_v43  ;;  %v12373_v47 = vld [vmem:[%s15173_s2 + $0x68] sm:$0xff]  }
  0xc6   : > { %10983 = vmatpush3.bf16.msra.mxu1 %v12343_v35  ;;  %10970 = vmatprep.mubr.bf16.mxu1 %v1783_v54  ;;  %v2202_v35 = vshll.u32 %v9432_v37, 16  ;;  %v13268_v54 = vrot.slane %v2194_v31, 5  ;;  %v13321_v37 = vsel %vm544_vm2, %v566_v27, %v567_v26  ;;  %v13336_v26 = vrot.slane %v2259_v19, 4  ;;  %v12579_v27 = vld [vmem:[%s12944_s12 + $0x30] sm:$0xf0] }
  0xc7   : > { %10984 = vmatprep.subr.bf16.mxu1 %v12344_v53  ;;  %15197 = vst [vmem:[#allocation13_spill] sm:$0xff] %v13321_v37  ;;  %v13351_v51 = vrot.slane %v2262_v22, 5  ;;  %v2180_v19 = vor.u32 %v13236_v30, %v13230_v28  ;;  %v2214_v28 = vor.u32 %v13277_v58, %v13275_v39  ;;  %v2222_v30 = vor.u32 %v13291_v7, %v13284_v2  ;;  %v12383_v39 = vld [vmem:[%s15173_s2 + $0x10] sm:$0xff]   ;;  %v12582_v58 = vld [vmem:[%s12944_s12 + $0x60] sm:$0xf0] }
  0xc8   : > { %10853 = vmatpush3.bf16.msra.mxu0 %v12369_v20  ;;  %v13273_v57 = vrot.slane %v2202_v35, 5  ;;  %v9436_v20 = vld [vmem:[%s12944_s12 + $0x88] sm:$0x1f]  ;;  %v990_v35 = vrot.slane %v12579_v27, 4  ;;  %v999_v2 = vrot.slane %v12582_v58, 4 }
  0xc9   : > { %10854 = vmatprep.subr.bf16.mxu0 %v12371_v3  ;;  %v2267_v10 = vshrl.u32 %v9436_v20, 16  ;;  %v13389_v27 = vld [vmem:[%s12944_s12 + $0x68] sm:$0xf] }
  0xca   : > { %10985 = vmatpush3.bf16.msra.mxu1 %v12344_v53  ;;  %v13266_v53 = vsel %vm544_vm2, %v563_v23, %v564_v25  ;;  %v13313_v25 = vld [vmem:[%s12944_s12 + $0x38] sm:$0xf]  ;;  %v1000_v7 = vrot.slane %v13389_v27, 4 }
  0xcb   : > { %10986 = vmatprep.subr.bf16.mxu1 %v12345_v62  ;;  %15196 = vst [vmem:[#allocation12_spill] sm:$0xff] %v13266_v53  ;;  %10839 = vmatmul.mubr.bf16.gmra.mrb[8].mxu0 %v13251_v43  ;;  %v991_v40 = vrot.slane %v13313_v25, 4  ;;  %v13353_v59 = vrot.slane %v2267_v10, 4  ;;  %v2197_v10 = vor.u32 %v13268_v54, %v13258_v45  ;;  %v12362_v54 = vld [vmem:[%s15173_s2 + $0x178] sm:$0xff]  }
  0xcc   : > { %10855 = vmatpush3.bf16.msra.mxu0 %v12371_v3  ;;  %10842 = vmatprep.mubr.bf16.mxu0 %v13266_v53  ;;  %v13326_v3 = vrot.slane %v2236_v13, 5  ;;  %v2293_v13 = vshrl.u32 %v13200_v12, 16  ;;  %v13373_v12 = vld [vmem:[%s12944_s12 + $0x58] sm:$0xf] }
  0xcd   : > { %10971 = vmatmul.mubr.bf16.gmra.mrb[12].mxu1 %v1800_v4  ;;  %10856 = vmatprep.subr.bf16.mxu0 %v12373_v47  ;;  %v12375_v4 = vld [vmem:[%s15173_s2 + $0x70] sm:$0xff]   ;;  %v997_v45 = vrot.slane %v13373_v12, 4 }
  0xce   : > { %10987 = vmatpush3.bf16.msra.mxu1 %v12345_v62  ;;  %10990 = vmatprep.mubr.bf16.mxu1 %v13093_v49  ;;  %v9435_v62 = vld [vmem:[%s12944_s12 + $0x78] sm:$0x1f] }
  0xcf   : > { %10988 = vmatprep.subr.bf16.mxu1 %v12346_v5  ;;  %v2253_v17 = vshll.u32 %v9435_v62, 16 }
  0xd0   : > { %10857 = vmatpush3.bf16.msra.mxu0 %v12373_v47  ;;  %v993_v47 = vrot.slane %v12580_v46, 4  ;;  %v9466_v46 = vld [vmem:[%s12944_s12 + $0x50] sm:$0xf8] }
  0xd1   : > { %10858 = vmatprep.subr.bf16.mxu0 %v12375_v4  ;;  %v13340_v41 = vrot.slane %v2253_v17, 5 }
  0xd2   : > { %10989 = vmatpush3.bf16.msra.mxu1 %v12346_v5  ;;  %v987_v5 = vrot.slane %v12947_v60, 4  ;;  %v2250_v60 = vshrl.u32 %v9435_v62, 16  ;;  %v995_v17 = vsel %vm544_vm2, %v993_v47, %v994_v48 }
  0xd3   : > { %11006 = vmatprep.subr.bf16.mxu1 %v12348_v14  ;;  %10843 = vmatmul.mubr.bf16.gmra.mrb[12].mxu0 %v13321_v37 }
  0xd4   : > { %v989_v23 = vsel %vm544_vm2, %v987_v5, %v988_v6  ;;  %v13334_v36 = vrot.slane %v2250_v60, 4  ;;  %10859 = vmatpush3.bf16.msra.mxu0 %v12375_v4  ;;  %v2279_v4 = vshll.u32 %v13197_v11, 16  ;;  %v13358_v5 = vrot.slane %v2276_v24, 4  ;;  %v9438_v6 = vld [vmem:[%s12944_s12 + $0xa8] sm:$0x1f]  ;;  %v12360_v11 = vld [vmem:[%s15173_s2 + $0x170] sm:$0xff]  }
  0xd5   : > { %10991 = vmatmul.mubr.bf16.vlgmr.msra.gmra.mrb[0].mxu1 %v13169_v63  ;;  %10862 = vmatprep.mubr.bf16.mxu0 %v989_v23  ;;  %v12381_v60 = vld [vmem:[%s15173_s2 + $0x8] sm:$0xff]   ;;  %v2301_v22 = vshrl.u32 %v9438_v6, 16  ;;  %v2188_v23 = vor.u32 %v13242_v34, %v13240_v33  ;;  %v12581_v33 = vld [vmem:[%s12944_s12 + $0x50] sm:$0xf0] }
  0xd6   : > { %11007 = vmatpush3.bf16.msra.mxu1 %v12348_v14  ;;  %10994 = vmatprep.mubr.bf16.mxu1 %v13172_v56  ;;  %v2242_v14 = vshrl.u32 %v13179_v1, 16  ;;  %v12377_v1 = vld [vmem:[%s15173_s2 + $0x78] sm:$0xff]   ;;  %v13386_v24 = vld [vmem:[%s12944_s12 + $0x48] sm:$0xf]  ;;  %v996_v34 = vrot.slane %v12581_v33, 4  ;;  %v2256_v33 = vor.u32 %v13340_v41, %v13334_v36  ;;  %v12387_v36 = vld [vmem:[%s15173_s2 + $0x20] sm:$0xff]  }
  0xd7   : > { %11008 = vmatprep.subr.bf16.mxu1 %v12350_v38  ;;  %10860 = vmatprep.subr.bf16.mxu0 %v12377_v1  ;;  %v2189_v47 = vsel %vm1334_vm0, %v2180_v19, %v2188_v23  ;;  %v2231_v19 = vor.u32 %v13295_v9, %v13293_v8  ;;  %v13440_v23 = vld [vmem:[%s12944_s12 + $0x78] sm:$0xf]  ;;  %v2239_v9 = vor.u32 %v13326_v3, %v13300_v16  ;;  %v13461_v3 = vld [vmem:[%s12944_s12 + $0x88] sm:$0xf]  ;;  %v12584_v41 = vld [vmem:[%s12944_s12 + $0x80] sm:$0xf0] }
  0xd8   : > { %v13328_v31 = vrot.slane %v2242_v14, 4  ;;  %10861 = vmatpush3.bf16.msra.mxu0 %v12377_v1  ;;  %v2304_v1 = vshll.u32 %v9438_v6, 16  ;;  %v2523_v6 = vshrl.u32 %v13386_v24, 16  ;;  %v1003_v16 = vrot.slane %v13440_v23, 4 }
  0xd9   : > { %10878 = vmatprep.subr.bf16.mxu0 %v12379_v44 }
  0xda   : > { %11009 = vmatpush3.bf16.msra.mxu1 %v12350_v38  ;;  %v2270_v38 = vshll.u32 %v9436_v20, 16  ;;  %v992_v20 = vsel %vm544_vm2, %v990_v35, %v991_v40 }
  0xdb   : > { %11010 = vmatprep.subr.bf16.mxu1 %v12352_v42  ;;  %10863 = vmatmul.mubr.bf16.vlgmr.msra.gmra.mrb[16].mxu0 %v992_v20  ;;  %v998_v20 = vsel %vm544_vm2, %v996_v34, %v997_v45  ;;  %v2265_v34 = vor.u32 %v13351_v51, %v13336_v26  ;;  %v12583_v45 = vld [vmem:[%s12944_s12 + $0x70] sm:$0xf0]  ;;  %v1005_v26 = vrot.slane %v12584_v41, 4  ;;  %v1006_v51 = vrot.slane %v13461_v3, 4 }
  0xdc   : > { %v13355_v62 = vrot.slane %v2270_v38, 5  ;;  %v2205_v38 = vor.u32 %v13273_v57, %v13270_v55  ;;  %10879 = vmatpush3.bf16.msra.mxu0 %v12379_v44  ;;  %10866 = vmatprep.mubr.bf16.mxu0 %v995_v17  ;;  %v13400_v55 = vrot.slane %v2279_v4, 5  ;;  %v13402_v57 = vrot.slane %v2293_v13, 4  ;;  %v13420_v13 = vld [vmem:[%s12944_s12 + $0x58] sm:$0xf] }
  0xdd   : > { %10995 = vmatmul.mubr.bf16.gmra.mrb[4].mxu1 %v13212_v15  ;;  %10880 = vmatprep.subr.bf16.mxu0 %v12381_v60  ;;  %v13416_v4 = vrot.slane %v2296_v61, 5  ;;  %v12364_v61 = vld [vmem:[%s15173_s2 + $0x180] sm:$0xff]   ;;  %v2223_v17 = vsel %vm1334_vm0, %v2214_v28, %v2222_v30  ;;  %v2540_v8 = vshrl.u32 %v13420_v13, 16  ;;  %v2248_v28 = vor.u32 %v13330_v32, %v13328_v31 }
  0xde   : > { %11011 = vmatpush3.bf16.msra.mxu1 %v12352_v42  ;;  %10998 = vmatprep.mubr.bf16.mxu1 %v13217_v18  ;;  %v9437_v42 = vld [vmem:[%s12944_s12 + $0x98] sm:$0x1f]  ;;  %v2206_v48 = vsel %vm1334_vm0, %v2197_v10, %v2205_v38  ;;  %v13451_v30 = vrot.slane %v2523_v6, 3  ;;  %v1002_v58 = vrot.slane %v12583_v45, 4  ;;  %v2273_v31 = vor.u32 %v13355_v62, %v13353_v59  ;;  %v12389_v6 = vld [vmem:[%s15173_s2 + $0x28] sm:$0xff]  }
  0xdf   : > { %11012 = vmatprep.subr.bf16.mxu1 %v12354_v0  ;;  %v2287_v14 = vshll.u32 %v9437_v42, 16  ;;  %v2282_v59 = vor.u32 %v13400_v55, %v13358_v5  ;;  %v2240_v5 = vsel %vm1334_vm0, %v2231_v19, %v2239_v9  ;;  %v13491_v55 = vsel %vm1334_vm0, %v2248_v28, %v2256_v33  ;;  %v13520_v19 = vld [vmem:[%s12944_s12 + $0x68] sm:$0xf] }
  0xe0   : > { %10881 = vmatpush3.bf16.msra.mxu0 %v12381_v60  ;;  %v1001_v60 = vsel %vm544_vm2, %v999_v2, %v1000_v7  ;;  %v2299_v2 = vor.u32 %v13416_v4, %v13402_v57  ;;  %v1004_v57 = vsel %vm544_vm2, %v1002_v58, %v1003_v16  ;;  %v815_v9 = vshll.u32 %v13263_v52, 16  ;;  %v13543_v16 = vld [vmem:[%s12944_s12 + $0x70] sm:$0xf8] }
  0xe1   : > { %v13411_v40 = vrot.slane %v2287_v14, 5  ;;  %v2526_v14 = vshll.u32 %v13386_v24, 16  ;;  %10882 = vmatprep.subr.bf16.mxu0 %v12383_v39  ;;  %v829_v45 = vshrl.u32 %v13313_v25, 16  ;;  %v2557_v58 = vshrl.u32 %v13520_v19, 16 }
  0xe2   : > { %11013 = vmatpush3.bf16.msra.mxu1 %v12354_v0  ;;  %v2284_v0 = vshrl.u32 %v9437_v42, 16 }
  0xe3   : > { %11014 = vmatprep.subr.bf16.mxu1 %v12356_v21  ;;  %10867 = vmatmul.mubr.bf16.gmra.mrb[20].mxu0 %v998_v20  ;;  %v2528_v32 = vrot.slane %v2526_v14, 4 }
  0xe4   : > { %v13409_v35 = vrot.slane %v2284_v0, 4  ;;  %v13424_v0 = vrot.slane %v2304_v1, 5  ;;  %v12385_v1 = vld [vmem:[%s15173_s2 + $0x18] sm:$0xff]   ;;  %10883 = vmatpush3.bf16.msra.mxu0 %v12383_v39  ;;  %10870 = vmatprep.mubr.bf16.mxu0 %v1001_v60  ;;  %v12366_v39 = vld [vmem:[%s15173_s2 + $0x188] sm:$0xff]  }
  0xe5   : > { %10999 = vmatmul.mubr.bf16.gmra.mrb[8].mxu1 %v13251_v43  ;;  %10884 = vmatprep.subr.bf16.mxu0 %v12385_v1  ;;  %v2529_v4 = vor.u32 %v2528_v32, %v13451_v30  ;;  %v12391_v30 = vld [vmem:[%s15173_s2 + $0x30] sm:$0xff]   ;;  %v6601_v43 = vld [vmem:[%s12944_s12 + $0x18] sm:$0x3f] }
  0xe6   : > { %11015 = vmatpush3.bf16.msra.mxu1 %v12356_v21  ;;  %11002 = vmatprep.mubr.bf16.mxu1 %v13266_v53  ;;  %v9464_v21 = vld [vmem:[%s12944_s12 + $0x40] sm:$0xf8]  ;;  %v2290_v62 = vor.u32 %v13411_v40, %v13409_v35  ;;  %v13498_v40 = vld [vmem:[%s12944_s12 + $0x98] sm:$0xf] }
  0xe7   : > { %11016 = vmatprep.subr.bf16.mxu1 %v12358_v50  ;;  %v2515_v42 = vshrl.u32 %v9464_v21, 16  ;;  %v2518_v44 = vshll.u32 %v9464_v21, 16  ;;  %v2535_v21 = vshll.u32 %v9466_v46, 16  ;;  %v13494_v35 = vld [vmem:[%s12944_s12 + $0x60] sm:$0xf8]  ;;  %v1009_v60 = vrot.slane %v13498_v40, 4 }
  0xe8   : > { %10885 = vmatpush3.bf16.msra.mxu0 %v12385_v1  ;;  %v13514_v14 = vsel %vm1334_vm0, %v2282_v59, %v2290_v62 }
  0xe9   : > { %v13442_v10 = vrot.slane %v2515_v42, 3  ;;  %v13444_v38 = vrot.slane %v2518_v44, 4  ;;  %v13485_v44 = vrot.slane %v2540_v8, 3  ;;  %10886 = vmatprep.subr.bf16.mxu0 %v12387_v36  ;;  %v812_v8 = vshrl.u32 %v13263_v52, 16 }
  0xea   : > { %11017 = vmatpush3.bf16.msra.mxu1 %v12358_v50  ;;  %v13422_v50 = vrot.slane %v2301_v22, 4  ;;  %v2532_v22 = vshrl.u32 %v9466_v46, 16  ;;  %v817_v52 = vrot.slane %v815_v9, 4 }
  0xeb   : > { %11018 = vmatprep.subr.bf16.mxu1 %v12360_v11  ;;  %10871 = vmatmul.mubr.bf16.gmra.mrb[24].mxu0 %v1004_v57 }
  0xec   : > { %v2307_v7 = vor.u32 %v13424_v0, %v13422_v50  ;;  %v13481_v42 = vrot.slane %v2532_v22, 3  ;;  %v1007_v50 = vsel %vm544_vm2, %v1005_v26, %v1006_v51  ;;  %v12368_v0 = vld [vmem:[%s15173_s2 + $0x190] sm:$0xff]   ;;  %10887 = vmatpush3.bf16.msra.mxu0 %v12387_v36  ;;  %v12370_v36 = vld [vmem:[%s15173_s2 + $0x198] sm:$0xff]  }
  0xed   : > { %11003 = vmatmul.mubr.bf16.gmra.mrb[12].mxu1 %v13321_v37  ;;  %v12585_v22 = vld [vmem:[%s12944_s12 + $0x90] sm:$0xf0]  ;;  %10874 = vmatprep.mubr.bf16.mxu0 %v1007_v50 }
  0xee   : > { %11019 = vmatpush3.bf16.msra.mxu1 %v12360_v11  ;;  %11022 = vmatprep.mubr.bf16.mxu1 %v2189_v47  ;;  %v2543_v11 = vshll.u32 %v13420_v13, 16  ;;  %v2521_v47 = vor.u32 %v13444_v38, %v13442_v10  ;;  %v13517_v20 = vsel %vm1334_vm0, %v2299_v2, %v2307_v7  ;;  %v1008_v1 = vrot.slane %v12585_v22, 4 }
  0xef   : > { %11020 = vmatprep.subr.bf16.mxu1 %v12362_v54  ;;  %10888 = vmatprep.subr.bf16.mxu0 %v12389_v6  ;;  %v831_v2 = vrot.slane %v829_v45, 3  ;;  %v832_v7 = vshll.u32 %v13313_v25, 16  ;;  %v2569_v22 = vshll.u32 %v13543_v16, 16 }
  0xf0   : > { %v13487_v46 = vrot.slane %v2543_v11, 4  ;;  %v13534_v28 = vsel %vm802_vm1, %v2521_v47, %v2529_v4  ;;  %v1010_v41 = vsel %vm544_vm2, %v1008_v1, %v1009_v60  ;;  %10889 = vmatpush3.bf16.msra.mxu0 %v12389_v6  ;;  %v846_v6 = vshrl.u32 %v13324_v29, 16 }
  0xf1   : > { %10890 = vmatprep.subr.bf16.mxu0 %v12391_v30  ;;  %v834_v4 = vrot.slane %v832_v7, 4  ;;  %v9295_v7 = vld [vmem:[%s12944_s12 + $0x60] sm:$0xf8] }
  0xf2   : > { %11021 = vmatpush3.bf16.msra.mxu1 %v12362_v54  ;;  %v13483_v54 = vrot.slane %v2535_v21, 4  ;;  %v2546_v38 = vor.u32 %v13487_v46, %v13485_v44  ;;  %v9287_v21 = vld [vmem:[%s12944_s12 + $0x20] sm:$0xf8]  ;;  %v13555_v44 = vld [vmem:[%s12944_s12 + $0x78] sm:$0xf]  ;;  %v2566_v46 = vshrl.u32 %v13543_v16, 16 }
  0xf3   : > { %11038 = vmatprep.subr.bf16.mxu1 %v12364_v61  ;;  %v804_v11 = vshrl.u32 %v9287_v21, 16  ;;  %v807_v33 = vshll.u32 %v9287_v21, 16  ;;  %10875 = vmatmul.mubr.bf16.gmra.mrb[28].mxu0 %v1010_v41  ;;  %v848_v9 = vrot.slane %v846_v6, 3  ;;  %v863_v16 = vshrl.u32 %v13373_v12, 16  ;;  %v13603_v6 = vld [vmem:[%s12944_s12 + $0x88] sm:$0xf] }
  0xf4   : > { %v2538_v10 = vor.u32 %v13483_v54, %v13481_v42  ;;  %v12372_v42 = vld [vmem:[%s15173_s2 + $0x1a0] sm:$0xff]   ;;  %v2560_v54 = vshll.u32 %v13520_v19, 16  ;;  %10891 = vmatpush3.bf16.msra.mxu0 %v12391_v30  ;;  %v13581_v41 = vrot.slane %v2557_v58, 3 }
  0xf5   : > { %11023 = vmatmul.mubr.bf16.vlgmr.msra.gmra.mrb[0].mxu1 %v2206_v48  ;;  %v13511_v48 = vsel %vm1334_vm0, %v2265_v34, %v2273_v31  ;;  %v9289_v34 = vld [vmem:[%s12944_s12 + $0x30] sm:$0xf8]  ;;  %v814_v31 = vrot.slane %v812_v8, 3  ;;  %v806_v26 = vrot.slane %v804_v11, 3  ;;  %v809_v51 = vrot.slane %v807_v33, 4 }
  0xf6   : > { %11039 = vmatpush3.bf16.msra.mxu1 %v12364_v61  ;;  %11026 = vmatprep.mubr.bf16.mxu1 %v2223_v17  ;;  %v2549_v61 = vshrl.u32 %v13494_v35, 16  ;;  %v2552_v17 = vshll.u32 %v13494_v35, 16  ;;  %v821_v32 = vshrl.u32 %v9289_v34, 16  ;;  %v824_v59 = vshll.u32 %v9289_v34, 16  ;;  %v12393_v35 = vld [vmem:[%s15173_s2 + $0x38] sm:$0xff]  }
  0xf7   : > { %11040 = vmatprep.subr.bf16.mxu1 %v12366_v39  ;;  %v810_v57 = vor.u32 %v809_v51, %v806_v26  ;;  %v13568_v50 = vsel %vm802_vm1, %v2538_v10, %v2546_v38  ;;  %v9293_v8 = vld [vmem:[%s12944_s12 + $0x50] sm:$0xf8]  ;;  %10892 = vmatprep.subr.bf16.mxu0 %v12393_v35  ;;  %v2574_v33 = vshrl.u32 %v13555_v44, 16  ;;  %v865_v51 = vrot.slane %v863_v16, 3 }
  0xf8   : > { %v823_v62 = vrot.slane %v821_v32, 3  ;;  %v826_v47 = vrot.slane %v824_v59, 4  ;;  %v13562_v25 = vrot.slane %v2549_v61, 3  ;;  %v855_v10 = vshrl.u32 %v9293_v8, 16  ;;  %10893 = vmatpush3.bf16.msra.mxu0 %v12393_v35 }
  0xf9   : > { %v858_v38 = vshll.u32 %v9293_v8, 16  ;;  %v866_v32 = vshll.u32 %v13373_v12, 16  ;;  %v13585_v59 = vrot.slane %v2560_v54, 4  ;;  %v880_v35 = vshrl.u32 %v13389_v27, 16  ;;  %v9297_v54 = vld [vmem:[%s12944_s12 + $0x70] sm:$0xf8] }
  0xfa   : > { %11041 = vmatpush3.bf16.msra.mxu1 %v12366_v39  ;;  %v818_v39 = vor.u32 %v817_v52, %v814_v31  ;;  %v827_v61 = vor.u32 %v826_v47, %v823_v62  ;;  %v857_v31 = vrot.slane %v855_v10, 3  ;;  %v2577_v62 = vshll.u32 %v13555_v44, 16 }
  0xfb   : > { %11042 = vmatprep.subr.bf16.mxu1 %v12368_v0  ;;  %v860_v52 = vrot.slane %v858_v38, 4  ;;  %v872_v47 = vshrl.u32 %v9295_v7, 16  ;;  %v900_v10 = vshll.u32 %v13440_v23, 16  ;;  %v12378_v38 = vld [vmem:[%s15173_s2 + $0x1b8] sm:$0xff]  }
  0xfc   : > { %v819_v1 = vsel %vm802_vm1, %v810_v57, %v818_v39  ;;  %v13587_v39 = vrot.slane %v2566_v46, 3  ;;  %v12376_v46 = vld [vmem:[%s15173_s2 + $0x1b0] sm:$0xff]  }
  0xfd   : > { %11027 = vmatmul.mubr.bf16.gmra.mrb[4].mxu1 %v2240_v5  ;;  %v13564_v5 = vrot.slane %v2552_v17, 4  ;;  %10894 = vmatprep.mubr.bf16.mxu0 %v819_v1  ;;  %v835_v17 = vor.u32 %v834_v4, %v831_v2  ;;  %v868_v2 = vrot.slane %v866_v32, 4  ;;  %v861_v57 = vor.u32 %v860_v52, %v857_v31 }
  0xfe   : > { %11043 = vmatpush3.bf16.msra.mxu1 %v12368_v0  ;;  %11030 = vmatprep.mubr.bf16.mxu1 %v13491_v55  ;;  %v9291_v0 = vld [vmem:[%s12944_s12 + $0x40] sm:$0xf8]  ;;  %v849_v55 = vshll.u32 %v13324_v29, 16  ;;  %v12374_v29 = vld [vmem:[%s15173_s2 + $0x1a8] sm:$0xff]   ;;  %v875_v4 = vshll.u32 %v9295_v7, 16  ;;  %v882_v1 = vrot.slane %v880_v35, 3 }
  0xff   : > { %11044 = vmatprep.subr.bf16.mxu1 %v12370_v36  ;;  %v838_v60 = vshrl.u32 %v9291_v0, 16  ;;  %v841_v21 = vshll.u32 %v9291_v0, 16  ;;  %v2555_v12 = vor.u32 %v13564_v5, %v13562_v25  ;;  %v902_v52 = vrot.slane %v900_v10, 4  ;;  %v13649_v10 = vld [vmem:[%s12944_s12 + $0xa8] sm:$0xf] }
 0x100   : > { %v851_v11 = vrot.slane %v849_v55, 4  ;;  %v889_v55 = vshrl.u32 %v9297_v54, 16  ;;  %v2591_v32 = vshrl.u32 %v13603_v6, 16  ;;  %v917_v7 = vshll.u32 %v13461_v3, 16 }
 0x101   : > { %v840_v34 = vrot.slane %v838_v60, 3  ;;  %v843_v45 = vrot.slane %v841_v21, 4  ;;  %v877_v60 = vrot.slane %v875_v4, 4  ;;  %v897_v21 = vshrl.u32 %v13440_v23, 16  ;;  %v9299_v23 = vld [vmem:[%s12944_s12 + $0x80] sm:$0xf8] }
 0x102   : > { %11045 = vmatpush3.bf16.msra.mxu1 %v12370_v36  ;;  %v852_v30 = vor.u32 %v851_v11, %v848_v9  ;;  %v836_v36 = vsel %vm802_vm1, %v827_v61, %v835_v17  ;;  %v892_v61 = vshll.u32 %v9297_v54, 16  ;;  %v874_v17 = vrot.slane %v872_v47, 3 }
 0x103   : > { %11046 = vmatprep.subr.bf16.mxu1 %v12372_v42  ;;  %v844_v26 = vor.u32 %v843_v45, %v840_v34  ;;  %10895 = vmatmul.mubr.bf16.vlgmr.msra.gmra.mrb[16].mxu0 %v836_v36  ;;  %v891_v9 = vrot.slane %v889_v55, 3  ;;  %v13614_v34 = vrot.slane %v2574_v33, 3  ;;  %v899_v16 = vrot.slane %v897_v21, 3  ;;  %v12382_v21 = vld [vmem:[%s15173_s2 + $0x1c8] sm:$0xff]  }
 0x104   : > { %v894_v11 = vrot.slane %v892_v61, 4  ;;  %v878_v45 = vor.u32 %v877_v60, %v874_v17  ;;  %v2594_v33 = vshll.u32 %v13603_v6, 16  ;;  %v2593_v55 = vrot.slane %v2591_v32, 3  ;;  %v13635_v17 = vld [vmem:[%s12944_s12 + $0x98] sm:$0xf] }
 0x105   : > { %11031 = vmatmul.mubr.bf16.gmra.mrb[8].mxu1 %v13511_v48  ;;  %v853_v58 = vsel %vm802_vm1, %v844_v26, %v852_v30  ;;  %v883_v48 = vshll.u32 %v13389_v27, 16  ;;  %v13605_v27 = vrot.slane %v2569_v22, 4  ;;  %v2563_v22 = vor.u32 %v13585_v59, %v13581_v41  ;;  %v9301_v41 = vld [vmem:[%s12944_s12 + $0x90] sm:$0xf8] }
 0x106   : > { %11047 = vmatpush3.bf16.msra.mxu1 %v12372_v42  ;;  %11034 = vmatprep.mubr.bf16.mxu1 %v13514_v14  ;;  %v9472_v42 = vld [vmem:[%s12944_s12 + $0x80] sm:$0xf8]  ;;  %v869_v14 = vor.u32 %v868_v2, %v865_v51  ;;  %v906_v26 = vshrl.u32 %v9299_v23, 16  ;;  %v909_v51 = vshll.u32 %v9299_v23, 16  ;;  %v9474_v59 = vld [vmem:[%s12944_s12 + $0x90] sm:$0xf8]  ;;  %v895_v2 = vor.u32 %v894_v11, %v891_v9 }
 0x107   : > { %11048 = vmatprep.subr.bf16.mxu1 %v12374_v29  ;;  %10898 = vmatprep.mubr.bf16.mxu0 %v853_v58  ;;  %v885_v0 = vrot.slane %v883_v48, 4  ;;  %v2586_v30 = vshll.u32 %v9472_v42, 16  ;;  %v914_v58 = vshrl.u32 %v13461_v3, 16  ;;  %v903_v35 = vor.u32 %v902_v52, %v899_v16  ;;  %v9476_v9 = vld [vmem:[%s12944_s12 + $0xa0] sm:$0xf8] }
 0x108   : > { %v870_v31 = vsel %vm802_vm1, %v861_v57, %v869_v14  ;;  %v908_v48 = vrot.slane %v906_v26, 3  ;;  %v911_v54 = vrot.slane %v909_v51, 4  ;;  %v926_v57 = vshll.u32 %v9301_v41, 16 }
 0x109   : > { %v886_v8 = vor.u32 %v885_v0, %v882_v1  ;;  %v931_v14 = vshrl.u32 %v13498_v40, 16  ;;  %v2579_v3 = vrot.slane %v2577_v62, 4  ;;  %v934_v1 = vshll.u32 %v13498_v40, 16 }
 0x10a   : > { %11049 = vmatpush3.bf16.msra.mxu1 %v12374_v29  ;;  %v2583_v29 = vshrl.u32 %v9472_v42, 16  ;;  %v919_v42 = vrot.slane %v917_v7, 4  ;;  %v912_v4 = vor.u32 %v911_v54, %v908_v48  ;;  %v2588_v0 = vrot.slane %v2586_v30, 4  ;;  %v9478_v7 = vld [vmem:[%s12944_s12 + $0xb0] sm:$0xf8] }
 0x10b   : > { %11050 = vmatprep.subr.bf16.mxu1 %v12376_v46  ;;  %v887_v36 = vsel %vm802_vm1, %v878_v45, %v886_v8  ;;  %10899 = vmatmul.mubr.bf16.gmra.mrb[20].mxu0 %v870_v31  ;;  %v2596_v61 = vrot.slane %v2594_v33, 4  ;;  %v2564_v62 = vsel %vm802_vm1, %v2555_v12, %v2563_v22  ;;  %v2572_v40 = vor.u32 %v13605_v27, %v13587_v39  ;;  %v12384_v31 = vld [vmem:[%s15173_s2 + $0x1d0] sm:$0xff]  }
 0x10c   : > { %10902 = vmatprep.mubr.bf16.mxu0 %v887_v36  ;;  %v2585_v47 = vrot.slane %v2583_v29, 3  ;;  %v2600_v8 = vshrl.u32 %v9474_v59, 16  ;;  %v904_v11 = vsel %vm802_vm1, %v895_v2, %v903_v35  ;;  %v928_v45 = vrot.slane %v926_v57, 4 }
 0x10d   : > { %11035 = vmatmul.mubr.bf16.gmra.mrb[12].mxu1 %v13517_v20  ;;  %v12380_v20 = vld [vmem:[%s15173_s2 + $0x1c0] sm:$0xff]   ;;  %v933_v16 = vrot.slane %v931_v14, 3  ;;  %v936_v29 = vrot.slane %v934_v1, 4  ;;  %v2603_v30 = vshll.u32 %v9474_v59, 16  ;;  %v2608_v25 = vshrl.u32 %v13635_v17, 16 }
 0x10e   : > { %11051 = vmatpush3.bf16.msra.mxu1 %v12376_v46  ;;  %11054 = vmatprep.mubr.bf16.mxu1 %v13534_v28  ;;  %v923_v46 = vshrl.u32 %v9301_v41, 16  ;;  %v916_v28 = vrot.slane %v914_v58, 3  ;;  %v2611_v5 = vshll.u32 %v13635_v17, 16  ;;  %v2580_v39 = vor.u32 %v2579_v3, %v13614_v34  ;;  %v12386_v34 = vld [vmem:[%s15173_s2 + $0x1d8] sm:$0xff]   ;;  %v12388_v1 = vld [vmem:[%s15173_s2 + $0x1e0] sm:$0xff]  }
 0x10f   : > { %11052 = vmatprep.subr.bf16.mxu1 %v12378_v38  ;;  %v2589_v27 = vor.u32 %v2588_v0, %v2585_v47  ;;  %v2597_v22 = vor.u32 %v2596_v61, %v2593_v55  ;;  %v2617_v52 = vshrl.u32 %v9476_v9, 16  ;;  %v2625_v23 = vshrl.u32 %v13649_v10, 16 }
 0x110   : > { %v920_v60 = vor.u32 %v919_v42, %v916_v28  ;;  %v2628_v32 = vshll.u32 %v13649_v10, 16  ;;  %v937_v26 = vor.u32 %v936_v29, %v933_v16  ;;  %v2602_v51 = vrot.slane %v2600_v8, 3  ;;  %v12390_v8 = vld [vmem:[%s15173_s2 + $0x1e8] sm:$0xff]   ;;  %v12392_v16 = vld [vmem:[%s15173_s2 + $0x1f0] sm:$0xff]  }
 0x111   : > { %v2605_v41 = vrot.slane %v2603_v30, 4  ;;  %v2610_v33 = vrot.slane %v2608_v25, 3  ;;  %v2613_v59 = vrot.slane %v2611_v5, 4  ;;  %v2581_v2 = vsel %vm802_vm1, %v2572_v40, %v2580_v39  ;;  %v12394_v5 = vld [vmem:[%s15173_s2 + $0x1f8] sm:$0xff]   ;;  %v13695_v39 = vld [vmem:[%s12944_s12 + $0x50] sm:$0xf0] }
 0x112   : > { %11053 = vmatpush3.bf16.msra.mxu1 %v12378_v38  ;;  %v925_v38 = vrot.slane %v923_v46, 3  ;;  %v921_v12 = vsel %vm802_vm1, %v912_v4, %v920_v60  ;;  %v2598_v58 = vsel %vm802_vm1, %v2589_v27, %v2597_v22  ;;  %v2619_v35 = vrot.slane %v2617_v52, 3  ;;  %v13698_v27 = vld [vmem:[%s12944_s12 + $0x60] sm:$0xf0] }
 0x113   : > { %11070 = vmatprep.subr.bf16.mxu1 %v12380_v20  ;;  %10903 = vmatmul.mubr.bf16.gmra.mrb[24].mxu0 %v904_v11  ;;  %v2627_v54 = vrot.slane %v2625_v23, 3  ;;  %v2630_v46 = vrot.slane %v2628_v32, 4  ;;  %v2606_v42 = vor.u32 %v2605_v41, %v2602_v51  ;;  %v2614_v57 = vor.u32 %v2613_v59, %v2610_v33  ;;  %v13682_v11 = vld [vmem:[%s12944_s12 + $0x40] sm:$0xf0]  ;;  %v12396_v32 = vld [vmem:[%s15173_s2 + $0x208] sm:$0xff]   ;;  %v12397_v51 = vld [vmem:[%s15173_s2 + $0x210] sm:$0xff]  }
 0x114   : > { %10906 = vmatprep.mubr.bf16.mxu0 %v921_v12  ;;  %v929_v36 = vor.u32 %v928_v45, %v925_v38  ;;  %v2634_v14 = vshrl.u32 %v9478_v7, 16  ;;  %v2637_v3 = vshll.u32 %v9478_v7, 16  ;;  %v2860_v29 = vrot.slane %v13682_v11, 4  ;;  %v13732_v7 = vld [vmem:[%s12944_s12 + $0x90] sm:$0xf0] }
 0x115   : > { %11055 = vmatmul.mubr.bf16.vlgmr.msra.gmra.mrb[0].mxu1 %v13568_v50  ;;  %v2620_v50 = vshll.u32 %v9476_v9, 16  ;;  %v2631_v55 = vor.u32 %v2630_v46, %v2627_v54  ;;  %v2615_v61 = vsel %vm802_vm1, %v2606_v42, %v2614_v57  ;;  %v2861_v30 = vrot.slane %v13386_v24, 4  ;;  %v12399_v57 = vld [vmem:[%s15173_s2 + $0x220] sm:$0xff]  }
 0x116   : > { %11071 = vmatpush3.bf16.msra.mxu1 %v12380_v20  ;;  %11058 = vmatprep.mubr.bf16.mxu1 %v2564_v62  ;;  %v13668_v20 = vld [vmem:[%s12944_s12 + $0xb8] sm:$0xf]  ;;  %v938_v28 = vsel %vm802_vm1, %v929_v36, %v937_v26  ;;  %v2636_v60 = vrot.slane %v2634_v14, 3  ;;  %v2863_v24 = vrot.slane %v13695_v39, 4  ;;  %v2864_v22 = vrot.slane %v13420_v13, 4 }
 0x117   : > { %11072 = vmatprep.subr.bf16.mxu1 %v12382_v21  ;;  %v2622_v48 = vrot.slane %v2620_v50, 4  ;;  %v2642_v47 = vshrl.u32 %v13668_v20, 16  ;;  %v2645_v4 = vshll.u32 %v13668_v20, 16  ;;  %v2862_v12 = vsel %vm544_vm2, %v2860_v29, %v2861_v30  ;;  %v13713_v36 = vld [vmem:[%s12944_s12 + $0x70] sm:$0xf0] }
 0x118   : > { %v2866_v52 = vrot.slane %v13698_v27, 4  ;;  %v2867_v50 = vrot.slane %v13520_v19, 4  ;;  %v2865_v23 = vsel %vm544_vm2, %v2863_v24, %v2864_v22  ;;  %v13716_v26 = vld [vmem:[%s12944_s12 + $0x80] sm:$0xf0]  ;;  %v2869_v19 = vrot.slane %v13713_v36, 4 }
 0x119   : > { %v2623_v0 = vor.u32 %v2622_v48, %v2619_v35  ;;  %v2644_v62 = vrot.slane %v2642_v47, 3  ;;  %v2647_v40 = vrot.slane %v2645_v4, 4  ;;  %v2872_v41 = vrot.slane %v13716_v26, 4  ;;  %v13735_v35 = vld [vmem:[%s12944_s12 + $0xa0] sm:$0xf0] }
 0x11a   : > { %11073 = vmatpush3.bf16.msra.mxu1 %v12382_v21  ;;  %v2639_v21 = vrot.slane %v2637_v3, 4  ;;  %v2868_v13 = vsel %vm544_vm2, %v2866_v52, %v2867_v50  ;;  %v2873_v33 = vrot.slane %v13603_v6, 4  ;;  %v3079_v48 = vshrl.u32 %v13682_v11, 16  ;;  %v13747_v47 = vld [vmem:[%s12944_s12 + $0xb0] sm:$0xf0] }
 0x11b   : > { %11074 = vmatprep.subr.bf16.mxu1 %v12384_v31  ;;  %10907 = vmatmul.mubr.bf16.gmra.mrb[28].mxu0 %v938_v28  ;;  %v2632_v9 = vsel %vm802_vm1, %v2623_v0, %v2631_v55  ;;  %v2648_v45 = vor.u32 %v2647_v40, %v2644_v62  ;;  %v3082_v6 = vshll.u32 %v13682_v11, 16  ;;  %v2875_v28 = vrot.slane %v13732_v7, 4  ;;  %v9538_v40 = vld [vmem:[%s12944_s12 + $0x68] sm:$0x1f] }
 0x11c   : > { %v2640_v38 = vor.u32 %v2639_v21, %v2636_v60  ;;  %v2876_v42 = vrot.slane %v13635_v17, 4  ;;  %v2878_v14 = vrot.slane %v13735_v35, 4  ;;  %v2879_v3 = vrot.slane %v13649_v10, 4  ;;  %v12400_v60 = vld [vmem:[%s15173_s2 + $0x228] sm:$0xff]  }
 0x11d   : > { %11059 = vmatmul.mubr.bf16.gmra.mrb[4].mxu1 %v2581_v2  ;;  %v9536_v2 = vld [vmem:[%s12944_s12 + $0x48] sm:$0x1f]  ;;  %v3081_v4 = vrot.slane %v3079_v48, 4  ;;  %v2881_v62 = vrot.slane %v13747_v47, 4  ;;  %v2882_v10 = vrot.slane %v13668_v20, 4  ;;  %v3099_v11 = vshll.u32 %v13695_v39, 16 }
 0x11e   : > { %11075 = vmatpush3.bf16.msra.mxu1 %v12384_v31  ;;  %11062 = vmatprep.mubr.bf16.mxu1 %v2598_v58  ;;  %v2649_v25 = vsel %vm802_vm1, %v2640_v38, %v2648_v45  ;;  %v12395_v31 = vld [vmem:[%s15173_s2 + $0x200] sm:$0xff]   ;;  %v12398_v58 = vld [vmem:[%s15173_s2 + $0x218] sm:$0xff]   ;;  %v3087_v54 = vshrl.u32 %v9536_v2, 16  ;;  %v3090_v46 = vshll.u32 %v9536_v2, 16  ;;  %v2877_v17 = vsel %vm544_vm2, %v2875_v28, %v2876_v42  ;;  %v9540_v52 = vld [vmem:[%s12944_s12 + $0x88] sm:$0x1f] }
 0x11f   : > { %11076 = vmatprep.subr.bf16.mxu1 %v12386_v34  ;;  %v2880_v21 = vsel %vm544_vm2, %v2878_v14, %v2879_v3  ;;  %v3113_v29 = vshrl.u32 %v13698_v27, 16  ;;  %v3116_v30 = vshll.u32 %v13698_v27, 16  ;;  %v3124_v20 = vshll.u32 %v9538_v40, 16  ;;  %v12402_v27 = vld [vmem:[%s15173_s2 + $0x238] sm:$0xff]   ;;  %v12403_v14 = vld [vmem:[%s15173_s2 + $0x4c0] sm:$0xff]  }
 0x120   : > { %v3089_v0 = vrot.slane %v3087_v54, 4  ;;  %v3092_v55 = vrot.slane %v3090_v46, 5  ;;  %v3101_v22 = vrot.slane %v3099_v11, 5  ;;  %v3147_v2 = vshrl.u32 %v13716_v26, 16 }
 0x121   : > { %v3158_v48 = vshll.u32 %v9540_v52, 16 }
 0x122   : > { %11077 = vmatpush3.bf16.msra.mxu1 %v12386_v34  ;;  %v2870_v34 = vrot.slane %v13555_v44, 4  ;;  %v2874_v44 = vsel %vm544_vm2, %v2872_v41, %v2873_v33  ;;  %v3093_v45 = vor.u32 %v3092_v55, %v3089_v0  ;;  %v3133_v41 = vshll.u32 %v13713_v36, 16  ;;  %v9542_v0 = vld [vmem:[%s12944_s12 + $0xa8] sm:$0x1f] }
 0x123   : > { %11078 = vmatprep.subr.bf16.mxu1 %v12388_v1 }
 0x124   : > { %v2871_v59 = vsel %vm544_vm2, %v2869_v19, %v2870_v34  ;;  %v3126_v34 = vrot.slane %v3124_v20, 5 }
 0x125   : > { %11063 = vmatmul.mubr.bf16.gmra.mrb[8].mxu1 %v2615_v61  ;;  %v9537_v61 = vld [vmem:[%s12944_s12 + $0x58] sm:$0x1f] }
 0x126   : > { %11079 = vmatpush3.bf16.msra.mxu1 %v12388_v1  ;;  %11066 = vmatprep.mubr.bf16.mxu1 %v2632_v9  ;;  %v3084_v1 = vrot.slane %v3082_v6, 5  ;;  %v3096_v9 = vshrl.u32 %v13695_v39, 16  ;;  %v3104_v38 = vshrl.u32 %v9537_v61, 16  ;;  %v2883_v39 = vsel %vm544_vm2, %v2881_v62, %v2882_v10 }
 0x127   : > { %11080 = vmatprep.subr.bf16.mxu1 %v12390_v8 }
 0x128   : > { %v3098_v24 = vrot.slane %v3096_v9, 4 }
 0x12a   : > { %11081 = vmatpush3.bf16.msra.mxu1 %v12390_v8  ;;  %v3085_v8 = vor.u32 %v3084_v1, %v3081_v4  ;;  %v3102_v6 = vor.u32 %v3101_v22, %v3098_v24  ;;  %v3149_v4 = vrot.slane %v3147_v2, 4  ;;  %v12405_v24 = vld [vmem:[%s15173_s2 + $0x4d0] sm:$0xff]   ;;  %v13804_v22 = vld [vmem:[%s12944_s12] sm:$0xf0]  ;;  %v13826_v2 = vld [vmem:[%s12944_s12 + $0x28] sm:$0xf] }
 0x12b   : > { %11082 = vmatprep.subr.bf16.mxu1 %v12392_v16 }
 0x12c   : > { %v3094_v50 = vsel %vm1334_vm0, %v3085_v8, %v3093_v45  ;;  %v3181_v8 = vshrl.u32 %v13735_v35, 16  ;;  %v3189_v45 = vshrl.u32 %v9542_v0, 16 }
 0x12d   : > { %11067 = vmatmul.mubr.bf16.gmra.mrb[12].mxu1 %v2649_v25  ;;  %v3121_v25 = vshrl.u32 %v9538_v40, 16 }
 0x12e   : > { %11083 = vmatpush3.bf16.msra.mxu1 %v12392_v16  ;;  %11086 = vmatprep.mubr.bf16.mxu1 %v2862_v12  ;;  %v3107_v16 = vshll.u32 %v9537_v61, 16  ;;  %v9539_v12 = vld [vmem:[%s12944_s12 + $0x78] sm:$0x1f]  ;;  %v3160_v61 = vrot.slane %v3158_v48, 5 }
 0x12f   : > { %11084 = vmatprep.subr.bf16.mxu1 %v12394_v5  ;;  %v3123_v19 = vrot.slane %v3121_v25, 4  ;;  %v3138_v33 = vshrl.u32 %v9539_v12, 16 }
 0x131   : > { %v3127_v28 = vor.u32 %v3126_v34, %v3123_v19  ;;  %v3140_v3 = vrot.slane %v3138_v33, 4  ;;  %v3191_v19 = vrot.slane %v3189_v45, 4  ;;  %v13816_v34 = vld [vmem:[%s12944_s12 + $0x18] sm:$0xf]  ;;  %v13879_v45 = vld [vmem:[%s12944_s12 + $0x68] sm:$0xf] }
 0x132   : > { %11085 = vmatpush3.bf16.msra.mxu1 %v12394_v5  ;;  %v12401_v5 = vld [vmem:[%s15173_s2 + $0x230] sm:$0xff]  }
 0x133   : > { %11102 = vmatprep.subr.bf16.mxu1 %v12395_v31 }
 0x135   : > { %11087 = vmatmul.mubr.bf16.vlgmr.msra.gmra.mrb[0].mxu1 %v2865_v23  ;;  %v3109_v23 = vrot.slane %v3107_v16, 5  ;;  %v9543_v16 = vld [vmem:[%s12944_s12 + $0xb8] sm:$0x1f] }
 0x136   : > { %11103 = vmatpush3.bf16.msra.mxu1 %v12395_v31  ;;  %11090 = vmatprep.mubr.bf16.mxu1 %v2868_v13  ;;  %v3106_v31 = vrot.slane %v3104_v38, 4  ;;  %v3118_v13 = vrot.slane %v3116_v30, 5  ;;  %v3184_v38 = vshll.u32 %v13735_v35, 16  ;;  %v3192_v35 = vshll.u32 %v9542_v0, 16  ;;  %v13857_v0 = vld [vmem:[%s12944_s12 + $0x48] sm:$0xf] }
 0x137   : > { %11104 = vmatprep.subr.bf16.mxu1 %v12396_v32  ;;  %v15198_v53 = vrot.slane %v13857_v0, 4  ;;  %v6641_v0 = vshrl.u32 %v6601_v43, 16 }
 0x138   : > { %v3110_v54 = vor.u32 %v3109_v23, %v3106_v31  ;;  %v13806_v31 = vrot.slane %v3181_v8, 4  ;;  %v13810_v23 = vld [vmem:[%s12944_s12 + $0x8] sm:$0xf] }
 0x13a   : > { %11105 = vmatpush3.bf16.msra.mxu1 %v12396_v32  ;;  %v3115_v32 = vrot.slane %v3113_v29, 4  ;;  %v3111_v10 = vsel %vm1334_vm0, %v3102_v6, %v3110_v54  ;;  %v12406_v54 = vld [vmem:[%s15173_s2 + $0x4d8] sm:$0xff]  }
 0x13b   : > { %11106 = vmatprep.subr.bf16.mxu1 %v12397_v51 }
 0x13c   : > { %v3119_v46 = vor.u32 %v3118_v13, %v3115_v32  ;;  %v13813_v32 = vld [vmem:[%s12944_s12 + $0x10] sm:$0xf0]  ;;  %v3186_v13 = vrot.slane %v3184_v38, 5 }
 0x13d   : > { %11091 = vmatmul.mubr.bf16.gmra.mrb[4].mxu1 %v2871_v59  ;;  %v3141_v59 = vshll.u32 %v9539_v12, 16 }
 0x13e   : > { %11107 = vmatpush3.bf16.msra.mxu1 %v12397_v51  ;;  %11094 = vmatprep.mubr.bf16.mxu1 %v2874_v44  ;;  %v3130_v51 = vshrl.u32 %v13713_v36, 16  ;;  %v3155_v44 = vshrl.u32 %v9540_v52, 16  ;;  %v3135_v36 = vrot.slane %v3133_v41, 5  ;;  %v3128_v40 = vsel %vm1334_vm0, %v3119_v46, %v3127_v28 }
 0x13f   : > { %11108 = vmatprep.subr.bf16.mxu1 %v12398_v58  ;;  %v3201_v52 = vshll.u32 %v13747_v47, 16  ;;  %v6259_v46 = vrot.slane %v13804_v22, 4  ;;  %v6260_v28 = vrot.slane %v13810_v23, 4 }
 0x140   : > { %v3132_v42 = vrot.slane %v3130_v51, 4  ;;  %v3157_v55 = vrot.slane %v3155_v44, 4  ;;  %v13819_v51 = vld [vmem:[%s12944_s12 + $0x20] sm:$0xf0] }
 0x141   : > { %v13831_v44 = vrot.slane %v3201_v52, 5 }
 0x142   : > { %11109 = vmatpush3.bf16.msra.mxu1 %v12398_v58  ;;  %v3150_v58 = vshll.u32 %v13716_v26, 16  ;;  %v3143_v26 = vrot.slane %v3141_v59, 5  ;;  %v3136_v9 = vor.u32 %v3135_v36, %v3132_v42  ;;  %v3161_v30 = vor.u32 %v3160_v61, %v3157_v55  ;;  %v13860_v55 = vld [vmem:[%s12944_s12 + $0x50] sm:$0xf0] }
 0x143   : > { %11110 = vmatprep.subr.bf16.mxu1 %v12399_v57  ;;  %v6262_v42 = vrot.slane %v13813_v32, 4  ;;  %v6263_v36 = vrot.slane %v13816_v34, 4 }
 0x144   : > { %v3152_v1 = vrot.slane %v3150_v58, 5  ;;  %v3144_v11 = vor.u32 %v3143_v26, %v3140_v3  ;;  %v13829_v58 = vld [vmem:[%s12944_s12 + $0x30] sm:$0xf0]  ;;  %v6266_v3 = vrot.slane %v13826_v2, 4 }
 0x145   : > { %11095 = vmatmul.mubr.bf16.gmra.mrb[8].mxu1 %v2877_v17  ;;  %v3164_v17 = vshrl.u32 %v13732_v7, 16  ;;  %v6268_v26 = vrot.slane %v13829_v58, 4 }
 0x146   : > { %11111 = vmatpush3.bf16.msra.mxu1 %v12399_v57  ;;  %11098 = vmatprep.mubr.bf16.mxu1 %v2880_v21  ;;  %v9541_v57 = vld [vmem:[%s12944_s12 + $0x98] sm:$0x1f]  ;;  %v3153_v29 = vor.u32 %v3152_v1, %v3149_v4  ;;  %v3145_v41 = vsel %vm1334_vm0, %v3136_v9, %v3144_v11  ;;  %v13851_v4 = vld [vmem:[%s12944_s12 + $0x40] sm:$0xf0] }
 0x147   : > { %11112 = vmatprep.subr.bf16.mxu1 %v12400_v60  ;;  %v3172_v21 = vshrl.u32 %v9541_v57, 16  ;;  %v3175_v62 = vshll.u32 %v9541_v57, 16  ;;  %v13791_v25 = vrot.slane %v3164_v17, 4  ;;  %v6265_v57 = vrot.slane %v13819_v51, 4  ;;  %v12407_v1 = vld [vmem:[%s15173_s2 + $0x4e0] sm:$0xff]   ;;  %v12413_v51 = vld [vmem:[%s15173_s2 + $0x490] sm:$0xff]  }
 0x148   : > { %v3162_v33 = vsel %vm1334_vm0, %v3153_v29, %v3161_v30  ;;  %v6049_v9 = vld [vmem:[%s12944_s12] sm:$0xfc]  ;;  %v6063_v29 = vld [vmem:[%s12944_s12 + $0x70] sm:$0xfc] }
 0x149   : > { %v13797_v12 = vrot.slane %v3175_v62, 5  ;;  %v3187_v62 = vor.u32 %v3186_v13, %v13806_v31  ;;  %v6598_v11 = vld [vmem:[%s12944_s12] sm:$0xe0] }
 0x14a   : > { %11113 = vmatpush3.bf16.msra.mxu1 %v12400_v60  ;;  %v3167_v60 = vshll.u32 %v13732_v7, 16  ;;  %v12404_v7 = vld [vmem:[%s15173_s2 + $0x4c8] sm:$0xff]   ;;  %v6619_v37 = vshll.u32 %v6598_v11, 16 }
 0x14b   : > { %11114 = vmatprep.subr.bf16.mxu1 %v12401_v5 }
 0x14c   : > { %v13793_v20 = vrot.slane %v3167_v60, 5  ;;  %v13867_v60 = vld [vmem:[%s12944_s12 + $0x58] sm:$0xf] }
 0x14d   : > { %11099 = vmatmul.mubr.bf16.gmra.mrb[12].mxu1 %v2883_v39  ;;  %v3198_v39 = vshrl.u32 %v13747_v47, 16  ;;  %v3194_v47 = vrot.slane %v3192_v35, 5  ;;  %v6070_v35 = vshll.u32 %v6049_v9, 16 }
 0x14e   : > { %11115 = vmatpush3.bf16.msra.mxu1 %v12401_v5  ;;  %11118 = vmatprep.mubr.bf16.mxu1 %v3094_v50  ;;  %v13795_v5 = vrot.slane %v3172_v21, 4  ;;  %v3209_v50 = vshll.u32 %v9543_v16, 16  ;;  %v3170_v61 = vor.u32 %v13793_v20, %v13791_v25  ;;  %v13870_v21 = vld [vmem:[%s12944_s12 + $0x60] sm:$0xf0]  ;;  %v13888_v25 = vld [vmem:[%s12944_s12 + $0x70] sm:$0xf0] }
 0x14f   : > { %11116 = vmatprep.subr.bf16.mxu1 %v12402_v27  ;;  %v13823_v59 = vrot.slane %v3198_v39, 4  ;;  %v13891_v20 = vld [vmem:[%s12944_s12 + $0x78] sm:$0xf]  ;;  %v6051_v39 = vld [vmem:[%s12944_s12 + $0x10] sm:$0xfc] }
 0x150   : > { %v13835_v6 = vrot.slane %v3209_v50, 5  ;;  %v3178_v17 = vor.u32 %v13797_v12, %v13795_v5  ;;  %v6067_v12 = vshrl.u32 %v6049_v9, 16  ;;  %v6055_v9 = vld [vmem:[%s12944_s12 + $0x30] sm:$0xfc] }
 0x151   : > { %v3204_v50 = vor.u32 %v13831_v44, %v13823_v59  ;;  %v12409_v59 = vld [vmem:[%s15173_s2 + $0x4f0] sm:$0xff]  }
 0x152   : > { %11117 = vmatpush3.bf16.msra.mxu1 %v12402_v27  ;;  %v3206_v27 = vshrl.u32 %v9543_v16, 16  ;;  %v6050_v16 = vld [vmem:[%s12944_s12 + $0x8] sm:$0x7]  ;;  %v3179_v5 = vsel %vm1334_vm0, %v3170_v61, %v3178_v17 }
 0x153   : > { %11518 = vmatprep.subr.bf16.mxu1 %v12403_v14  ;;  %v6075_v31 = vshrl.u32 %v6050_v16, 16  ;;  %v6078_v52 = vshll.u32 %v6050_v16, 16  ;;  %v6054_v61 = vld [vmem:[%s12944_s12 + $0x28] sm:$0x7]  ;;  %v13912_v16 = vrot.slane %v6070_v35, 3  ;;  %v6261_v35 = vsel %vm544_vm2, %v6259_v46, %v6260_v28 }
 0x154   : > { %v13833_v48 = vrot.slane %v3206_v27, 4  ;;  %v6052_v27 = vld [vmem:[%s12944_s12 + $0x18] sm:$0x7]  ;;  %v6121_v46 = vshll.u32 %v6055_v9, 16 }
 0x155   : > { %11119 = vmatmul.mubr.bf16.vlgmr.msra.gmra.mrb[0].mxu1 %v3111_v10  ;;  %v3195_v10 = vor.u32 %v3194_v47, %v3191_v19  ;;  %v6053_v19 = vld [vmem:[%s12944_s12 + $0x20] sm:$0xfc]  ;;  %v6084_v47 = vshrl.u32 %v6051_v39, 16  ;;  %v6095_v17 = vshll.u32 %v6052_v27, 16 }
 0x156   : > { %11122 = vmatprep.mubr.bf16.mxu1 %v3128_v40  ;;  %11519 = vmatpush3.bf16.msra.mxu1 %v12403_v14  ;;  %v13846_v14 = vld [vmem:[%s12944_s12 + $0x38] sm:$0xf]  ;;  %v3212_v13 = vor.u32 %v13835_v6, %v13833_v48  ;;  %v13909_v48 = vrot.slane %v6067_v12, 2  ;;  %v6092_v6 = vshrl.u32 %v6052_v27, 16  ;;  %v6118_v27 = vshrl.u32 %v6055_v9, 16 }
 0x157   : > { %11520 = vmatprep.subr.bf16.mxu1 %v12404_v7  ;;  %v6269_v40 = vrot.slane %v13846_v14, 4  ;;  %v6056_v12 = vld [vmem:[%s12944_s12 + $0x38] sm:$0x7]  ;;  %v13959_v30 = vrot.slane %v6121_v46, 3 }
 0x158   : > { %v3213_v44 = vsel %vm1334_vm0, %v3204_v50, %v3212_v13  ;;  %v6126_v28 = vshrl.u32 %v6056_v12, 16  ;;  %v6129_v50 = vshll.u32 %v6056_v12, 16  ;;  %v12411_v13 = vld [vmem:[%s15173_s2 + $0x480] sm:$0xff]   ;;  %v6060_v9 = vld [vmem:[%s12944_s12 + $0x58] sm:$0x7] }
 0x159   : > { %v6061_v12 = vld [vmem:[%s12944_s12 + $0x60] sm:$0xfc] }
 0x15a   : > { %11521 = vmatpush3.bf16.msra.mxu1 %v12404_v7  ;;  %v12408_v7 = vld [vmem:[%s15173_s2 + $0x4e8] sm:$0xff]   ;;  %v6169_v38 = vshrl.u32 %v6061_v12, 16  ;;  %v6172_v8 = vshll.u32 %v6061_v12, 16 }
 0x15b   : > { %11522 = vmatprep.subr.bf16.mxu1 %v12405_v24 }
 0x15d   : > { %11123 = vmatmul.mubr.bf16.gmra.mrb[4].mxu1 %v3145_v41  ;;  %v6163_v41 = vshll.u32 %v6060_v9, 16 }
 0x15e   : > { %11126 = vmatprep.mubr.bf16.mxu1 %v3162_v33  ;;  %11523 = vmatpush3.bf16.msra.mxu1 %v12405_v24  ;;  %v3196_v24 = vsel %vm1334_vm0, %v3187_v62, %v3195_v10  ;;  %v6101_v62 = vshrl.u32 %v6053_v19, 16  ;;  %v6104_v10 = vshll.u32 %v6053_v19, 16  ;;  %v12410_v19 = vld [vmem:[%s15173_s2 + $0x4f8] sm:$0xff]  }
 0x15f   : > { %11524 = vmatprep.subr.bf16.mxu1 %v12406_v54 }
 0x160   : > { %v13939_v23 = vrot.slane %v6104_v10, 3  ;;  %v13949_v10 = vrot.slane %v6118_v27, 2  ;;  %v12412_v27 = vld [vmem:[%s15173_s2 + $0x488] sm:$0xff]  }
 0x162   : > { %11525 = vmatpush3.bf16.msra.mxu1 %v12406_v54  ;;  %v6087_v54 = vshll.u32 %v6051_v39, 16  ;;  %v6109_v39 = vshrl.u32 %v6054_v61, 16 }
 0x163   : > { %11526 = vmatprep.subr.bf16.mxu1 %v12407_v1 }
 0x164   : > { %v13920_v33 = vrot.slane %v6087_v54, 3  ;;  %v13935_v54 = vrot.slane %v6095_v17, 3  ;;  %v13941_v22 = vrot.slane %v6109_v39, 2  ;;  %v6059_v39 = vld [vmem:[%s12944_s12 + $0x50] sm:$0xfc] }
 0x165   : > { %11127 = vmatmul.mubr.bf16.gmra.mrb[8].mxu1 %v3179_v5  ;;  %v13914_v5 = vrot.slane %v6075_v31, 2  ;;  %v6112_v31 = vshll.u32 %v6054_v61, 16  ;;  %v6058_v61 = vld [vmem:[%s12944_s12 + $0x48] sm:$0x7]  ;;  %v6155_v46 = vshll.u32 %v6059_v39, 16 }
 0x166   : > { %11130 = vmatprep.mubr.bf16.mxu1 %v3196_v24  ;;  %11527 = vmatpush3.bf16.msra.mxu1 %v12407_v1  ;;  %v13916_v1 = vrot.slane %v6078_v52, 3  ;;  %v13918_v24 = vrot.slane %v6084_v47, 2  ;;  %v6057_v52 = vld [vmem:[%s12944_s12 + $0x40] sm:$0xfc]  ;;  %v13933_v47 = vrot.slane %v6092_v6, 2 }
 0x167   : > { %11528 = vmatprep.subr.bf16.mxu1 %v12408_v7  ;;  %v6135_v6 = vshrl.u32 %v6057_v52, 16  ;;  %v6138_v17 = vshll.u32 %v6057_v52, 16  ;;  %v13966_v52 = vrot.slane %v6129_v50, 3  ;;  %v6267_v50 = vsel %vm544_vm2, %v6265_v57, %v6266_v3 }
 0x168   : > { %v6189_v57 = vshll.u32 %v6063_v29, 16  ;;  %v13990_v12 = vrot.slane %v6155_v46, 3  ;;  %v12414_v46 = vld [vmem:[%s15173_s2 + $0x498] sm:$0xff]  }
 0x169   : > { %v13968_v34 = vrot.slane %v6135_v6, 2  ;;  %v13970_v32 = vrot.slane %v6138_v17, 3 }
 0x16a   : > { %11529 = vmatpush3.bf16.msra.mxu1 %v12408_v7  ;;  %v13937_v7 = vrot.slane %v6101_v62, 2  ;;  %v13947_v62 = vrot.slane %v6112_v31, 3  ;;  %v6146_v31 = vshll.u32 %v6058_v61, 16  ;;  %v14016_v58 = vrot.slane %v6189_v57, 3  ;;  %v12415_v57 = vld [vmem:[%s15173_s2 + $0x4a0] sm:$0xff]  }
 0x16b   : > { %11530 = vmatprep.subr.bf16.mxu1 %v12409_v59 }
 0x16c   : > { %v13982_v17 = vrot.slane %v6146_v31, 3  ;;  %v12444_v31 = vld [vmem:[#allocation4 + $0x40] sm:$0xff]  }
 0x16d   : > { %11131 = vmatmul.mubr.bf16.gmra.mrb[12].mxu1 %v3213_v44  ;;  %v6264_v44 = vsel %vm544_vm2, %v6262_v42, %v6263_v36  ;;  %v6152_v42 = vshrl.u32 %v6059_v39, 16  ;;  %v6062_v36 = vld [vmem:[%s12944_s12 + $0x68] sm:$0x7]  ;;  %11134 = vmatprep.subr.bf16.mxu0 %v12444_v31 }
 0x16e   : > { %11531 = vmatpush3.bf16.msra.mxu1 %v12409_v59  ;;  %11534 = vmatprep.mubr.bf16.mxu1 %v6261_v35  ;;  %v13961_v59 = vrot.slane %v6126_v28, 2  ;;  %v6143_v35 = vshrl.u32 %v6058_v61, 16  ;;  %v6160_v28 = vshrl.u32 %v6060_v9, 16  ;;  %v6064_v61 = vld [vmem:[%s12944_s12 + $0x78] sm:$0x7]  ;;  %v6180_v39 = vshll.u32 %v6062_v36, 16 }
 0x16f   : > { %11532 = vmatprep.subr.bf16.mxu1 %v12410_v19  ;;  %v6186_v9 = vshrl.u32 %v6063_v29, 16  ;;  %v13988_v2 = vrot.slane %v6152_v42, 2  ;;  %v6194_v3 = vshrl.u32 %v6064_v61, 16  ;;  %v6270_v42 = vsel %vm544_vm2, %v6268_v26, %v6269_v40  ;;  %11135 = vmatpush3.bf16.msra.mxu0 %v12444_v31  ;;  %v12416_v31 = vld [vmem:[%s15173_s2 + $0x4a8] sm:$0xff]  }
 0x170   : > { %v13980_v6 = vrot.slane %v6143_v35, 2  ;;  %v6197_v35 = vshll.u32 %v6064_v61, 16  ;;  %v6616_v29 = vshrl.u32 %v6598_v11, 16  ;;  %v6600_v61 = vld [vmem:[%s12944_s12 + $0x10] sm:$0xe0] }
 0x171   : > { %v14014_v14 = vrot.slane %v6186_v9, 2  ;;  %v14018_v26 = vrot.slane %v6194_v3, 2  ;;  %v6633_v9 = vshrl.u32 %v6600_v61, 16  ;;  %v6636_v3 = vshll.u32 %v6600_v61, 16 }
 0x172   : > { %11533 = vmatpush3.bf16.msra.mxu1 %v12410_v19  ;;  %v6177_v19 = vshrl.u32 %v6062_v36, 16  ;;  %v13994_v36 = vrot.slane %v6163_v41, 3  ;;  %v14008_v41 = vrot.slane %v6172_v8, 3  ;;  %v14020_v40 = vrot.slane %v6197_v35, 3  ;;  %v12446_v35 = vld [vmem:[#allocation4 + $0x48] sm:$0xff]  }
 0x173   : > { %11550 = vmatprep.subr.bf16.mxu1 %v12411_v13  ;;  %v15199_v8 = vrot.slane %v13851_v4, 4  ;;  %v14028_v18 = vrot.slane %v6616_v29, 5  ;;  %11136 = vmatprep.subr.bf16.mxu0 %v12446_v35  ;;  %v6644_v61 = vshll.u32 %v6601_v43, 16  ;;  %v14062_v43 = vrot.slane %v6641_v0, 5 }
 0x174   : > { %11137 = vmatpush3.bf16.msra.mxu0 %v12446_v35  ;;  %v12452_v35 = vld [vmem:[#allocation4 + $0x60] sm:$0xff]   ;;  %v15205_v0 = vrot.slane %v13888_v25, 4  ;;  %v6098_v25 = vor.u32 %v13935_v54, %v13933_v47  ;;  %v6124_v47 = vor.u32 %v13959_v30, %v13949_v10  ;;  %v6132_v54 = vor.u32 %v13966_v52, %v13961_v59  ;;  %v12422_v30 = vld [vmem:[%s15173_s2 + $0x518] sm:$0xff]   ;;  %v14117_v10 = vld [vmem:[%s12944_s12 + $0x30] sm:$0xe0] }
 0x175   : > { %11535 = vmatmul.mubr.bf16.vlgmr.msra.gmra.mrb[16].mxu1 %v6264_v44  ;;  %v13992_v44 = vrot.slane %v6160_v28, 2  ;;  %v14012_v28 = vrot.slane %v6180_v39, 3 }
 0x176   : > { %11551 = vmatpush3.bf16.msra.mxu1 %v12411_v13  ;;  %11538 = vmatprep.mubr.bf16.mxu1 %v6267_v50  ;;  %v13996_v13 = vrot.slane %v6169_v38, 2  ;;  %v6599_v50 = vld [vmem:[%s12944_s12 + $0x8] sm:$0x3f]  ;;  %v14010_v38 = vrot.slane %v6177_v19, 2  ;;  %v6273_v19 = vsel %vm544_vm2, %v15199_v8, %v15198_v53  ;;  %v15202_v8 = vrot.slane %v13879_v45, 4 }
 0x177   : > { %11552 = vmatprep.subr.bf16.mxu1 %v12412_v27  ;;  %v6624_v11 = vshrl.u32 %v6599_v50, 16  ;;  %v6627_v39 = vshll.u32 %v6599_v50, 16  ;;  %v14043_v50 = vld [vmem:[%s12944_s12 + $0x20] sm:$0xe0]  ;;  %v14064_v45 = vrot.slane %v6644_v61, 6  ;;  %v6133_v59 = vsel %vm6065_vm3, %v6124_v47, %v6132_v54  ;;  %v12425_v54 = vld [vmem:[%s15173_s2 + $0x530] sm:$0xff]  }
 0x178   : > { %v6653_v52 = vshll.u32 %v14043_v50, 16  ;;  %v6200_v47 = vor.u32 %v14020_v40, %v14018_v26 }
 0x179   : > { %v14035_v4 = vrot.slane %v6624_v11, 5  ;;  %v14037_v53 = vrot.slane %v6627_v39, 6  ;;  %v12450_v11 = vld [vmem:[#allocation4 + $0x58] sm:$0xff]  }
 0x17a   : > { %11553 = vmatpush3.bf16.msra.mxu1 %v12412_v27  ;;  %v14030_v27 = vrot.slane %v6619_v37, 6  ;;  %v12448_v37 = vld [vmem:[#allocation4 + $0x50] sm:$0xff]  }
 0x17b   : > { %11554 = vmatprep.subr.bf16.mxu1 %v12413_v51  ;;  %11138 = vmatprep.subr.bf16.mxu0 %v12448_v37 }
 0x17c   : > { %11139 = vmatpush3.bf16.msra.mxu0 %v12448_v37  ;;  %v6073_v37 = vor.u32 %v13912_v16, %v13909_v48  ;;  %v12419_v48 = vld [vmem:[%s15173_s2 + $0x500] sm:$0xff]   ;;  %v6090_v16 = vor.u32 %v13920_v33, %v13918_v24  ;;  %v12421_v24 = vld [vmem:[%s15173_s2 + $0x510] sm:$0xff]  }
 0x17d   : > { %11539 = vmatmul.mubr.bf16.gmra.mrb[20].mxu1 %v6270_v42  ;;  %v15201_v42 = vrot.slane %v13860_v55, 4  ;;  %v14060_v55 = vrot.slane %v6636_v3, 6  ;;  %11140 = vmatprep.subr.bf16.mxu0 %v12450_v11  ;;  %v15204_v3 = vrot.slane %v13891_v20, 4  ;;  %v6107_v20 = vor.u32 %v13939_v23, %v13937_v7  ;;  %v6603_v7 = vld [vmem:[%s12944_s12 + $0x28] sm:$0x3f] }
 0x17e   : > { %11555 = vmatpush3.bf16.msra.mxu1 %v12413_v51  ;;  %11542 = vmatprep.mubr.bf16.mxu1 %v6273_v19  ;;  %v15200_v51 = vrot.slane %v13867_v60, 4  ;;  %v15203_v19 = vrot.slane %v13870_v21, 4  ;;  %v12417_v60 = vld [vmem:[%s15173_s2 + $0x4b0] sm:$0xff]   ;;  %v6650_v21 = vshrl.u32 %v14043_v50, 16  ;;  %v14107_v23 = vld [vmem:[%s15175_s4] ss:$0 sm:$0xff] }
 0x17f   : > { %11556 = vmatprep.subr.bf16.mxu1 %v12414_v46 }
 0x180   : > { %v6276_v29 = vsel %vm544_vm2, %v15201_v42, %v15200_v51  ;;  %v6279_v39 = vsel %vm544_vm2, %v15203_v19, %v15202_v8  ;;  %11141 = vmatpush3.bf16.msra.mxu0 %v12450_v11  ;;  %v6282_v51 = vsel %vm544_vm2, %v15205_v0, %v15204_v3  ;;  %v6658_v11 = vshrl.u32 %v6603_v7, 16 }
 0x181   : > { %11142 = vmatprep.subr.bf16.mxu0 %v12452_v35  ;;  %v6158_v19 = vor.u32 %v13990_v12, %v13988_v2  ;;  %v6175_v2 = vor.u32 %v14008_v41, %v13996_v13  ;;  %v6183_v12 = vor.u32 %v14012_v28, %v14010_v38  ;;  %v6670_v41 = vshll.u32 %v14117_v10, 16 }
 0x182   : > { %11557 = vmatpush3.bf16.msra.mxu1 %v12414_v46  ;;  %v14058_v46 = vrot.slane %v6633_v9, 5  ;;  %v6081_v9 = vor.u32 %v13916_v1, %v13914_v5  ;;  %v6115_v5 = vor.u32 %v13947_v62, %v13941_v22  ;;  %v12420_v1 = vld [vmem:[%s15173_s2 + $0x508] sm:$0xff]   ;;  %v6141_v22 = vor.u32 %v13970_v32, %v13968_v34 }
 0x183   : > { %11558 = vmatprep.subr.bf16.mxu1 %v12415_v57  ;;  %v6149_v62 = vor.u32 %v13982_v17, %v13980_v6  ;;  %v6661_v6 = vshll.u32 %v6603_v7, 16  ;;  %v6184_v50 = vsel %vm6065_vm3, %v6175_v2, %v6183_v12  ;;  %v6622_v7 = vor.u32 %v14030_v27, %v14028_v18 }
 0x184   : > { %v6082_v42 = vsel %vm6065_vm3, %v6073_v37, %v6081_v9  ;;  %11143 = vmatpush3.bf16.msra.mxu0 %v12452_v35  ;;  %v6116_v33 = vsel %vm6065_vm3, %v6107_v20, %v6115_v5  ;;  %v6166_v9 = vor.u32 %v13994_v36, %v13992_v44  ;;  %v12424_v36 = vld [vmem:[%s15173_s2 + $0x528] sm:$0xff]  }
 0x185   : > { %11543 = vmatmul.mubr.bf16.gmra.mrb[24].mxu1 %v6276_v29  ;;  %v6150_v61 = vsel %vm6065_vm3, %v6141_v22, %v6149_v62  ;;  %v6630_v62 = vor.u32 %v14037_v53, %v14035_v4  ;;  %v6647_v53 = vor.u32 %v14064_v45, %v14062_v43  ;;  %v14195_v43 = vrot.slane %v6670_v41, 6 }
 0x186   : > { %11559 = vmatpush3.bf16.msra.mxu1 %v12415_v57  ;;  %11546 = vmatprep.mubr.bf16.mxu1 %v6279_v39  ;;  %v12418_v57 = vld [vmem:[%s15173_s2 + $0x4b8] sm:$0xff]   ;;  %v12423_v39 = vld [vmem:[%s15173_s2 + $0x520] sm:$0xff]   ;;  %v6167_v13 = vsel %vm6065_vm3, %v6158_v19, %v6166_v9  ;;  %v14203_v9 = vld [vmem:[%s12944_s12 + $0x50] sm:$0xe0] }
 0x187   : > { %11560 = vmatprep.subr.bf16.mxu1 %v12416_v31  ;;  %v6631_v4 = vsel %vm6614_vm4, %v6622_v7, %v6630_v62 }
 0x18a   : > { %11561 = vmatpush3.bf16.msra.mxu1 %v12416_v31  ;;  %v6099_v31 = vsel %vm6065_vm3, %v6090_v16, %v6098_v25  ;;  %v6605_v16 = vld [vmem:[%s12944_s12 + $0x38] sm:$0x3f] }
 0x18b   : > { %11562 = vmatprep.subr.bf16.mxu1 %v12417_v60 }
 0x18d   : > { %11547 = vmatmul.mubr.bf16.gmra.mrb[28].mxu1 %v6282_v51  ;;  %v14140_v51 = vrot.slane %v6650_v21, 5  ;;  %v14155_v21 = vrot.slane %v6658_v11, 5 }
 0x18e   : > { %11563 = vmatpush3.bf16.msra.mxu1 %v12417_v60  ;;  %11566 = vmatprep.mubr.bf16.mxu1 %v6082_v42  ;;  %v10832_v29 = vpop.f32.mrb[0].mxu0 }
 0x18f   : > { %11564 = vmatprep.subr.bf16.mxu1 %v12418_v57  ;;  %v689_v34 = vadd.f32 %v10832_v29, %v14107_v23  ;;  %v680_v32 = vpop.f32.mrb[1].mxu0  ;;  %v6639_v29 = vor.u32 %v14060_v55, %v14058_v46  ;;  %v12426_v46 = vld [vmem:[%s15173_s2 + $0x538] sm:$0xff]  }
 0x190   : > { %v681_v17 = vadd.f32 %v14107_v23, %v680_v32  ;;  %v10833_v8 = vpop.f32.mrb[2].mxu0  ;;  %v6607_v32 = vld [vmem:[%s12944_s12 + $0x48] sm:$0x3f] }
 0x191   : > { %v745_v60 = vmax.f32 %v689_v34, 0.0  ;;  %v692_v35 = vadd.f32 %v10833_v8, %v14107_v23  ;;  %v683_v37 = vpop.f32.mrb[3].mxu0  ;;  %v6692_v2 = vshrl.u32 %v6607_v32, 16 }
 0x192   : > { %11565 = vmatpush3.bf16.msra.mxu1 %v12418_v57  ;;  %v6667_v57 = vshrl.u32 %v14117_v10, 16  ;;  %v743_v3 = vmax.f32 %v681_v17, 0.0  ;;  %v684_v0 = vadd.f32 %v14107_v23, %v683_v37 }
 0x193   : > { %11582 = vmatprep.subr.bf16.mxu1 %v12419_v48  ;;  %v746_v42 = vmax.f32 %v692_v35, 0.0 }
 0x194   : > { %v744_v44 = vmax.f32 %v684_v0, 0.0  ;;  %v14183_v34 = vrot.slane %v6667_v57, 5 }
 0x195   : > { %11567 = vmatmul.mubr.bf16.vlgmr.msra.gmra.mrb[16].mxu1 %v6099_v31  ;;  %v14148_v25 = vpack.c.bf16 %v746_v42, %v745_v60  ;;  %v14160_v31 = vrot.slane %v6661_v6, 6 }
 0x196   : > { %11583 = vmatpush3.bf16.msra.mxu1 %v12419_v48  ;;  %11570 = vmatprep.mubr.bf16.mxu1 %v6116_v33  ;;  %v14142_v48 = vrot.slane %v6653_v52, 6  ;;  %v14152_v38 = vpack.c.bf16 %v744_v44, %v743_v3  ;;  %v10836_v28 = vpop.f32.mrb[4].mxu0  ;;  %v6678_v52 = vshll.u32 %v6605_v16, 16 }
 0x197   : > { %11584 = vmatprep.subr.bf16.mxu1 %v12420_v1  ;;  %v705_v20 = vadd.f32 %v10836_v28, %v14107_v23  ;;  %v696_v5 = vpop.f32.mrb[5].mxu0  ;;  %v6664_v8 = vor.u32 %v14160_v31, %v14155_v21  ;;  %v12458_v28 = vld [vmem:[#allocation4 + $0x78] sm:$0xff]  }
 0x198   : > { %v697_v33 = vadd.f32 %v14107_v23, %v696_v5  ;;  %v6656_v55 = vor.u32 %v14142_v48, %v14140_v51  ;;  %v14200_v35 = vrot.slane %v6678_v52, 6  ;;  %v6695_v48 = vshll.u32 %v6607_v32, 16  ;;  %v6609_v5 = vld [vmem:[%s12944_s12 + $0x58] sm:$0x3f]  ;;  %v6612_v32 = vld [vmem:[%s12944_s12 + $0x70] sm:$0xe0] }
 0x199   : > { %v749_v22 = vmax.f32 %v705_v20, 0.0  ;;  %v6673_v20 = vor.u32 %v14195_v43, %v14183_v34 }
 0x19a   : > { %11585 = vmatpush3.bf16.msra.mxu1 %v12420_v1  ;;  %v6192_v1 = vor.u32 %v14016_v58, %v14014_v14  ;;  %v747_v10 = vmax.f32 %v697_v33, 0.0  ;;  %v6665_v21 = vsel %vm6614_vm4, %v6656_v55, %v6664_v8 }
 0x19b   : > { %11586 = vmatprep.subr.bf16.mxu1 %v12421_v24 }
 0x19c   : > { %v6201_v27 = vsel %vm6065_vm3, %v6192_v1, %v6200_v47  ;;  %v6610_v47 = vld [vmem:[%s12944_s12 + $0x60] sm:$0xe0] }
 0x19d   : > { %11571 = vmatmul.mubr.bf16.gmra.mrb[20].mxu1 %v6133_v59  ;;  %v12454_v59 = vld [vmem:[#allocation4 + $0x68] sm:$0xff]  }
 0x19e   : > { %11587 = vmatpush3.bf16.msra.mxu1 %v12421_v24  ;;  %11574 = vmatprep.mubr.bf16.mxu1 %v6150_v61  ;;  %v10837_v24 = vpop.f32.mrb[6].mxu0  ;;  %v6606_v61 = vld [vmem:[%s12944_s12 + $0x40] sm:$0xe0] }
 0x19f   : > { %11588 = vmatprep.subr.bf16.mxu1 %v12422_v30  ;;  %v708_v14 = vadd.f32 %v10837_v24, %v14107_v23  ;;  %v699_v58 = vpop.f32.mrb[7].mxu0  ;;  %11144 = vmatprep.subr.bf16.mxu0 %v12454_v59  ;;  %v6684_v37 = vshrl.u32 %v6606_v61, 16  ;;  %v6687_v0 = vshll.u32 %v6606_v61, 16  ;;  %v6721_v61 = vshll.u32 %v6610_v47, 16 }
 0x1a0   : > { %v700_v26 = vadd.f32 %v14107_v23, %v699_v58  ;;  %v10840_v17 = vpop.f32.mrb[8].mxu0  ;;  %11145 = vmatpush3.bf16.msra.mxu0 %v12454_v59  ;;  %v6704_v58 = vshll.u32 %v14203_v9, 16  ;;  %v6712_v59 = vshll.u32 %v6609_v5, 16 }
 0x1a1   : > { %v750_v40 = vmax.f32 %v708_v14, 0.0  ;;  %v721_v45 = vadd.f32 %v10840_v17, %v14107_v23  ;;  %v712_v19 = vpop.f32.mrb[9].mxu0  ;;  %v6686_v33 = vrot.slane %v6684_v37, 5  ;;  %v6689_v24 = vrot.slane %v6687_v0, 6  ;;  %v6613_v0 = vld [vmem:[%s12944_s12 + $0x78] sm:$0x3f] }
 0x1a2   : > { %11589 = vmatpush3.bf16.msra.mxu1 %v12422_v30  ;;  %v6675_v30 = vshrl.u32 %v6605_v16, 16  ;;  %v748_v18 = vmax.f32 %v700_v26, 0.0  ;;  %v713_v57 = vadd.f32 %v14107_v23, %v712_v19  ;;  %v10841_v3 = vpop.f32.mrb[10].mxu0  ;;  %v12427_v16 = vld [vmem:[%s15173_s2 + $0x540] sm:$0xff]   ;;  %v6697_v14 = vrot.slane %v6695_v48, 6  ;;  %v12430_v48 = vld [vmem:[%s15173_s2 + $0x558] sm:$0xff]  }
 0x1a3   : > { %11590 = vmatprep.subr.bf16.mxu1 %v12423_v39  ;;  %v14178_v11 = vpack.c.bf16 %v750_v40, %v749_v22  ;;  %v753_v12 = vmax.f32 %v721_v45, 0.0  ;;  %v724_v51 = vadd.f32 %v10841_v3, %v14107_v23  ;;  %v715_v42 = vpop.f32.mrb[11].mxu0  ;;  %v6694_v22 = vrot.slane %v6692_v2, 5 }
 0x1a4   : > { %v14186_v6 = vpack.c.bf16 %v748_v18, %v747_v10  ;;  %v14198_v60 = vrot.slane %v6675_v30, 5  ;;  %v751_v44 = vmax.f32 %v713_v57, 0.0  ;;  %v12428_v10 = vld [vmem:[%s15173_s2 + $0x548] sm:$0xff]   ;;  %v6709_v40 = vshrl.u32 %v6609_v5, 16 }
 0x1a5   : > { %11575 = vmatmul.mubr.bf16.gmra.mrb[24].mxu1 %v6167_v13  ;;  %v6701_v13 = vshrl.u32 %v14203_v9, 16  ;;  %v754_v41 = vmax.f32 %v724_v51, 0.0  ;;  %v6690_v8 = vor.u32 %v6689_v24, %v6686_v33  ;;  %v6714_v3 = vrot.slane %v6712_v59, 6 }
 0x1a6   : > { %11591 = vmatpush3.bf16.msra.mxu1 %v12423_v39  ;;  %11578 = vmatprep.mubr.bf16.mxu1 %v6184_v50  ;;  %v12456_v39 = vld [vmem:[#allocation4 + $0x70] sm:$0xff]   ;;  %v6648_v50 = vsel %vm6614_vm4, %v6639_v29, %v6647_v53  ;;  %v6681_v31 = vor.u32 %v14200_v35, %v14198_v60  ;;  %v10844_v30 = vpop.f32.mrb[12].mxu0  ;;  %v6718_v29 = vshrl.u32 %v6610_v47, 16  ;;  %v6698_v60 = vor.u32 %v6697_v14, %v6694_v22 }
 0x1a7   : > { %11592 = vmatprep.subr.bf16.mxu1 %v12424_v36  ;;  %11146 = vmatprep.subr.bf16.mxu0 %v12456_v39  ;;  %v14221_v7 = vpack.c.bf16 %v754_v41, %v753_v12  ;;  %v14229_v26 = vrot.slane %v6701_v13, 5  ;;  %v737_v52 = vadd.f32 %v10844_v30, %v14107_v23  ;;  %v728_v18 = vpop.f32.mrb[13].mxu0  ;;  %v6706_v35 = vrot.slane %v6704_v58, 6  ;;  %v9997_v13 = vld [vmem:[%s12944_s12 + $0x30] sm:$0xfc] }
 0x1a8   : > { %11147 = vmatpush3.bf16.msra.mxu0 %v12456_v39  ;;  %v729_v53 = vadd.f32 %v14107_v23, %v728_v18  ;;  %v10845_v34 = vpop.f32.mrb[14].mxu0  ;;  %v12429_v39 = vld [vmem:[%s15173_s2 + $0x550] sm:$0xff]   ;;  %v6711_v37 = vrot.slane %v6709_v40, 5  ;;  %v6682_v57 = vsel %vm6614_vm4, %v6673_v20, %v6681_v31  ;;  %v6720_v12 = vrot.slane %v6718_v29, 5  ;;  %v9706_v20 = vld [vmem:[%s12944_s12 + $0x38] sm:$0x7] }
 0x1a9   : > { %11148 = vmatprep.subr.bf16.mxu0 %v12458_v28  ;;  %v757_v17 = vmax.f32 %v737_v52, 0.0  ;;  %v731_v55 = vpop.f32.mrb[15].mxu0  ;;  %v6723_v51 = vrot.slane %v6721_v61, 6  ;;  %v6707_v5 = vor.u32 %v6706_v35, %v14229_v26  ;;  %v12431_v31 = vld [vmem:[%s15173_s2 + $0x560] sm:$0xff]   ;;  %v6946_v33 = vshrl.u32 %v9997_v13, 16 }
 0x1aa   : > { %11593 = vmatpush3.bf16.msra.mxu1 %v12424_v36  ;;  %v716_v36 = vadd.f32 %v14107_v23, %v715_v42  ;;  %v755_v45 = vmax.f32 %v729_v53, 0.0  ;;  %v732_v19 = vadd.f32 %v14107_v23, %v731_v55  ;;  %v6735_v42 = vshrl.u32 %v6612_v32, 16  ;;  %v9707_v40 = vld [vmem:[%s12944_s12 + $0x48] sm:$0x7]  ;;  %v9998_v18 = vld [vmem:[%s12944_s12 + $0x40] sm:$0xfc] }
 0x1ab   : > { %11594 = vmatprep.subr.bf16.mxu1 %v12425_v54  ;;  %v6949_v24 = vshll.u32 %v9997_v13, 16  ;;  %v6954_v22 = vshrl.u32 %v9706_v20, 16  ;;  %v6957_v14 = vshll.u32 %v9706_v20, 16  ;;  %v6724_v58 = vor.u32 %v6723_v51, %v6720_v12  ;;  %v9999_v53 = vld [vmem:[%s12944_s12 + $0x50] sm:$0xfc] }
 0x1ac   : > { %v752_v1 = vmax.f32 %v716_v36, 0.0  ;;  %11149 = vmatpush3.bf16.msra.mxu0 %v12458_v28  ;;  %v756_v2 = vmax.f32 %v732_v19, 0.0  ;;  %v6699_v28 = vsel %vm6614_vm4, %v6690_v8, %v6698_v60  ;;  %v6737_v47 = vrot.slane %v6735_v42, 5 }
 0x1ad   : > { %11579 = vmatmul.mubr.bf16.gmra.mrb[28].mxu1 %v6201_v27  ;;  %v12460_v27 = vld [vmem:[#allocation4] sm:$0xff]   ;;  %v6948_v59 = vrot.slane %v6946_v33, 2  ;;  %v6951_v52 = vrot.slane %v6949_v24, 3  ;;  %v6956_v29 = vrot.slane %v6954_v22, 2  ;;  %v6959_v61 = vrot.slane %v6957_v14, 3 }
 0x1ae   : > { %11595 = vmatpush3.bf16.msra.mxu1 %v12425_v54  ;;  %11598 = vmatprep.mubr.bf16.mxu1 %v6631_v4  ;;  %v6611_v54 = vld [vmem:[%s12944_s12 + $0x68] sm:$0x3f]  ;;  %v14224_v62 = vpack.c.bf16 %v752_v1, %v751_v44  ;;  %v14247_v41 = vpack.c.bf16 %v756_v2, %v755_v45  ;;  %v6715_v1 = vor.u32 %v6714_v3, %v6711_v37  ;;  %v6963_v55 = vshrl.u32 %v9998_v18, 16 }
 0x1af   : > { %11596 = vmatprep.subr.bf16.mxu1 %v12426_v46  ;;  %v6726_v4 = vshrl.u32 %v6611_v54, 16  ;;  %11166 = vmatprep.subr.bf16.mxu0 %v12460_v27  ;;  %v6729_v43 = vshll.u32 %v6611_v54, 16  ;;  %v6971_v8 = vshrl.u32 %v9707_v40, 16  ;;  %v6966_v45 = vshll.u32 %v9998_v18, 16  ;;  %v9709_v3 = vld [vmem:[%s12944_s12 + $0x68] sm:$0x7] }
 0x1b0   : > { %v6716_v27 = vsel %vm6614_vm4, %v6707_v5, %v6715_v1  ;;  %v6974_v19 = vshll.u32 %v9707_v40, 16  ;;  %v6952_v35 = vor.u32 %v6951_v52, %v6948_v59  ;;  %v6960_v37 = vor.u32 %v6959_v61, %v6956_v29  ;;  %v9710_v1 = vld [vmem:[%s12944_s12 + $0x78] sm:$0x7]  ;;  %v9711_v29 = vld [vmem:[%s12944_s12 + $0x88] sm:$0x7] }
 0x1b1   : > { %v6728_v44 = vrot.slane %v6726_v4, 5  ;;  %v6731_v36 = vrot.slane %v6729_v43, 6  ;;  %v9708_v4 = vld [vmem:[%s12944_s12 + $0x58] sm:$0x7]  ;;  %v12433_v43 = vld [vmem:[%s15173_s2 + $0x570] sm:$0xff]   ;;  %v6965_v2 = vrot.slane %v6963_v55, 2 }
 0x1b2   : > { %11597 = vmatpush3.bf16.msra.mxu1 %v12426_v46  ;;  %v740_v46 = vadd.f32 %v10845_v34, %v14107_v23  ;;  %v12432_v34 = vld [vmem:[%s15173_s2 + $0x568] sm:$0xff]   ;;  %v6988_v60 = vshrl.u32 %v9708_v4, 16  ;;  %v6968_v12 = vrot.slane %v6966_v45, 3  ;;  %v6973_v51 = vrot.slane %v6971_v8, 2  ;;  %v10003_v55 = vld [vmem:[%s12944_s12 + $0x90] sm:$0xfc] }
 0x1b3   : > { %11614 = vmatprep.subr.bf16.mxu1 %v12427_v16  ;;  %v6732_v30 = vor.u32 %v6731_v36, %v6728_v44  ;;  %v6976_v42 = vrot.slane %v6974_v19, 3  ;;  %v12434_v44 = vld [vmem:[%s15173_s2 + $0x578] sm:$0xff]   ;;  %v6961_v36 = vsel %vm6065_vm3, %v6952_v35, %v6960_v37  ;;  %v7005_v13 = vshrl.u32 %v9709_v3, 16  ;;  %v12437_v19 = vld [vmem:[%s15173_s2 + $0x590] sm:$0xff]  }
 0x1b4   : > { %v758_v9 = vmax.f32 %v740_v46, 0.0  ;;  %v7008_v33 = vshll.u32 %v9709_v3, 16  ;;  %v6969_v24 = vor.u32 %v6968_v12, %v6965_v2  ;;  %v9712_v45 = vld [vmem:[%s12944_s12 + $0x98] sm:$0x7]  ;;  %v7039_v35 = vshrl.u32 %v9711_v29, 16 }
 0x1b5   : > { %11599 = vmatmul.mubr.bf16.vlgmr.msra.gmra.mrb[16].mxu1 %v6648_v50  ;;  %v6743_v50 = vshrl.u32 %v6613_v0, 16  ;;  %v7007_v59 = vrot.slane %v7005_v13, 2  ;;  %v7042_v37 = vshll.u32 %v9711_v29, 16  ;;  %v7048_v3 = vshrl.u32 %v10003_v55, 16 }
 0x1b6   : > { %11615 = vmatpush3.bf16.msra.mxu1 %v12427_v16  ;;  %11602 = vmatprep.mubr.bf16.mxu1 %v6665_v21  ;;  %v14241_v23 = vpack.c.bf16 %v758_v9, %v757_v17  ;;  %v6738_v16 = vshll.u32 %v6612_v32, 16  ;;  %v6746_v21 = vshll.u32 %v6613_v0, 16  ;;  %v6733_v32 = vsel %vm6614_vm4, %v6724_v58, %v6732_v30  ;;  %v10000_v0 = vld [vmem:[%s12944_s12 + $0x60] sm:$0xfc] }
 0x1b7   : > { %11616 = vmatprep.subr.bf16.mxu1 %v12428_v10  ;;  %v6983_v9 = vshll.u32 %v9999_v53, 16  ;;  %v6997_v5 = vshrl.u32 %v10000_v0, 16  ;;  %v7022_v58 = vshrl.u32 %v9710_v1, 16  ;;  %v7025_v30 = vshll.u32 %v9710_v1, 16 }
 0x1b8   : > { %v6740_v54 = vrot.slane %v6738_v16, 6  ;;  %v6748_v26 = vrot.slane %v6746_v21, 6  ;;  %v6990_v16 = vrot.slane %v6988_v60, 2  ;;  %v7010_v18 = vrot.slane %v7008_v33, 3 }
 0x1b9   : > { %v6985_v21 = vrot.slane %v6983_v9, 3  ;;  %v6999_v40 = vrot.slane %v6997_v5, 2  ;;  %v7056_v2 = vshrl.u32 %v9712_v45, 16  ;;  %v7059_v12 = vshll.u32 %v9712_v45, 16 }
 0x1ba   : > { %11617 = vmatpush3.bf16.msra.mxu1 %v12428_v10  ;;  %v6745_v10 = vrot.slane %v6743_v50, 5  ;;  %v6741_v17 = vor.u32 %v6740_v54, %v6737_v47  ;;  %v6977_v47 = vor.u32 %v6976_v42, %v6973_v51  ;;  %v12435_v54 = vld [vmem:[%s15173_s2 + $0x580] sm:$0xff]   ;;  %v7050_v5 = vrot.slane %v7048_v3, 2  ;;  %v12445_v3 = vld [vmem:[%s15173_s2 + $0x5c8] sm:$0xff]  }
 0x1bb   : > { %11618 = vmatprep.subr.bf16.mxu1 %v12429_v39  ;;  %v7061_v33 = vrot.slane %v7059_v12, 3 }
 0x1bc   : > { %v6749_v46 = vor.u32 %v6748_v26, %v6745_v10 }
 0x1bd   : > { %11603 = vmatmul.mubr.bf16.gmra.mrb[20].mxu1 %v6682_v57  ;;  %v6991_v57 = vshll.u32 %v9708_v4, 16 }
 0x1be   : > { %11619 = vmatpush3.bf16.msra.mxu1 %v12429_v39  ;;  %11606 = vmatprep.mubr.bf16.mxu1 %v6699_v28  ;;  %v6980_v39 = vshrl.u32 %v9999_v53, 16  ;;  %v10001_v28 = vld [vmem:[%s12944_s12 + $0x70] sm:$0xfc]  ;;  %v7024_v53 = vrot.slane %v7022_v58, 2 }
 0x1bf   : > { %11620 = vmatprep.subr.bf16.mxu1 %v12430_v48  ;;  %v6993_v20 = vrot.slane %v6991_v57, 3  ;;  %v7014_v22 = vshrl.u32 %v10001_v28, 16  ;;  %v7017_v14 = vshll.u32 %v10001_v28, 16  ;;  %v9713_v28 = vld [vmem:[%s12944_s12 + $0xa8] sm:$0x7] }
 0x1c0   : > { %v6982_v50 = vrot.slane %v6980_v39, 2 }
 0x1c1   : > { %v6994_v26 = vor.u32 %v6993_v20, %v6990_v16  ;;  %v7016_v61 = vrot.slane %v7014_v22, 2  ;;  %v7019_v4 = vrot.slane %v7017_v14, 3 }
 0x1c2   : > { %11621 = vmatpush3.bf16.msra.mxu1 %v12430_v48  ;;  %v6750_v48 = vsel %vm6614_vm4, %v6741_v17, %v6749_v46  ;;  %v6986_v10 = vor.u32 %v6985_v21, %v6982_v50  ;;  %v12436_v17 = vld [vmem:[%s15173_s2 + $0x588] sm:$0xff]   ;;  %v10004_v50 = vld [vmem:[%s12944_s12 + $0xa0] sm:$0xfc]  ;;  %v12438_v21 = vld [vmem:[%s15173_s2 + $0x598] sm:$0xff]  }
 0x1c3   : > { %11622 = vmatprep.subr.bf16.mxu1 %v12431_v31  ;;  %v7020_v9 = vor.u32 %v7019_v4, %v7016_v61  ;;  %v7065_v14 = vshrl.u32 %v10004_v50, 16  ;;  %v7068_v58 = vshll.u32 %v10004_v50, 16 }
 0x1c4   : > { %v6995_v46 = vsel %vm6065_vm3, %v6986_v10, %v6994_v26  ;;  %v7076_v10 = vshll.u32 %v9713_v28, 16  ;;  %v12439_v26 = vld [vmem:[%s15173_s2 + $0x5a0] sm:$0xff]  }
 0x1c5   : > { %11607 = vmatmul.mubr.bf16.gmra.mrb[24].mxu1 %v6716_v27  ;;  %v6978_v27 = vsel %vm6065_vm3, %v6969_v24, %v6977_v47 }
 0x1c6   : > { %11623 = vmatpush3.bf16.msra.mxu1 %v12431_v31  ;;  %11610 = vmatprep.mubr.bf16.mxu1 %v6733_v32  ;;  %v7000_v31 = vshll.u32 %v10000_v0, 16  ;;  %v10002_v32 = vld [vmem:[%s12944_s12 + $0x80] sm:$0xfc]  ;;  %v7051_v0 = vshll.u32 %v10003_v55, 16  ;;  %v7078_v61 = vrot.slane %v7076_v10, 3 }
 0x1c7   : > { %11624 = vmatprep.subr.bf16.mxu1 %v12432_v34  ;;  %v7031_v39 = vshrl.u32 %v10002_v32, 16  ;;  %v7034_v60 = vshll.u32 %v10002_v32, 16 }
 0x1c8   : > { %v7002_v52 = vrot.slane %v7000_v31, 3  ;;  %v7053_v1 = vrot.slane %v7051_v0, 3  ;;  %v7058_v31 = vrot.slane %v7056_v2, 2 }
 0x1c9   : > { %v7033_v51 = vrot.slane %v7031_v39, 2  ;;  %v7036_v42 = vrot.slane %v7034_v60, 3  ;;  %v12442_v39 = vld [vmem:[%s15173_s2 + $0x5b8] sm:$0xff]  }
 0x1ca   : > { %11625 = vmatpush3.bf16.msra.mxu1 %v12432_v34  ;;  %v7027_v34 = vrot.slane %v7025_v30, 3  ;;  %v7003_v8 = vor.u32 %v7002_v52, %v6999_v40  ;;  %v7073_v30 = vshrl.u32 %v9713_v28, 16  ;;  %v7054_v40 = vor.u32 %v7053_v1, %v7050_v5  ;;  %v15206_v5 = vld [vmem:[#allocation10_spill] sm:$0xff] }
 0x1cb   : > { %11626 = vmatprep.subr.bf16.mxu1 %v12433_v43  ;;  %v7037_v47 = vor.u32 %v7036_v42, %v7033_v51  ;;  %v12447_v51 = vld [vmem:[%s15173_s2 + $0x5d0] sm:$0xff]   ;;  %v12451_v1 = vld [vmem:[%s15173_s2 + $0x5e0] sm:$0xff]  }
 0x1cc   : > { %v7028_v57 = vor.u32 %v7027_v34, %v7024_v53  ;;  %v7075_v29 = vrot.slane %v7073_v30, 2  ;;  %v12440_v53 = vld [vmem:[%s15173_s2 + $0x5a8] sm:$0xff]   ;;  %v9762_v42 = vld [vmem:[%s12944_s12 + $0x30] sm:$0xe0] }
 0x1cd   : > { %11611 = vmatmul.mubr.bf16.gmra.mrb[28].mxu1 %v6750_v48  ;;  %v7041_v48 = vrot.slane %v7039_v35, 2 }
 0x1ce   : > { %11627 = vmatpush3.bf16.msra.mxu1 %v12433_v43  ;;  %11630 = vmatprep.mubr.bf16.mxu1 %v6961_v36  ;;  %v7011_v43 = vor.u32 %v7010_v18, %v7007_v59  ;;  %v7029_v16 = vsel %vm6065_vm3, %v7020_v9, %v7028_v57  ;;  %v7062_v59 = vor.u32 %v7061_v33, %v7058_v31  ;;  %v7067_v18 = vrot.slane %v7065_v14, 2  ;;  %v12443_v9 = vld [vmem:[%s15173_s2 + $0x5c0] sm:$0xff]   ;;  %v10054_v33 = vld [vmem:[%s12944_s12 + $0x48] sm:$0x3f] }
 0x1cf   : > { %11628 = vmatprep.subr.bf16.mxu1 %v12434_v44 }
 0x1d0   : > { %v7012_v36 = vsel %vm6065_vm3, %v7003_v8, %v7011_v43  ;;  %v7063_v34 = vsel %vm6065_vm3, %v7054_v40, %v7062_v59  ;;  %v7079_v8 = vor.u32 %v7078_v61, %v7075_v29  ;;  %v12441_v43 = vld [vmem:[%s15173_s2 + $0x5b0] sm:$0xff]   ;;  %v10055_v40 = vld [vmem:[%s12944_s12 + $0x58] sm:$0x3f]  ;;  %v7479_v59 = vshrl.u32 %v10054_v33, 16  ;;  %v15207_v29 = vld [vmem:[#allocation11_spill] sm:$0xff] }
 0x1d1   : > { %v7496_v61 = vshrl.u32 %v10055_v40, 16 }
 0x1d2   : > { %11629 = vmatpush3.bf16.msra.mxu1 %v12434_v44  ;;  %v7044_v44 = vrot.slane %v7042_v37, 3 }
 0x1d3   : > { %11646 = vmatprep.subr.bf16.mxu1 %v12435_v54 }
 0x1d5   : > { %11631 = vmatmul.mubr.bf16.vlgmr.msra.gmra.mrb[16].mxu1 %v6978_v27  ;;  %v7070_v27 = vrot.slane %v7068_v58, 3 }
 0x1d6   : > { %11647 = vmatpush3.bf16.msra.mxu1 %v12435_v54  ;;  %11634 = vmatprep.mubr.bf16.mxu1 %v6995_v46  ;;  %v14293_v13 = vpop.f32.mrb[16].mxu0  ;;  %v7045_v54 = vor.u32 %v7044_v44, %v7041_v48  ;;  %v10053_v48 = vld [vmem:[%s12944_s12 + $0x38] sm:$0x3f] }
 0x1d7   : > { %11648 = vmatprep.subr.bf16.mxu1 %v12436_v17  ;;  %v14300_v20 = vpop.f32.mrb[17].mxu0  ;;  %v7071_v55 = vor.u32 %v7070_v27, %v7067_v18  ;;  %v12449_v44 = vld [vmem:[%s15173_s2 + $0x5d8] sm:$0xff]   ;;  %v7462_v28 = vshrl.u32 %v10053_v48, 16  ;;  %v7465_v50 = vshll.u32 %v10053_v48, 16  ;;  %v7498_v48 = vrot.slane %v7496_v61, 5 }
 0x1d8   : > { %v14302_v24 = vpop.f32.mrb[18].mxu0  ;;  %v7046_v52 = vsel %vm6065_vm3, %v7037_v47, %v7045_v54  ;;  %v12453_v54 = vld [vmem:[%s15173_s2 + $0x5e8] sm:$0xff]  }
 0x1d9   : > { %v14304_v22 = vpop.f32.mrb[19].mxu0  ;;  %v7080_v45 = vsel %vm6065_vm3, %v7071_v55, %v7079_v8  ;;  %v7464_v58 = vrot.slane %v7462_v28, 5  ;;  %v7467_v30 = vrot.slane %v7465_v50, 6  ;;  %v12455_v55 = vld [vmem:[%s15173_s2 + $0x5f0] sm:$0xff]   ;;  %v12457_v28 = vld [vmem:[%s15173_s2 + $0x5f8] sm:$0xff]  }
 0x1da   : > { %11649 = vmatpush3.bf16.msra.mxu1 %v12436_v17 }
 0x1db   : > { %11650 = vmatprep.subr.bf16.mxu1 %v12437_v19 }
 0x1dd   : > { %11635 = vmatmul.mubr.bf16.gmra.mrb[20].mxu1 %v7012_v36  ;;  %v7454_v36 = vshrl.u32 %v9762_v42, 16 }
 0x1de   : > { %11651 = vmatpush3.bf16.msra.mxu1 %v12437_v19  ;;  %11638 = vmatprep.mubr.bf16.mxu1 %v7029_v16  ;;  %v14310_v4 = vpop.f32.mrb[20].mxu0  ;;  %v7457_v16 = vshll.u32 %v9762_v42, 16 }
 0x1df   : > { %11652 = vmatprep.subr.bf16.mxu1 %v12438_v21  ;;  %v14316_v32 = vpop.f32.mrb[21].mxu0  ;;  %v7456_v31 = vrot.slane %v7454_v36, 5  ;;  %v9765_v36 = vld [vmem:[%s12944_s12 + $0x60] sm:$0xe0] }
 0x1e0   : > { %v14318_v17 = vpop.f32.mrb[22].mxu0  ;;  %v7459_v14 = vrot.slane %v7457_v16, 6  ;;  %v10056_v16 = vld [vmem:[%s12944_s12 + $0x68] sm:$0x3f] }
 0x1e1   : > { %v14320_v46 = vpop.f32.mrb[23].mxu0 }
 0x1e2   : > { %11653 = vmatpush3.bf16.msra.mxu1 %v12438_v21  ;;  %v9763_v21 = vld [vmem:[%s12944_s12 + $0x40] sm:$0xe0]  ;;  %v7460_v8 = vor.u32 %v7459_v14, %v7456_v31  ;;  %v10057_v14 = vld [vmem:[%s12944_s12 + $0x78] sm:$0x3f] }
 0x1e3   : > { %11654 = vmatprep.subr.bf16.mxu1 %v12439_v26  ;;  %v7471_v47 = vshrl.u32 %v9763_v21, 16  ;;  %v7474_v10 = vshll.u32 %v9763_v21, 16  ;;  %v9766_v21 = vld [vmem:[%s12944_s12 + $0x70] sm:$0xe0]  ;;  %v7533_v61 = vshll.u32 %v10057_v14, 16 }
 0x1e5   : > { %11639 = vmatmul.mubr.bf16.gmra.mrb[24].mxu1 %v7046_v52  ;;  %v7482_v52 = vshll.u32 %v10054_v33, 16 }
 0x1e6   : > { %11655 = vmatpush3.bf16.msra.mxu1 %v12439_v26  ;;  %11642 = vmatprep.mubr.bf16.mxu1 %v7063_v34  ;;  %v14326_v19 = vpop.f32.mrb[24].mxu0  ;;  %v9764_v26 = vld [vmem:[%s12944_s12 + $0x50] sm:$0xe0] }
 0x1e7   : > { %11656 = vmatprep.subr.bf16.mxu1 %v12440_v53  ;;  %v14331_v60 = vpop.f32.mrb[25].mxu0  ;;  %v7488_v18 = vshrl.u32 %v9764_v26, 16  ;;  %v7491_v27 = vshll.u32 %v9764_v26, 16  ;;  %v15208_v34 = vld [vmem:[#allocation12_spill] sm:$0xff]  ;;  %v7516_v26 = vshll.u32 %v10056_v16, 16 }
 0x1e8   : > { %v14333_v35 = vpop.f32.mrb[26].mxu0 }
 0x1e9   : > { %v14335_v37 = vpop.f32.mrb[27].mxu0  ;;  %v7493_v42 = vrot.slane %v7491_v27, 6  ;;  %v7530_v27 = vshrl.u32 %v10057_v14, 16 }
 0x1ea   : > { %11657 = vmatpush3.bf16.msra.mxu1 %v12440_v53  ;;  %v7499_v53 = vshll.u32 %v10055_v40, 16  ;;  %v12459_v40 = vld [vmem:[%s15173_s2 + $0x600] sm:$0xff]  }
 0x1eb   : > { %11658 = vmatprep.subr.bf16.mxu1 %v12441_v43 }
 0x1ed   : > { %11643 = vmatmul.mubr.bf16.gmra.mrb[28].mxu1 %v7080_v45  ;;  %v7473_v45 = vrot.slane %v7471_v47, 5  ;;  %v7505_v47 = vshrl.u32 %v9765_v36, 16 }
 0x1ee   : > { %11659 = vmatpush3.bf16.msra.mxu1 %v12441_v43  ;;  %11662 = vmatprep.mubr.bf16.mxu1 %v13093_v49  ;;  %v14341_v57 = vpop.f32.mrb[28].mxu0  ;;  %v7468_v43 = vor.u32 %v7467_v30, %v7464_v58  ;;  %v15209_v58 = vld [vmem:[#allocation13_spill] sm:$0xff] }
 0x1ef   : > { %11660 = vmatprep.subr.bf16.mxu1 %v12442_v39  ;;  %v14346_v0 = vpop.f32.mrb[29].mxu0 }
 0x1f0   : > { %v14348_v2 = vpop.f32.mrb[30].mxu0  ;;  %v7469_v50 = vsel %vm6614_vm4, %v7460_v8, %v7468_v43  ;;  %v7507_v8 = vrot.slane %v7505_v47, 5  ;;  %v10058_v43 = vld [vmem:[%s12944_s12 + $0x88] sm:$0x3f] }
 0x1f1   : > { %v14351_v12 = vpop.f32.mrb[31].mxu0 }
 0x1f2   : > { %11661 = vmatpush3.bf16.msra.mxu1 %v12442_v39  ;;  %v7476_v39 = vrot.slane %v7474_v10, 6  ;;  %v7513_v10 = vshrl.u32 %v10056_v16, 16  ;;  %v12461_v16 = vld [vmem:[%s15173_s2 + $0x608] sm:$0xff]  }
 0x1f3   : > { %11678 = vmatprep.subr.bf16.mxu1 %v12443_v9 }
 0x1f5   : > { %11663 = vmatmul.mubr.bf16.vlgmr.msra.gmra.mrb[16].mxu1 %v13169_v63 }
 0x1f6   : > { %11679 = vmatpush3.bf16.msra.mxu1 %v12443_v9  ;;  %11666 = vmatprep.mubr.bf16.mxu1 %v13172_v56  ;;  %v7481_v9 = vrot.slane %v7479_v59, 5  ;;  %v7522_v59 = vshrl.u32 %v9766_v21, 16 }
 0x1f7   : > { %11680 = vmatprep.subr.bf16.mxu1 %v12445_v3 }
 0x1fa   : > { %11681 = vmatpush3.bf16.msra.mxu1 %v12445_v3  ;;  %v7484_v3 = vrot.slane %v7482_v52, 6  ;;  %v7525_v52 = vshll.u32 %v9766_v21, 16  ;;  %v7535_v21 = vrot.slane %v7533_v61, 6 }
 0x1fb   : > { %11682 = vmatprep.subr.bf16.mxu1 %v12447_v51 }
 0x1fc   : > { %v7485_v31 = vor.u32 %v7484_v3, %v7481_v9  ;;  %v7518_v9 = vrot.slane %v7516_v26, 6  ;;  %v9768_v3 = vld [vmem:[%s12944_s12 + $0x90] sm:$0xe0] }
 0x1fd   : > { %11667 = vmatmul.mubr.bf16.gmra.mrb[20].mxu1 %v13212_v15  ;;  %v7559_v47 = vshll.u32 %v9768_v3, 16  ;;  %v12463_v26 = vld [vmem:[%s15173_s2 + $0x610] sm:$0xff]  }
 0x1fe   : > { %11683 = vmatpush3.bf16.msra.mxu1 %v12447_v51  ;;  %11670 = vmatprep.mubr.bf16.mxu1 %v15206_v5  ;;  %v7490_v51 = vrot.slane %v7488_v18, 5  ;;  %v9767_v18 = vld [vmem:[%s12944_s12 + $0x80] sm:$0xe0] }
 0x1ff   : > { %11684 = vmatprep.subr.bf16.mxu1 %v12449_v44 }
 0x200   : > { %v7494_v33 = vor.u32 %v7493_v42, %v7490_v51  ;;  %v7524_v51 = vrot.slane %v7522_v59, 5  ;;  %v7527_v42 = vrot.slane %v7525_v52, 6 }
 0x202   : > { %11685 = vmatpush3.bf16.msra.mxu1 %v12449_v44  ;;  %v7501_v44 = vrot.slane %v7499_v53, 6 }
 0x203   : > { %11686 = vmatprep.subr.bf16.mxu1 %v12451_v1 }
 0x204   : > { %v7502_v30 = vor.u32 %v7501_v44, %v7498_v48  ;;  %v7539_v48 = vshrl.u32 %v9767_v18, 16  ;;  %v7542_v44 = vshll.u32 %v9767_v18, 16  ;;  %v10060_v18 = vld [vmem:[%s12944_s12 + $0xa8] sm:$0x3f] }
 0x205   : > { %11671 = vmatmul.mubr.bf16.gmra.mrb[24].mxu1 %v15207_v29 }
 0x206   : > { %11687 = vmatpush3.bf16.msra.mxu1 %v12451_v1  ;;  %11674 = vmatprep.mubr.bf16.mxu1 %v15208_v34  ;;  %v7477_v1 = vor.u32 %v7476_v39, %v7473_v45  ;;  %v7503_v45 = vsel %vm6614_vm4, %v7494_v33, %v7502_v30  ;;  %v7515_v39 = vrot.slane %v7513_v10, 5  ;;  %v7556_v33 = vshrl.u32 %v9768_v3, 16  ;;  %v9769_v30 = vld [vmem:[%s12944_s12 + $0xa0] sm:$0xe0]  ;;  %v10093_v34 = vld [vmem:[%s12944_s12 + $0x98] sm:$0x7] }
 0x207   : > { %11688 = vmatprep.subr.bf16.mxu1 %v12453_v54  ;;  %v7541_v59 = vrot.slane %v7539_v48, 5  ;;  %v7544_v52 = vrot.slane %v7542_v44, 6  ;;  %v10086_v44 = vld [vmem:[%s12944_s12 + $0x60] sm:$0xfc] }
 0x208   : > { %v7486_v53 = vsel %vm6614_vm4, %v7477_v1, %v7485_v31  ;;  %v7547_v1 = vshrl.u32 %v10058_v43, 16  ;;  %v7550_v31 = vshll.u32 %v10058_v43, 16  ;;  %v7519_v10 = vor.u32 %v7518_v9, %v7515_v39 }
 0x209   : > { %v7558_v3 = vrot.slane %v7556_v33, 5  ;;  %v7581_v9 = vshrl.u32 %v10060_v18, 16 }
 0x20a   : > { %11689 = vmatpush3.bf16.msra.mxu1 %v12453_v54  ;;  %v7508_v54 = vshll.u32 %v9765_v36, 16  ;;  %v10059_v36 = vld [vmem:[%s12944_s12 + $0x98] sm:$0x3f]  ;;  %v7549_v43 = vrot.slane %v7547_v1, 5  ;;  %v10088_v1 = vld [vmem:[%s12944_s12 + $0x70] sm:$0xfc] }
 0x20b   : > { %11690 = vmatprep.subr.bf16.mxu1 %v12455_v55  ;;  %v7567_v14 = vshll.u32 %v10059_v36, 16 }
 0x20d   : > { %11675 = vmatmul.mubr.bf16.gmra.mrb[28].mxu1 %v15209_v58  ;;  %v7569_v39 = vrot.slane %v7567_v14, 6  ;;  %v10089_v14 = vld [vmem:[%s12944_s12 + $0x78] sm:$0x7] }
 0x20e   : > { %11691 = vmatpush3.bf16.msra.mxu1 %v12455_v55  ;;  %11694 = vmatprep.mubr.bf16.mxu1 %v7469_v50  ;;  %v7510_v55 = vrot.slane %v7508_v54, 6  ;;  %v7532_v50 = vrot.slane %v7530_v27, 5  ;;  %v7528_v27 = vor.u32 %v7527_v42, %v7524_v51  ;;  %v12465_v51 = vld [vmem:[%s15173_s2 + $0x618] sm:$0xff]  }
 0x20f   : > { %11692 = vmatprep.subr.bf16.mxu1 %v12457_v28 }
 0x210   : > { %v7511_v54 = vor.u32 %v7510_v55, %v7507_v8  ;;  %v7536_v61 = vor.u32 %v7535_v21, %v7532_v50  ;;  %v7576_v8 = vshll.u32 %v9769_v30, 16  ;;  %v7545_v50 = vor.u32 %v7544_v52, %v7541_v59  ;;  %v10087_v21 = vld [vmem:[%s12944_s12 + $0x68] sm:$0x7]  ;;  %v12467_v52 = vld [vmem:[%s15173_s2 + $0x620] sm:$0xff]  }
 0x211   : > { %v7803_v58 = vshrl.u32 %v10087_v21, 16  ;;  %v7812_v59 = vshrl.u32 %v10088_v1, 16 }
 0x212   : > { %11693 = vmatpush3.bf16.msra.mxu1 %v12457_v28  ;;  %v7564_v28 = vshrl.u32 %v10059_v36, 16  ;;  %v7584_v36 = vshll.u32 %v10060_v18, 16  ;;  %v7520_v48 = vsel %vm6614_vm4, %v7511_v54, %v7519_v10  ;;  %v7537_v42 = vsel %vm6614_vm4, %v7528_v27, %v7536_v61 }
 0x213   : > { %11710 = vmatprep.subr.bf16.mxu1 %v12459_v40  ;;  %v7795_v10 = vshrl.u32 %v10086_v44, 16  ;;  %v7798_v18 = vshll.u32 %v10086_v44, 16  ;;  %v7806_v27 = vshll.u32 %v10087_v21, 16  ;;  %v7815_v61 = vshll.u32 %v10088_v1, 16  ;;  %v10092_v21 = vld [vmem:[%s12944_s12 + $0x90] sm:$0xfc] }
 0x214   : > { %v7566_v55 = vrot.slane %v7564_v28, 5  ;;  %v7578_v28 = vrot.slane %v7576_v8, 6  ;;  %v7586_v54 = vrot.slane %v7584_v36, 6 }
 0x215   : > { %11695 = vmatmul.mubr.bf16.vlgmr.msra.gmra.mrb[16].mxu1 %v7486_v53  ;;  %v7552_v53 = vrot.slane %v7550_v31, 6  ;;  %v7800_v36 = vrot.slane %v7798_v18, 3  ;;  %v7808_v44 = vrot.slane %v7806_v27, 3  ;;  %v7857_v18 = vshll.u32 %v10093_v34, 16  ;;  %v12471_v27 = vld [vmem:[%s15173_s2 + $0x630] sm:$0xff]  }
 0x216   : > { %11711 = vmatpush3.bf16.msra.mxu1 %v12459_v40  ;;  %11698 = vmatprep.mubr.bf16.mxu1 %v7503_v45  ;;  %v7561_v40 = vrot.slane %v7559_v47, 6  ;;  %v7573_v45 = vshrl.u32 %v9769_v30, 16  ;;  %v7583_v30 = vrot.slane %v7581_v9, 5  ;;  %v10091_v9 = vld [vmem:[%s12944_s12 + $0x88] sm:$0x7] }
 0x217   : > { %11712 = vmatprep.subr.bf16.mxu1 %v12461_v16  ;;  %v7553_v31 = vor.u32 %v7552_v53, %v7549_v43  ;;  %v7820_v43 = vshrl.u32 %v10089_v14, 16  ;;  %v7823_v53 = vshll.u32 %v10089_v14, 16 }
 0x218   : > { %v7562_v33 = vor.u32 %v7561_v40, %v7558_v3  ;;  %v7575_v47 = vrot.slane %v7573_v45, 5  ;;  %v10090_v40 = vld [vmem:[%s12944_s12 + $0x80] sm:$0xfc] }
 0x219   : > { %v7554_v3 = vsel %vm6614_vm4, %v7545_v50, %v7553_v31  ;;  %v7817_v50 = vrot.slane %v7815_v61, 3  ;;  %v7822_v1 = vrot.slane %v7820_v43, 2  ;;  %v7825_v31 = vrot.slane %v7823_v53, 3 }
 0x21a   : > { %11713 = vmatpush3.bf16.msra.mxu1 %v12461_v16  ;;  %v7570_v16 = vor.u32 %v7569_v39, %v7566_v55  ;;  %v7579_v8 = vor.u32 %v7578_v28, %v7575_v47  ;;  %v7587_v55 = vor.u32 %v7586_v54, %v7583_v30  ;;  %v7797_v39 = vrot.slane %v7795_v10, 2 }
 0x21b   : > { %11714 = vmatprep.subr.bf16.mxu1 %v12463_v26  ;;  %v7829_v14 = vshrl.u32 %v10090_v40, 16  ;;  %v7832_v29 = vshll.u32 %v10090_v40, 16  ;;  %v7846_v47 = vshrl.u32 %v10092_v21, 16  ;;  %v7849_v28 = vshll.u32 %v10092_v21, 16 }
 0x21c   : > { %v7571_v45 = vsel %vm6614_vm4, %v7562_v33, %v7570_v16  ;;  %v7837_v33 = vshrl.u32 %v10091_v9, 16  ;;  %v7840_v16 = vshll.u32 %v10091_v9, 16  ;;  %v7588_v30 = vsel %vm6614_vm4, %v7579_v8, %v7587_v55  ;;  %v12473_v9 = vld [vmem:[%s15173_s2 + $0x638] sm:$0xff]  }
 0x21d   : > { %11699 = vmatmul.mubr.bf16.gmra.mrb[20].mxu1 %v7520_v48  ;;  %v7805_v48 = vrot.slane %v7803_v58, 2  ;;  %v14430_v58 = vld [vmem:[%s15175_s4 + $0x1] ss:$0 sm:$0xff]  ;;  %v7801_v54 = vor.u32 %v7800_v36, %v7797_v39  ;;  %v7854_v10 = vshrl.u32 %v10093_v34, 16  ;;  %v7826_v43 = vor.u32 %v7825_v31, %v7822_v1 }
 0x21e   : > { %11715 = vmatpush3.bf16.msra.mxu1 %v12463_v26  ;;  %11702 = vmatprep.mubr.bf16.mxu1 %v7537_v42  ;;  %v12469_v26 = vld [vmem:[%s15173_s2 + $0x628] sm:$0xff]   ;;  %v7814_v42 = vrot.slane %v7812_v59, 2  ;;  %v14436_v53 = vrot.slane %v7829_v14, 2  ;;  %v14443_v8 = vrot.slane %v7840_v16, 3  ;;  %v14449_v36 = vrot.slane %v7846_v47, 2 }
 0x21f   : > { %11716 = vmatprep.subr.bf16.mxu1 %v12465_v51  ;;  %v7809_v59 = vor.u32 %v7808_v44, %v7805_v48  ;;  %v14451_v48 = vrot.slane %v7849_v28, 3  ;;  %v14457_v1 = vrot.slane %v7857_v18, 3  ;;  %v10097_v28 = vld [vmem:[%s12944_s12 + $0xb8] sm:$0x7] }
 0x220   : > { %v7818_v61 = vor.u32 %v7817_v50, %v7814_v42  ;;  %v14455_v50 = vrot.slane %v7854_v10, 2 }
 0x221   : > { %v7810_v16 = vsel %vm6065_vm3, %v7801_v54, %v7809_v59 }
 0x222   : > { %11717 = vmatpush3.bf16.msra.mxu1 %v12465_v51  ;;  %v10094_v51 = vld [vmem:[%s12944_s12 + $0xa0] sm:$0xfc] }
 0x223   : > { %11718 = vmatprep.subr.bf16.mxu1 %v12467_v52  ;;  %v7863_v34 = vshrl.u32 %v10094_v51, 16  ;;  %v7866_v44 = vshll.u32 %v10094_v51, 16 }
 0x225   : > { %11703 = vmatmul.mubr.bf16.gmra.mrb[24].mxu1 %v7554_v3  ;;  %v10095_v3 = vld [vmem:[%s12944_s12 + $0xa8] sm:$0x7] }
 0x226   : > { %11719 = vmatpush3.bf16.msra.mxu1 %v12467_v52  ;;  %11706 = vmatprep.mubr.bf16.mxu1 %v7571_v45  ;;  %v14439_v52 = vrot.slane %v7832_v29, 3  ;;  %v14441_v45 = vrot.slane %v7837_v33, 2  ;;  %v10096_v29 = vld [vmem:[%s12944_s12 + $0xb0] sm:$0xfc]  ;;  %v7874_v47 = vshll.u32 %v10095_v3, 16 }
 0x227   : > { %11720 = vmatprep.subr.bf16.mxu1 %v12469_v26  ;;  %v7880_v10 = vshrl.u32 %v10096_v29, 16  ;;  %v7883_v54 = vshll.u32 %v10096_v29, 16 }
 0x228   : > { %v11120_v40 = vpop.f32.mrb[0].mxu1 }
 0x229   : > { %v11838_v55 = vadd.f32 %v11120_v40, %v14293_v13  ;;  %v3321_v39 = vpop.f32.mrb[1].mxu1  ;;  %v7871_v13 = vshrl.u32 %v10095_v3, 16  ;;  %v7827_v40 = vsel %vm6065_vm3, %v7818_v61, %v7826_v43  ;;  %v7888_v3 = vshrl.u32 %v10097_v28, 16 }
 0x22a   : > { %v11839_v42 = vadd.f32 %v3321_v39, %v14300_v20  ;;  %v11121_v21 = vpop.f32.mrb[2].mxu1  ;;  %11721 = vmatpush3.bf16.msra.mxu1 %v12469_v26  ;;  %v14465_v26 = vrot.slane %v7863_v34, 2  ;;  %v7891_v34 = vshll.u32 %v10097_v28, 16  ;;  %v7843_v61 = vor.u32 %v14443_v8, %v14441_v45 }
 0x22b   : > { %v3407_v31 = vadd.f32 %v11838_v55, %v14430_v58  ;;  %v11840_v14 = vadd.f32 %v11121_v21, %v14302_v24  ;;  %v3324_v33 = vpop.f32.mrb[3].mxu1  ;;  %11722 = vmatprep.subr.bf16.mxu1 %v12471_v27  ;;  %v12475_v24 = vld [vmem:[%s15173_s2 + $0x640] sm:$0xff]   ;;  %v14472_v55 = vrot.slane %v7866_v44, 3  ;;  %v7852_v43 = vor.u32 %v14451_v48, %v14449_v36 }
 0x22c   : > { %v3405_v51 = vadd.f32 %v11839_v42, %v14430_v58  ;;  %v11841_v20 = vadd.f32 %v3324_v33, %v14304_v22  ;;  %v7835_v22 = vor.u32 %v14439_v52, %v14436_v53  ;;  %v14483_v21 = vrot.slane %v7871_v13, 2  ;;  %v14486_v53 = vld [vmem:[%s12944_s12 + $0xc0] sm:$0xfc] }
 0x22d   : > { %v3408_v18 = vadd.f32 %v11840_v14, %v14430_v58  ;;  %11707 = vmatmul.mubr.bf16.gmra.mrb[28].mxu1 %v7588_v30  ;;  %v3423_v30 = vmax.f32 %v3407_v31, 0.0  ;;  %v14489_v33 = vrot.slane %v7874_v47, 3  ;;  %v14491_v45 = vrot.slane %v7880_v10, 2 }
 0x22e   : > { %v3406_v59 = vadd.f32 %v11841_v20, %v14430_v58  ;;  %11723 = vmatpush3.bf16.msra.mxu1 %v12471_v27  ;;  %11726 = vmatprep.mubr.bf16.mxu1 %v7810_v16  ;;  %v3421_v44 = vmax.f32 %v3405_v51, 0.0  ;;  %v7860_v27 = vor.u32 %v14457_v1, %v14455_v50  ;;  %v12462_v16 = vld [vmem:[#allocation4 + $0x8] sm:$0xff]   ;;  %v14494_v28 = vrot.slane %v7883_v54, 3 }
 0x22f   : > { %v3424_v39 = vmax.f32 %v3408_v18, 0.0  ;;  %11724 = vmatprep.subr.bf16.mxu1 %v12473_v9  ;;  %v14496_v50 = vrot.slane %v7888_v3, 2  ;;  %v14499_v1 = vld [vmem:[%s12944_s12 + $0xc8] sm:$0x7]  ;;  %v14506_v51 = vrot.slane %v7891_v34, 3  ;;  %v7844_v54 = vsel %vm6065_vm3, %v7835_v22, %v7843_v61 }
 0x230   : > { %v3422_v29 = vmax.f32 %v3406_v59, 0.0  ;;  %v11124_v42 = vpop.f32.mrb[4].mxu1  ;;  %v12479_v59 = vld [vmem:[%s15173_s2 + $0x650] sm:$0xff]   ;;  %v7900_v3 = vshll.u32 %v14486_v53, 16  ;;  %v7905_v34 = vshrl.u32 %v14499_v1, 16  ;;  %v7869_v22 = vor.u32 %v14472_v55, %v14465_v26 }
 0x231   : > { %v3438_v52 = vpack.c.bf16 %v3424_v39, %v3423_v30  ;;  %v11842_v31 = vadd.f32 %v11124_v42, %v14310_v4  ;;  %v3337_v14 = vpop.f32.mrb[5].mxu1  ;;  %v12586_v39 = vld [vmem:[#allocation4] sm:$0xff]   ;;  %v10101_v26 = vld [vmem:[%s12944_s12 + $0xd8] sm:$0x7] }
 0x232   : > { %v11843_v8 = vadd.f32 %v3337_v14, %v14316_v32  ;;  %v11125_v36 = vpop.f32.mrb[6].mxu1  ;;  %v3437_v48 = vpack.c.bf16 %v3422_v29, %v3421_v44  ;;  %11725 = vmatpush3.bf16.msra.mxu1 %v12473_v9  ;;  %v12477_v32 = vld [vmem:[%s15173_s2 + $0x648] sm:$0xff]   ;;  %v7897_v9 = vshrl.u32 %v14486_v53, 16 }
 0x233   : > { %v3411_v13 = vadd.f32 %v11842_v31, %v14430_v58  ;;  %v11844_v4 = vadd.f32 %v11125_v36, %v14318_v17  ;;  %v3340_v47 = vpop.f32.mrb[7].mxu1  ;;  %11742 = vmatprep.subr.bf16.mxu1 %v12475_v24  ;;  %v12464_v17 = vld [vmem:[#allocation4 + $0x10] sm:$0xff]  }
 0x234   : > { %v3409_v20 = vadd.f32 %v11843_v8, %v14430_v58  ;;  %v11845_v10 = vadd.f32 %v3340_v47, %v14320_v46  ;;  %11150 = vmatprep.mubr.bf16.mxu0 %v3437_v48  ;;  %v14520_v46 = vld [vmem:[%s12944_s12 + $0xd0] sm:$0xfc] }
 0x235   : > { %v3412_v18 = vadd.f32 %v11844_v4, %v14430_v58  ;;  %11151 = vmatmul.mubr.bf16.vlgmr.msra.gmra.mrb[32].mxu0 %v3438_v52  ;;  %11727 = vmatmul.mubr.bf16.vlgmr.msra.gmra.mrb[16].mxu1 %v7827_v40  ;;  %v3427_v44 = vmax.f32 %v3411_v13, 0.0  ;;  %v7861_v40 = vsel %vm6065_vm3, %v7852_v43, %v7860_v27  ;;  %v7877_v52 = vor.u32 %v14489_v33, %v14483_v21  ;;  %v12466_v13 = vld [vmem:[#allocation4 + $0x18] sm:$0xff]  }
 0x236   : > { %v3410_v30 = vadd.f32 %v11845_v10, %v14430_v58  ;;  %11167 = vmatpush3.bf16.msra.mxu0 %v12586_v39  ;;  %11743 = vmatpush3.bf16.msra.mxu1 %v12475_v24  ;;  %v3425_v61 = vmax.f32 %v3409_v20, 0.0  ;;  %v7886_v24 = vor.u32 %v14494_v28, %v14491_v45  ;;  %v7894_v43 = vor.u32 %v14506_v51, %v14496_v50  ;;  %v12483_v51 = vld [vmem:[%s15173_s2 + $0x660] sm:$0xff]  }
 0x237   : > { %v3428_v29 = vmax.f32 %v3412_v18, 0.0  ;;  %11168 = vmatprep.subr.bf16.mxu0 %v12462_v16  ;;  %11744 = vmatprep.subr.bf16.mxu1 %v12477_v32  ;;  %v7908_v27 = vshll.u32 %v14499_v1, 16  ;;  %v14535_v21 = vrot.slane %v7897_v9, 2  ;;  %v7914_v33 = vshrl.u32 %v14520_v46, 16 }
 0x238   : > { %v3426_v42 = vmax.f32 %v3410_v30, 0.0  ;;  %v11128_v53 = vpop.f32.mrb[8].mxu1  ;;  %11730 = vmatprep.mubr.bf16.mxu1 %v7844_v54  ;;  %v7902_v50 = vrot.slane %v7900_v3, 3  ;;  %v7917_v20 = vshll.u32 %v14520_v46, 16  ;;  %v7925_v18 = vshll.u32 %v10101_v26, 16 }
 0x239   : > { %v11846_v31 = vadd.f32 %v11128_v53, %v14326_v19  ;;  %v3353_v14 = vpop.f32.mrb[9].mxu1  ;;  %v3440_v8 = vpack.c.bf16 %v3428_v29, %v3427_v44  ;;  %v7910_v9 = vrot.slane %v7908_v27, 3  ;;  %v12485_v27 = vld [vmem:[%s15173_s2 + $0x668] sm:$0xff]  }
 0x23a   : > { %v11847_v55 = vadd.f32 %v3353_v14, %v14331_v60  ;;  %v11129_v36 = vpop.f32.mrb[10].mxu1  ;;  %11169 = vmatpush3.bf16.msra.mxu0 %v12462_v16  ;;  %v3439_v48 = vpack.c.bf16 %v3426_v42, %v3425_v61  ;;  %11745 = vmatpush3.bf16.msra.mxu1 %v12477_v32  ;;  %v12481_v60 = vld [vmem:[%s15173_s2 + $0x658] sm:$0xff]   ;;  %v7907_v16 = vrot.slane %v7905_v34, 2  ;;  %v12468_v32 = vld [vmem:[#allocation4 + $0x20] sm:$0xff]   ;;  %v7895_v34 = vsel %vm6065_vm3, %v7886_v24, %v7894_v43 }
 0x23b   : > { %v3415_v19 = vadd.f32 %v11846_v31, %v14430_v58  ;;  %v11848_v45 = vadd.f32 %v11129_v36, %v14333_v35  ;;  %v3356_v28 = vpop.f32.mrb[11].mxu1  ;;  %11170 = vmatprep.subr.bf16.mxu0 %v12464_v17  ;;  %11746 = vmatprep.subr.bf16.mxu1 %v12479_v59  ;;  %v7878_v35 = vsel %vm6065_vm3, %v7869_v22, %v7877_v52  ;;  %v7919_v61 = vrot.slane %v7917_v20, 3  ;;  %v12472_v36 = vld [vmem:[#allocation4 + $0x30] sm:$0xff]  }
 0x23c   : > { %v3413_v1 = vadd.f32 %v11847_v55, %v14430_v58  ;;  %v11849_v4 = vadd.f32 %v3356_v28, %v14335_v37  ;;  %11154 = vmatprep.mubr.bf16.mxu0 %v3439_v48  ;;  %v7922_v37 = vshrl.u32 %v10101_v26, 16  ;;  %v7903_v29 = vor.u32 %v7902_v50, %v14535_v21  ;;  %v12487_v48 = vld [vmem:[%s15173_s2 + $0x670] sm:$0xff]  }
 0x23d   : > { %v3416_v47 = vadd.f32 %v11848_v45, %v14430_v58  ;;  %11155 = vmatmul.mubr.bf16.gmra.mrb[36].mxu0 %v3440_v8  ;;  %11731 = vmatmul.mubr.bf16.gmra.mrb[20].mxu1 %v7861_v40  ;;  %v3431_v54 = vmax.f32 %v3415_v19, 0.0  ;;  %v7916_v40 = vrot.slane %v7914_v33, 2  ;;  %v7927_v31 = vrot.slane %v7925_v18, 3  ;;  %v10127_v19 = vld [vmem:[%s12944_s12 + $0x68] sm:$0xf] }
 0x23e   : > { %v3414_v10 = vadd.f32 %v11849_v4, %v14430_v58  ;;  %11171 = vmatpush3.bf16.msra.mxu0 %v12464_v17  ;;  %11747 = vmatpush3.bf16.msra.mxu1 %v12479_v59  ;;  %v3429_v30 = vmax.f32 %v3413_v1, 0.0  ;;  %v7911_v59 = vor.u32 %v7910_v9, %v7907_v16  ;;  %v7924_v24 = vrot.slane %v7922_v37, 2  ;;  %v10128_v16 = vld [vmem:[%s12944_s12 + $0x70] sm:$0xf0]  ;;  %v10129_v9 = vld [vmem:[%s12944_s12 + $0x78] sm:$0xf] }
 0x23f   : > { %v3432_v3 = vmax.f32 %v3416_v47, 0.0  ;;  %11172 = vmatprep.subr.bf16.mxu0 %v12466_v13  ;;  %11748 = vmatprep.subr.bf16.mxu1 %v12481_v60  ;;  %v7920_v33 = vor.u32 %v7919_v61, %v7916_v40  ;;  %v8149_v47 = vrot.slane %v10127_v19, 4  ;;  %v8151_v20 = vrot.slane %v10128_v16, 4  ;;  %v12476_v37 = vld [vmem:[%s15173_s2 + $0x280] sm:$0xff]   ;;  %v12480_v61 = vld [vmem:[%s15173_s2 + $0x290] sm:$0xff]  }
 0x240   : > { %v3430_v39 = vmax.f32 %v3414_v10, 0.0  ;;  %v11132_v44 = vpop.f32.mrb[12].mxu1  ;;  %11734 = vmatprep.mubr.bf16.mxu1 %v7878_v35  ;;  %v10130_v10 = vld [vmem:[%s12944_s12 + $0x80] sm:$0xf0]  ;;  %v10168_v16 = vld [vmem:[%s12944_s12 + $0x70] sm:$0xe0] }
 0x241   : > { %v11850_v46 = vadd.f32 %v11132_v44, %v14341_v57  ;;  %v3369_v22 = vpop.f32.mrb[13].mxu1  ;;  %v3442_v17 = vpack.c.bf16 %v3432_v3, %v3431_v54  ;;  %v12470_v57 = vld [vmem:[#allocation4 + $0x28] sm:$0xff]   ;;  %v8152_v3 = vrot.slane %v10129_v9, 4 }
 0x242   : > { %v11851_v42 = vadd.f32 %v3369_v22, %v14346_v0  ;;  %v11133_v53 = vpop.f32.mrb[14].mxu1  ;;  %11173 = vmatpush3.bf16.msra.mxu0 %v12466_v13  ;;  %v3441_v52 = vpack.c.bf16 %v3430_v39, %v3429_v30  ;;  %11749 = vmatpush3.bf16.msra.mxu1 %v12481_v60  ;;  %v10126_v13 = vld [vmem:[%s12944_s12 + $0x60] sm:$0xf0]  ;;  %v10131_v54 = vld [vmem:[%s12944_s12 + $0x88] sm:$0xf]  ;;  %v8154_v30 = vrot.slane %v10130_v10, 4 }
 0x243   : > { %v3419_v14 = vadd.f32 %v11850_v46, %v14430_v58  ;;  %v11852_v8 = vadd.f32 %v11133_v53, %v14348_v2  ;;  %v3372_v43 = vpop.f32.mrb[15].mxu1  ;;  %11174 = vmatprep.subr.bf16.mxu0 %v12468_v32  ;;  %11750 = vmatprep.subr.bf16.mxu1 %v12483_v51  ;;  %v7912_v2 = vsel %vm6065_vm3, %v7903_v29, %v7911_v59  ;;  %v8148_v4 = vrot.slane %v10126_v13, 4  ;;  %v12493_v29 = vld [vmem:[%s15173_s2 + $0x688] sm:$0xff]   ;;  %v10132_v46 = vld [vmem:[%s12944_s12 + $0x90] sm:$0xf0]  ;;  %v12499_v13 = vld [vmem:[%s15173_s2 + $0x6a0] sm:$0xff]  }
 0x244   : > { %v3417_v0 = vadd.f32 %v11851_v42, %v14430_v58  ;;  %v11853_v26 = vadd.f32 %v3372_v43, %v14351_v12  ;;  %11158 = vmatprep.mubr.bf16.mxu0 %v3441_v52  ;;  %v7928_v12 = vor.u32 %v7927_v31, %v7924_v24  ;;  %v8155_v39 = vrot.slane %v10131_v54, 4  ;;  %v10133_v22 = vld [vmem:[%s12944_s12 + $0x98] sm:$0xf]  ;;  %v10135_v59 = vld [vmem:[%s12944_s12 + $0xa8] sm:$0xf] }
 0x245   : > { %v3420_v55 = vadd.f32 %v11852_v8, %v14430_v58  ;;  %11159 = vmatmul.mubr.bf16.gmra.mrb[40].mxu0 %v3442_v17  ;;  %11735 = vmatmul.mubr.bf16.gmra.mrb[24].mxu1 %v7895_v34  ;;  %v3435_v45 = vmax.f32 %v3419_v14, 0.0  ;;  %v8150_v18 = vsel %vm544_vm2, %v8148_v4, %v8149_v47  ;;  %v12491_v34 = vld [vmem:[%s15173_s2 + $0x680] sm:$0xff]   ;;  %v8153_v44 = vsel %vm544_vm2, %v8151_v20, %v8152_v3  ;;  %v12482_v24 = vld [vmem:[%s15173_s2 + $0x298] sm:$0xff]   ;;  %v10136_v8 = vld [vmem:[%s12944_s12 + $0xb0] sm:$0xf0] }
 0x246   : > { %v3418_v21 = vadd.f32 %v11853_v26, %v14430_v58  ;;  %11175 = vmatpush3.bf16.msra.mxu0 %v12468_v32  ;;  %11751 = vmatpush3.bf16.msra.mxu1 %v12483_v51  ;;  %v3433_v60 = vmax.f32 %v3417_v0, 0.0  ;;  %v12474_v32 = vld [vmem:[#allocation4 + $0x38] sm:$0xff]   ;;  %v7929_v35 = vsel %vm6065_vm3, %v7920_v33, %v7928_v12  ;;  %v8156_v40 = vsel %vm544_vm2, %v8154_v30, %v8155_v39  ;;  %v10134_v17 = vld [vmem:[%s12944_s12 + $0xa0] sm:$0xf0]  ;;  %v10139_v0 = vld [vmem:[%s12944_s12 + $0xc8] sm:$0xf] }
 0x247   : > { %v3436_v28 = vmax.f32 %v3420_v55, 0.0  ;;  %11176 = vmatprep.subr.bf16.mxu0 %v12470_v57  ;;  %11752 = vmatprep.subr.bf16.mxu1 %v12485_v27  ;;  %v12489_v51 = vld [vmem:[%s15173_s2 + $0x678] sm:$0xff]   ;;  %v8158_v42 = vrot.slane %v10133_v22, 4  ;;  %v8160_v53 = vrot.slane %v10134_v17, 4  ;;  %v8161_v52 = vrot.slane %v10135_v59, 4  ;;  %v12501_v47 = vld [vmem:[%s15173_s2 + $0x6a8] sm:$0xff]  }
 0x248   : > { %v3434_v50 = vmax.f32 %v3418_v21, 0.0  ;;  %11738 = vmatprep.mubr.bf16.mxu1 %v7912_v2  ;;  %v12497_v14 = vld [vmem:[%s15173_s2 + $0x698] sm:$0xff]   ;;  %v10166_v26 = vld [vmem:[%s12944_s12 + $0x60] sm:$0xe0]  ;;  %v10167_v55 = vld [vmem:[%s12944_s12 + $0x68] sm:$0x3f] }
 0x249   : > { %v3444_v1 = vpack.c.bf16 %v3436_v28, %v3435_v45  ;;  %v8162_v43 = vsel %vm544_vm2, %v8160_v53, %v8161_v52  ;;  %v8375_v21 = vshrl.u32 %v10166_v26, 16  ;;  %v8378_v33 = vshll.u32 %v10166_v26, 16  ;;  %v12486_v45 = vld [vmem:[%s15173_s2 + $0x2a8] sm:$0xff]   ;;  %v9618_v28 = vld [vmem:[%s12944_s12 + $0x10] sm:$0xf0] }
 0x24a   : > { %11177 = vmatpush3.bf16.msra.mxu0 %v12470_v57  ;;  %v3443_v58 = vpack.c.bf16 %v3434_v50, %v3433_v60  ;;  %11753 = vmatpush3.bf16.msra.mxu1 %v12485_v27  ;;  %v10137_v57 = vld [vmem:[%s12944_s12 + $0xb8] sm:$0xf]  ;;  %v10138_v27 = vld [vmem:[%s12944_s12 + $0xc0] sm:$0xf0]  ;;  %v8383_v12 = vshrl.u32 %v10167_v55, 16  ;;  %v8386_v19 = vshll.u32 %v10167_v55, 16 }
 0x24b   : > { %11178 = vmatprep.subr.bf16.mxu0 %v12472_v36  ;;  %11754 = vmatprep.subr.bf16.mxu1 %v12487_v48  ;;  %v8164_v2 = vrot.slane %v10137_v57, 4  ;;  %v9619_v60 = vld [vmem:[%s12944_s12 + $0x18] sm:$0xf]  ;;  %v14635_v50 = vld [vmem:[%s12944_s12 + $0x20] sm:$0xf0]  ;;  %v8380_v9 = vrot.slane %v8378_v33, 6 }
 0x24c   : > { %11162 = vmatprep.mubr.bf16.mxu0 %v3443_v58  ;;  %v8385_v20 = vrot.slane %v8383_v12, 5  ;;  %v8388_v10 = vrot.slane %v8386_v19, 6  ;;  %v8395_v54 = vshll.u32 %v10168_v16, 16  ;;  %v10171_v30 = vld [vmem:[%s12944_s12 + $0x88] sm:$0x3f]  ;;  %v3868_v39 = vrot.slane %v9618_v28, 4 }
 0x24d   : > { %11163 = vmatmul.mubr.bf16.gmra.mrb[44].mxu0 %v3444_v1  ;;  %11739 = vmatmul.mubr.bf16.gmra.mrb[28].mxu1 %v7929_v35  ;;  %v10169_v1 = vld [vmem:[%s12944_s12 + $0x78] sm:$0x3f]  ;;  %v12503_v17 = vld [vmem:[%s15173_s2 + $0x6b0] sm:$0xff]   ;;  %v12492_v28 = vld [vmem:[%s15173_s2 + $0x240] sm:$0xff]  }
 0x24e   : > { %11179 = vmatpush3.bf16.msra.mxu0 %v12472_v36  ;;  %11182 = vmatprep.mubr.bf16.mxu0 %v14152_v38  ;;  %v12478_v38 = vld [vmem:[%s15173_s2 + $0x288] sm:$0xff]   ;;  %v12484_v36 = vld [vmem:[%s15173_s2 + $0x2a0] sm:$0xff]   ;;  %v10141_v35 = vld [vmem:[%s12944_s12 + $0xd8] sm:$0xf]  ;;  %v8400_v3 = vshrl.u32 %v10169_v1, 16  ;;  %v8397_v52 = vrot.slane %v8395_v54, 6 }
 0x24f   : > { %11180 = vmatprep.subr.bf16.mxu0 %v12474_v32  ;;  %11755 = vmatpush3.bf16.msra.mxu1 %v12487_v48  ;;  %v8166_v48 = vrot.slane %v10138_v27, 4  ;;  %v9623_v57 = vld [vmem:[%s12944_s12 + $0x38] sm:$0xf]  ;;  %v9626_v54 = vld [vmem:[%s12944_s12 + $0x50] sm:$0xf0] }
 0x250   : > { %11756 = vmatprep.subr.bf16.mxu1 %v12489_v51  ;;  %11758 = vmatprep.mubr.bf16.mxu1 %v8150_v18  ;;  %v8392_v18 = vshrl.u32 %v10168_v16, 16  ;;  %v12505_v27 = vld [vmem:[%s15173_s2 + $0x6b8] sm:$0xff]   ;;  %v3875_v12 = vrot.slane %v9623_v57, 4 }
 0x252   : > { %11181 = vmatpush3.bf16.msra.mxu0 %v12474_v32  ;;  %v10140_v32 = vld [vmem:[%s12944_s12 + $0xd0] sm:$0xf0]  ;;  %v8394_v53 = vrot.slane %v8392_v18, 5  ;;  %v9625_v18 = vld [vmem:[%s12944_s12 + $0x48] sm:$0xf] }
 0x253   : > { %11198 = vmatprep.subr.bf16.mxu0 %v12476_v37  ;;  %11757 = vmatpush3.bf16.msra.mxu1 %v12489_v51  ;;  %v8377_v51 = vrot.slane %v8375_v21, 5  ;;  %v10175_v21 = vld [vmem:[%s12944_s12 + $0xa8] sm:$0x3f] }
 0x254   : > { %11774 = vmatprep.subr.bf16.mxu1 %v12491_v34  ;;  %v8398_v19 = vor.u32 %v8397_v52, %v8394_v53  ;;  %v12496_v53 = vld [vmem:[%s15173_s2 + $0x250] sm:$0xff]  }
 0x255   : > { %11183 = vmatmul.mubr.bf16.vlgmr.msra.gmra.mrb[32].mxu0 %v14148_v25  ;;  %v8157_v25 = vrot.slane %v10132_v46, 4  ;;  %v8381_v59 = vor.u32 %v8380_v9, %v8377_v51  ;;  %v9624_v51 = vld [vmem:[%s12944_s12 + $0x40] sm:$0xf0] }
 0x256   : > { %11186 = vmatprep.mubr.bf16.mxu0 %v14186_v6  ;;  %11199 = vmatpush3.bf16.msra.mxu0 %v12476_v37  ;;  %v12495_v6 = vld [vmem:[%s15173_s2 + $0x690] sm:$0xff]   ;;  %v10170_v37 = vld [vmem:[%s12944_s12 + $0x80] sm:$0xe0] }
 0x257   : > { %11200 = vmatprep.subr.bf16.mxu0 %v12478_v38  ;;  %11759 = vmatmul.mubr.bf16.vlgmr.msra.gmra.mrb[16].mxu1 %v8153_v44  ;;  %v8159_v31 = vsel %vm544_vm2, %v8157_v25, %v8158_v42  ;;  %v3871_v44 = vrot.slane %v14635_v50, 4  ;;  %v8409_v46 = vshrl.u32 %v10170_v37, 16  ;;  %v8412_v22 = vshll.u32 %v10170_v37, 16 }
 0x258   : > { %11775 = vmatpush3.bf16.msra.mxu1 %v12491_v34  ;;  %11762 = vmatprep.mubr.bf16.mxu1 %v8156_v40  ;;  %v8403_v34 = vshll.u32 %v10169_v1, 16  ;;  %v8170_v40 = vrot.slane %v10141_v35, 4  ;;  %v8417_v25 = vshrl.u32 %v10171_v30, 16  ;;  %v8420_v42 = vshll.u32 %v10171_v30, 16  ;;  %v12494_v35 = vld [vmem:[%s15173_s2 + $0x248] sm:$0xff]  }
 0x259   : > { %11776 = vmatprep.subr.bf16.mxu1 %v12493_v29  ;;  %v8411_v26 = vrot.slane %v8409_v46, 5  ;;  %v8414_v55 = vrot.slane %v8412_v22, 6  ;;  %v10177_v46 = vld [vmem:[%s12944_s12 + $0xb8] sm:$0x3f]  ;;  %v3877_v22 = vrot.slane %v9624_v51, 4 }
 0x25a   : > { %11201 = vmatpush3.bf16.msra.mxu0 %v12478_v38  ;;  %v3869_v38 = vrot.slane %v9619_v60, 4 }
 0x25b   : > { %11202 = vmatprep.subr.bf16.mxu0 %v12480_v61  ;;  %v8415_v9 = vor.u32 %v8414_v55, %v8411_v26 }
 0x25c   : > { %11777 = vmatpush3.bf16.msra.mxu1 %v12493_v29  ;;  %v14655_v29 = vld [vmem:[%s12944_s12 + $0x28] sm:$0xf] }
 0x25d   : > { %11187 = vmatmul.mubr.bf16.gmra.mrb[36].mxu0 %v14178_v11  ;;  %11778 = vmatprep.subr.bf16.mxu1 %v12495_v6  ;;  %v8163_v11 = vrot.slane %v10136_v8, 4  ;;  %v3872_v8 = vrot.slane %v14655_v29, 4  ;;  %v10176_v29 = vld [vmem:[%s12944_s12 + $0xb0] sm:$0xe0] }
 0x25e   : > { %11190 = vmatprep.mubr.bf16.mxu0 %v14224_v62  ;;  %11203 = vmatpush3.bf16.msra.mxu0 %v12480_v61  ;;  %v8167_v62 = vrot.slane %v10139_v0, 4  ;;  %v8389_v61 = vor.u32 %v8388_v10, %v8385_v20  ;;  %v8460_v52 = vshrl.u32 %v10176_v29, 16 }
 0x25f   : > { %11204 = vmatprep.subr.bf16.mxu0 %v12482_v24  ;;  %11763 = vmatmul.mubr.bf16.gmra.mrb[20].mxu1 %v8159_v31  ;;  %v8165_v4 = vsel %vm544_vm2, %v8163_v11, %v8164_v2  ;;  %v8405_v31 = vrot.slane %v8403_v34, 6  ;;  %v10173_v11 = vld [vmem:[%s12944_s12 + $0x98] sm:$0x3f]  ;;  %v3873_v10 = vsel %vm544_vm2, %v3871_v44, %v3872_v8 }
 0x260   : > { %11779 = vmatpush3.bf16.msra.mxu1 %v12495_v6  ;;  %11766 = vmatprep.mubr.bf16.mxu1 %v8162_v43  ;;  %v8168_v58 = vsel %vm544_vm2, %v8166_v48, %v8167_v62  ;;  %v12490_v6 = vld [vmem:[%s15173_s2 + $0x2b8] sm:$0xff]   ;;  %v9622_v43 = vld [vmem:[%s12944_s12 + $0x30] sm:$0xf0]  ;;  %v8390_v2 = vsel %vm6614_vm4, %v8381_v59, %v8389_v61  ;;  %v8419_v48 = vrot.slane %v8417_v25, 5  ;;  %v8422_v62 = vrot.slane %v8420_v42, 6 }
 0x261   : > { %11780 = vmatprep.subr.bf16.mxu1 %v12497_v14  ;;  %v3874_v33 = vrot.slane %v9622_v43, 4  ;;  %v8434_v16 = vshrl.u32 %v10173_v11, 16  ;;  %v8437_v1 = vshll.u32 %v10173_v11, 16  ;;  %v3880_v61 = vrot.slane %v9626_v54, 4  ;;  %v10178_v42 = vld [vmem:[%s12944_s12 + $0xc0] sm:$0xe0] }
 0x262   : > { %11205 = vmatpush3.bf16.msra.mxu0 %v12482_v24  ;;  %v8402_v24 = vrot.slane %v8400_v3, 5  ;;  %v8423_v20 = vor.u32 %v8422_v62, %v8419_v48  ;;  %v9627_v3 = vld [vmem:[%s12944_s12 + $0x58] sm:$0xf]  ;;  %v8480_v26 = vshll.u32 %v10178_v42, 16  ;;  %v9628_v62 = vld [vmem:[%s12944_s12 + $0x60] sm:$0xf0] }
 0x263   : > { %11206 = vmatprep.subr.bf16.mxu0 %v12484_v36  ;;  %v3876_v37 = vsel %vm544_vm2, %v3874_v33, %v3875_v12  ;;  %v3881_v25 = vrot.slane %v9627_v3, 4 }
 0x264   : > { %11781 = vmatpush3.bf16.msra.mxu1 %v12497_v14  ;;  %v3870_v14 = vsel %vm544_vm2, %v3868_v39, %v3869_v38  ;;  %v8436_v39 = vrot.slane %v8434_v16, 5  ;;  %v8439_v38 = vrot.slane %v8437_v1, 6  ;;  %v8424_v59 = vsel %vm6614_vm4, %v8415_v9, %v8423_v20  ;;  %v10180_v16 = vld [vmem:[%s12944_s12 + $0xd0] sm:$0xe0]  ;;  %v12500_v9 = vld [vmem:[%s15173_s2 + $0x260] sm:$0xff]  }
 0x265   : > { %11191 = vmatmul.mubr.bf16.gmra.mrb[40].mxu0 %v14221_v7  ;;  %11782 = vmatprep.subr.bf16.mxu1 %v12499_v13  ;;  %v12488_v7 = vld [vmem:[%s15173_s2 + $0x2b0] sm:$0xff]   ;;  %v3882_v48 = vsel %vm544_vm2, %v3880_v61, %v3881_v25  ;;  %v8494_v54 = vshrl.u32 %v10180_v16, 16  ;;  %v8497_v3 = vshll.u32 %v10180_v16, 16 }
 0x266   : > { %11194 = vmatprep.mubr.bf16.mxu0 %v14247_v41  ;;  %11207 = vmatpush3.bf16.msra.mxu0 %v12484_v36  ;;  %v8169_v41 = vrot.slane %v10140_v32, 4  ;;  %v10172_v36 = vld [vmem:[%s12944_s12 + $0x90] sm:$0xe0]  ;;  %v8454_v32 = vshll.u32 %v10175_v21, 16  ;;  %v8440_v43 = vor.u32 %v8439_v38, %v8436_v39 }
 0x267   : > { %11208 = vmatprep.subr.bf16.mxu0 %v12486_v45  ;;  %11767 = vmatmul.mubr.bf16.gmra.mrb[24].mxu1 %v8165_v4  ;;  %v8429_v60 = vshll.u32 %v10172_v36, 16 }
 0x268   : > { %11783 = vmatpush3.bf16.msra.mxu1 %v12499_v13  ;;  %11770 = vmatprep.mubr.bf16.mxu1 %v8168_v58  ;;  %v8171_v0 = vsel %vm544_vm2, %v8169_v41, %v8170_v40  ;;  %v10174_v13 = vld [vmem:[%s12944_s12 + $0xa0] sm:$0xe0]  ;;  %v8451_v58 = vshrl.u32 %v10175_v21, 16  ;;  %v8456_v40 = vrot.slane %v8454_v32, 6  ;;  %v8462_v21 = vrot.slane %v8460_v52, 5  ;;  %v12504_v52 = vld [vmem:[%s15173_s2 + $0x270] sm:$0xff]  }
 0x269   : > { %11784 = vmatprep.subr.bf16.mxu1 %v12501_v47  ;;  %v8443_v4 = vshrl.u32 %v10174_v13, 16  ;;  %v10181_v32 = vld [vmem:[%s12944_s12 + $0xd8] sm:$0x3f] }
 0x26a   : > { %11209 = vmatpush3.bf16.msra.mxu0 %v12486_v45  ;;  %v8406_v45 = vor.u32 %v8405_v31, %v8402_v24  ;;  %v8453_v44 = vrot.slane %v8451_v58, 5  ;;  %v8463_v24 = vshll.u32 %v10176_v29, 16  ;;  %v8468_v31 = vshrl.u32 %v10177_v46, 16  ;;  %v12502_v29 = vld [vmem:[%s15173_s2 + $0x268] sm:$0xff]  }
 0x26b   : > { %11210 = vmatprep.subr.bf16.mxu0 %v12488_v7  ;;  %v8445_v50 = vrot.slane %v8443_v4, 5  ;;  %v8482_v4 = vrot.slane %v8480_v26, 6  ;;  %v9589_v26 = vld [vmem:[%s12944_s12 + $0x28] sm:$0x7] }
 0x26c   : > { %11785 = vmatpush3.bf16.msra.mxu1 %v12501_v47  ;;  %v8446_v47 = vshll.u32 %v10174_v13, 16  ;;  %v8407_v34 = vsel %vm6614_vm4, %v8398_v19, %v8406_v45  ;;  %v9629_v13 = vld [vmem:[%s12944_s12 + $0x68] sm:$0xf]  ;;  %v8465_v33 = vrot.slane %v8463_v24, 6  ;;  %v8470_v12 = vrot.slane %v8468_v31, 5 }
 0x26d   : > { %11195 = vmatmul.mubr.bf16.gmra.mrb[44].mxu0 %v14241_v23  ;;  %11786 = vmatprep.subr.bf16.mxu1 %v12503_v17  ;;  %v8426_v23 = vshrl.u32 %v10172_v36, 16  ;;  %v9630_v45 = vld [vmem:[%s12944_s12 + $0x70] sm:$0xf0]  ;;  %v3884_v51 = vrot.slane %v9629_v13, 4 }
 0x26e   : > { %11211 = vmatpush3.bf16.msra.mxu0 %v12488_v7  ;;  %11214 = vmatprep.mubr.bf16.mxu0 %v3870_v14  ;;  %v8431_v7 = vrot.slane %v8429_v60, 6  ;;  %v8448_v41 = vrot.slane %v8446_v47, 6  ;;  %v8471_v14 = vshll.u32 %v10177_v46, 16  ;;  %v3886_v20 = vrot.slane %v9630_v45, 4  ;;  %v9592_v45 = vld [vmem:[%s12944_s12 + $0x40] sm:$0xf8] }
 0x26f   : > { %11212 = vmatprep.subr.bf16.mxu0 %v12490_v6  ;;  %11771 = vmatmul.mubr.bf16.gmra.mrb[28].mxu1 %v8171_v0  ;;  %v8428_v30 = vrot.slane %v8426_v23, 5  ;;  %v8477_v0 = vshrl.u32 %v10178_v42, 16  ;;  %v3796_v16 = vrot.slane %v9592_v45, 3 }
 0x270   : > { %11787 = vmatpush3.bf16.msra.mxu1 %v12503_v17  ;;  %11790 = vmatprep.mubr.bf16.mxu1 %v8390_v2  ;;  %v3878_v17 = vrot.slane %v9625_v18, 4  ;;  %v8449_v57 = vor.u32 %v8448_v41, %v8445_v50  ;;  %v12498_v2 = vld [vmem:[%s15173_s2 + $0x258] sm:$0xff]   ;;  %v8473_v19 = vrot.slane %v8471_v14, 6  ;;  %v9632_v41 = vld [vmem:[%s12944_s12 + $0x80] sm:$0xf0] }
 0x271   : > { %11788 = vmatprep.subr.bf16.mxu1 %v12505_v27  ;;  %v8432_v8 = vor.u32 %v8431_v7, %v8428_v30  ;;  %v8479_v1 = vrot.slane %v8477_v0, 5  ;;  %v8505_v30 = vshll.u32 %v10181_v32, 16  ;;  %v9588_v0 = vld [vmem:[%s12944_s12 + $0x20] sm:$0xf8] }
 0x272   : > { %11213 = vmatpush3.bf16.msra.mxu0 %v12490_v6  ;;  %v10179_v6 = vld [vmem:[%s12944_s12 + $0xc8] sm:$0x3f]  ;;  %v3879_v11 = vsel %vm544_vm2, %v3877_v22, %v3878_v17  ;;  %v8474_v18 = vor.u32 %v8473_v19, %v8470_v12  ;;  %v9587_v22 = vld [vmem:[%s12944_s12 + $0x18] sm:$0x7]  ;;  %v8496_v17 = vrot.slane %v8494_v54, 5 }
 0x273   : > { %11230 = vmatprep.subr.bf16.mxu0 %v12492_v28  ;;  %v8485_v55 = vshrl.u32 %v10179_v6, 16  ;;  %v8488_v36 = vshll.u32 %v10179_v6, 16  ;;  %v8441_v23 = vsel %vm6614_vm4, %v8432_v8, %v8440_v43  ;;  %v8483_v7 = vor.u32 %v8482_v4, %v8479_v1  ;;  %v12508_v12 = vld [vmem:[%s15173_s2 + $0x2c8] sm:$0xff]   ;;  %v12509_v4 = vld [vmem:[%s15173_s2 + $0x2d0] sm:$0xff]  }
 0x274   : > { %11789 = vmatpush3.bf16.msra.mxu1 %v12505_v27  ;;  %v8457_v27 = vor.u32 %v8456_v40, %v8453_v44  ;;  %v9633_v44 = vld [vmem:[%s12944_s12 + $0x88] sm:$0xf]  ;;  %v9586_v40 = vld [vmem:[%s12944_s12 + $0x10] sm:$0xf8]  ;;  %v8507_v25 = vrot.slane %v8505_v30, 6  ;;  %v3889_v6 = vrot.slane %v9632_v41, 4 }
 0x275   : > { %11215 = vmatmul.mubr.bf16.vlgmr.msra.gmra.mrb[48].mxu0 %v3873_v10  ;;  %v8487_v47 = vrot.slane %v8485_v55, 5  ;;  %v8490_v58 = vrot.slane %v8488_v36, 6  ;;  %v3787_v24 = vrot.slane %v9586_v40, 3  ;;  %v3788_v31 = vrot.slane %v9587_v22, 3  ;;  %v9590_v55 = vld [vmem:[%s12944_s12 + $0x30] sm:$0xf8] }
 0x276   : > { %11231 = vmatpush3.bf16.msra.mxu0 %v12492_v28  ;;  %11218 = vmatprep.mubr.bf16.mxu0 %v3876_v37  ;;  %v9631_v28 = vld [vmem:[%s12944_s12 + $0x78] sm:$0xf]  ;;  %v8458_v60 = vsel %vm6614_vm4, %v8449_v57, %v8457_v27  ;;  %v8466_v37 = vor.u32 %v8465_v33, %v8462_v21  ;;  %v3793_v13 = vrot.slane %v9590_v55, 3  ;;  %v9666_v41 = vld [vmem:[%s12944_s12 + $0x10] sm:$0xe0] }
 0x277   : > { %11232 = vmatprep.subr.bf16.mxu0 %v12494_v35  ;;  %11791 = vmatmul.mubr.bf16.vlgmr.msra.gmra.mrb[16].mxu1 %v8407_v34  ;;  %v3887_v10 = vrot.slane %v9631_v28, 4  ;;  %v8502_v34 = vshrl.u32 %v10181_v32, 16  ;;  %v8491_v39 = vor.u32 %v8490_v58, %v8487_v47  ;;  %v12506_v57 = vld [vmem:[%s15173_s2 + $0x278] sm:$0xff]   ;;  %v3789_v27 = vsel %vm3786_vm5, %v3787_v24, %v3788_v31  ;;  %v9593_v28 = vld [vmem:[%s12944_s12 + $0x48] sm:$0x7]  ;;  %v12513_v22 = vld [vmem:[%s15173_s2 + $0x2f0] sm:$0xff]  }
 0x278   : > { %11794 = vmatprep.mubr.bf16.mxu1 %v8424_v59  ;;  %v8475_v46 = vsel %vm6614_vm4, %v8466_v37, %v8474_v18  ;;  %v8499_v59 = vrot.slane %v8497_v3, 6  ;;  %v9591_v36 = vld [vmem:[%s12944_s12 + $0x38] sm:$0x7]  ;;  %v3797_v1 = vrot.slane %v9593_v28, 3  ;;  %v12511_v3 = vld [vmem:[%s15173_s2 + $0x2e0] sm:$0xff]  }
 0x279   : > { %v3888_v50 = vsel %vm544_vm2, %v3886_v20, %v3887_v10  ;;  %v8504_v61 = vrot.slane %v8502_v34, 5  ;;  %v8492_v42 = vsel %vm6614_vm4, %v8483_v7, %v8491_v39  ;;  %v3794_v21 = vrot.slane %v9591_v36, 3  ;;  %v9597_v20 = vld [vmem:[%s12944_s12 + $0x68] sm:$0x7]  ;;  %v9598_v10 = vld [vmem:[%s12944_s12 + $0x70] sm:$0xf8] }
 0x27a   : > { %11233 = vmatpush3.bf16.msra.mxu0 %v12494_v35  ;;  %v3883_v35 = vrot.slane %v9628_v62, 4  ;;  %v8500_v14 = vor.u32 %v8499_v59, %v8496_v17  ;;  %v12507_v62 = vld [vmem:[%s15173_s2 + $0x2c0] sm:$0xff]   ;;  %v3798_v32 = vsel %vm3786_vm5, %v3796_v16, %v3797_v1  ;;  %v9599_v37 = vld [vmem:[%s12944_s12 + $0x78] sm:$0x7]  ;;  %v3803_v54 = vrot.slane %v9597_v20, 3  ;;  %v12512_v39 = vld [vmem:[%s15173_s2 + $0x2e8] sm:$0xff]  }
 0x27b   : > { %11234 = vmatprep.subr.bf16.mxu0 %v12496_v53  ;;  %v8508_v8 = vor.u32 %v8507_v25, %v8504_v61  ;;  %v3795_v19 = vsel %vm3786_vm5, %v3793_v13, %v3794_v21  ;;  %v3805_v34 = vrot.slane %v9598_v10, 3  ;;  %v3806_v30 = vrot.slane %v9599_v37, 3  ;;  %v12514_v25 = vld [vmem:[%s15173_s2 + $0x2f8] sm:$0xff]   ;;  %v9672_v55 = vld [vmem:[%s12944_s12 + $0x40] sm:$0xe0]  ;;  %v12517_v13 = vld [vmem:[%s15173_s2 + $0x310] sm:$0xff]  }
 0x27c   : > { %v3885_v38 = vsel %vm544_vm2, %v3883_v35, %v3884_v51  ;;  %v12510_v35 = vld [vmem:[%s15173_s2 + $0x2d8] sm:$0xff]   ;;  %v4240_v17 = vrot.slane %v9666_v41, 5  ;;  %v9673_v36 = vld [vmem:[%s12944_s12 + $0x48] sm:$0x1f]  ;;  %v9676_v28 = vld [vmem:[%s12944_s12 + $0x60] sm:$0xe0] }
 0x27d   : > { %11219 = vmatmul.mubr.bf16.gmra.mrb[52].mxu0 %v3879_v11  ;;  %v8509_v11 = vsel %vm6614_vm4, %v8500_v14, %v8508_v8  ;;  %v9671_v24 = vld [vmem:[%s12944_s12 + $0x38] sm:$0x1f]  ;;  %v12515_v8 = vld [vmem:[%s15173_s2 + $0x300] sm:$0xff]   ;;  %v4255_v1 = vrot.slane %v9676_v28, 5  ;;  %v9681_v10 = vld [vmem:[%s12944_s12 + $0x88] sm:$0x1f] }
 0x27e   : > { %11235 = vmatpush3.bf16.msra.mxu0 %v12496_v53  ;;  %11222 = vmatprep.mubr.bf16.mxu0 %v3882_v48  ;;  %v3890_v53 = vrot.slane %v9633_v44, 4  ;;  %v3791_v48 = vrot.slane %v9589_v26, 3  ;;  %v9667_v44 = vld [vmem:[%s12944_s12 + $0x18] sm:$0x1f]  ;;  %v9680_v20 = vld [vmem:[%s12944_s12 + $0x80] sm:$0xe0] }
 0x27f   : > { %11236 = vmatprep.subr.bf16.mxu0 %v12498_v2  ;;  %11795 = vmatmul.mubr.bf16.gmra.mrb[20].mxu1 %v8441_v23  ;;  %v9594_v23 = vld [vmem:[%s12944_s12 + $0x50] sm:$0xf8]  ;;  %v4241_v59 = vrot.slane %v9667_v44, 5  ;;  %v9679_v16 = vld [vmem:[%s12944_s12 + $0x78] sm:$0x1f]  ;;  %v4261_v37 = vrot.slane %v9680_v20, 5 }
 0x280   : > { %11798 = vmatprep.mubr.bf16.mxu1 %v8458_v60  ;;  %v3891_v43 = vsel %vm544_vm2, %v3889_v6, %v3890_v53  ;;  %v9595_v60 = vld [vmem:[%s12944_s12 + $0x58] sm:$0x7]  ;;  %v3799_v47 = vrot.slane %v9594_v23, 3  ;;  %v9668_v6 = vld [vmem:[%s12944_s12 + $0x20] sm:$0xe0]  ;;  %v15211_v20 = vld [vmem:[#allocation12_spill] sm:$0xff] }
 0x281   : > { %v3800_v58 = vrot.slane %v9595_v60, 3  ;;  %v9669_v53 = vld [vmem:[%s12944_s12 + $0x28] sm:$0x1f]  ;;  %v4243_v31 = vrot.slane %v9668_v6, 5  ;;  %v9678_v60 = vld [vmem:[%s12944_s12 + $0x70] sm:$0xe0] }
 0x282   : > { %11237 = vmatpush3.bf16.msra.mxu0 %v12498_v2  ;;  %v3790_v2 = vrot.slane %v9588_v0, 3  ;;  %v4244_v14 = vrot.slane %v9669_v53, 5  ;;  %v12516_v0 = vld [vmem:[%s15173_s2 + $0x308] sm:$0xff]   ;;  %v12593_v53 = vld [vmem:[%s12944_s12 + $0x60] sm:$0xf8] }
 0x283   : > { %11238 = vmatprep.subr.bf16.mxu0 %v12500_v9  ;;  %v3801_v51 = vsel %vm3786_vm5, %v3799_v47, %v3800_v58  ;;  %v9677_v23 = vld [vmem:[%s12944_s12 + $0x68] sm:$0x1f]  ;;  %v12519_v47 = vld [vmem:[%s15173_s2 + $0x320] sm:$0xff]   ;;  %v4258_v58 = vrot.slane %v9678_v60, 5 }
 0x284   : > { %v3792_v33 = vsel %vm3786_vm5, %v3790_v2, %v3791_v48  ;;  %v9675_v2 = vld [vmem:[%s12944_s12 + $0x58] sm:$0x1f]  ;;  %v4249_v48 = vrot.slane %v9672_v55, 5  ;;  %v12590_v44 = vld [vmem:[%s12944_s12 + $0x48] sm:$0x7] }
 0x285   : > { %11223 = vmatmul.mubr.bf16.gmra.mrb[56].mxu0 %v3885_v38  ;;  %v3807_v38 = vsel %vm3786_vm5, %v3805_v34, %v3806_v30  ;;  %v12588_v30 = vld [vmem:[%s12944_s12 + $0x38] sm:$0x7] }
 0x286   : > { %11239 = vmatpush3.bf16.msra.mxu0 %v12500_v9  ;;  %11226 = vmatprep.mubr.bf16.mxu0 %v3888_v50  ;;  %v9596_v9 = vld [vmem:[%s12944_s12 + $0x60] sm:$0xf8]  ;;  %v9601_v50 = vld [vmem:[%s12944_s12 + $0x88] sm:$0x7] }
 0x287   : > { %11240 = vmatprep.subr.bf16.mxu0 %v12502_v29  ;;  %11799 = vmatmul.mubr.bf16.gmra.mrb[24].mxu1 %v8475_v46  ;;  %v3802_v18 = vrot.slane %v9596_v9, 3  ;;  %v3809_v46 = vrot.slane %v9601_v50, 3  ;;  %v12589_v50 = vld [vmem:[%s12944_s12 + $0x40] sm:$0xf8] }
 0x288   : > { %11802 = vmatprep.mubr.bf16.mxu1 %v8492_v42  ;;  %v4242_v42 = vsel %vm4239_vm6, %v4240_v17, %v4241_v59  ;;  %v4477_v41 = vrot.slane %v12589_v50, 3  ;;  %v12592_v59 = vld [vmem:[%s12944_s12 + $0x58] sm:$0x7]  ;;  %v12607_v50 = vld [vmem:[%s12944_s12 + $0x50] sm:$0xe0] }
 0x289   : > { %v3804_v7 = vsel %vm3786_vm5, %v3802_v18, %v3803_v54  ;;  %v4262_v18 = vrot.slane %v9681_v10, 5  ;;  %v12521_v54 = vld [vmem:[%s15173_s2 + $0x330] sm:$0xff]  }
 0x28a   : > { %11241 = vmatpush3.bf16.msra.mxu0 %v12502_v29  ;;  %v9600_v29 = vld [vmem:[%s12944_s12 + $0x80] sm:$0xf8] }
 0x28b   : > { %11242 = vmatprep.subr.bf16.mxu0 %v12504_v52  ;;  %v3808_v40 = vrot.slane %v9600_v29, 3 }
 0x28d   : > { %11227 = vmatmul.mubr.bf16.gmra.mrb[60].mxu0 %v3891_v43  ;;  %v3810_v61 = vsel %vm3786_vm5, %v3808_v40, %v3809_v46  ;;  %v4478_v40 = vrot.slane %v12590_v44, 3  ;;  %v12523_v46 = vld [vmem:[%s15173_s2 + $0x340] sm:$0xff]   ;;  %v12608_v44 = vld [vmem:[%s12944_s12 + $0x58] sm:$0x1f] }
 0x28e   : > { %11243 = vmatpush3.bf16.msra.mxu0 %v12504_v52  ;;  %11246 = vmatprep.mubr.bf16.mxu0 %v3789_v27  ;;  %v9670_v52 = vld [vmem:[%s12944_s12 + $0x30] sm:$0xe0]  ;;  %v4245_v27 = vsel %vm4239_vm6, %v4243_v31, %v4244_v14 }
 0x28f   : > { %11244 = vmatprep.subr.bf16.mxu0 %v12506_v57  ;;  %11803 = vmatmul.mubr.bf16.gmra.mrb[28].mxu1 %v8509_v11  ;;  %v4246_v43 = vrot.slane %v9670_v52, 5  ;;  %v9674_v11 = vld [vmem:[%s12944_s12 + $0x50] sm:$0xe0]  ;;  %v4483_v52 = vrot.slane %v12593_v53, 3 }
 0x290   : > { %v4252_v21 = vrot.slane %v9674_v11, 5  ;;  %v12525_v14 = vld [vmem:[%s15173_s2 + $0x350] sm:$0xff]  }
 0x291   : > { %v12611_v53 = vld [vmem:[%s12944_s12 + $0x70] sm:$0xe0] }
 0x292   : > { %11245 = vmatpush3.bf16.msra.mxu0 %v12506_v57  ;;  %v4247_v57 = vrot.slane %v9671_v24, 5  ;;  %v12594_v24 = vld [vmem:[%s12944_s12 + $0x68] sm:$0x7] }
 0x293   : > { %11262 = vmatprep.subr.bf16.mxu0 %v12507_v62  ;;  %v4484_v31 = vrot.slane %v12594_v24, 3  ;;  %v12612_v24 = vld [vmem:[%s12944_s12 + $0x78] sm:$0x1f] }
 0x294   : > { %v4248_v26 = vsel %vm4239_vm6, %v4246_v43, %v4247_v57  ;;  %v12596_v57 = vld [vmem:[%s12944_s12 + $0x78] sm:$0x7] }
 0x295   : > { %11247 = vmatmul.mubr.bf16.vlgmr.msra.gmra.mrb[48].mxu0 %v3792_v33  ;;  %v4253_v33 = vrot.slane %v9675_v2, 5  ;;  %v12598_v2 = vld [vmem:[%s12944_s12 + $0x88] sm:$0x7] }
 0x296   : > { %11263 = vmatpush3.bf16.msra.mxu0 %v12507_v62  ;;  %11250 = vmatprep.mubr.bf16.mxu0 %v3795_v19  ;;  %v4250_v62 = vrot.slane %v9673_v36, 5  ;;  %v12518_v19 = vld [vmem:[%s15173_s2 + $0x318] sm:$0xff]   ;;  %v12597_v36 = vld [vmem:[%s12944_s12 + $0x80] sm:$0xf8] }
 0x297   : > { %11264 = vmatprep.subr.bf16.mxu0 %v12508_v12  ;;  %v4254_v45 = vsel %vm4239_vm6, %v4252_v21, %v4253_v33  ;;  %v4489_v11 = vrot.slane %v12597_v36, 3  ;;  %v12600_v33 = vld [vmem:[%s12944_s12 + $0x98] sm:$0x7]  ;;  %v12615_v36 = vld [vmem:[%s12944_s12 + $0x90] sm:$0xe0] }
 0x29a   : > { %11265 = vmatpush3.bf16.msra.mxu0 %v12508_v12  ;;  %v4251_v12 = vsel %vm4239_vm6, %v4249_v48, %v4250_v62  ;;  %v4490_v48 = vrot.slane %v12598_v2, 3  ;;  %v12527_v62 = vld [vmem:[%s15173_s2 + $0x360] sm:$0xff]   ;;  %v12616_v2 = vld [vmem:[%s12944_s12 + $0x98] sm:$0x1f] }
 0x29b   : > { %11266 = vmatprep.subr.bf16.mxu0 %v12509_v4 }
 0x29d   : > { %11251 = vmatmul.mubr.bf16.gmra.mrb[52].mxu0 %v3798_v32  ;;  %v4259_v32 = vrot.slane %v9679_v16, 5  ;;  %v12602_v16 = vld [vmem:[%s12944_s12 + $0xa8] sm:$0x7] }
 0x29e   : > { %11267 = vmatpush3.bf16.msra.mxu0 %v12509_v4  ;;  %11254 = vmatprep.mubr.bf16.mxu0 %v3801_v51  ;;  %v4256_v4 = vrot.slane %v9677_v23, 5  ;;  %v12520_v51 = vld [vmem:[%s15173_s2 + $0x328] sm:$0xff]   ;;  %v12601_v23 = vld [vmem:[%s12944_s12 + $0xa0] sm:$0xf8] }
 0x29f   : > { %11268 = vmatprep.subr.bf16.mxu0 %v12510_v35  ;;  %v4260_v9 = vsel %vm4239_vm6, %v4258_v58, %v4259_v32  ;;  %v4495_v60 = vrot.slane %v12601_v23, 3  ;;  %v12530_v58 = vld [vmem:[%s15173_s2 + $0x378] sm:$0xff]   ;;  %v12531_v32 = vld [vmem:[%s15173_s2 + $0x380] sm:$0xff]  }
 0x2a2   : > { %11269 = vmatpush3.bf16.msra.mxu0 %v12510_v35  ;;  %v4257_v35 = vsel %vm4239_vm6, %v4255_v1, %v4256_v4  ;;  %v4496_v1 = vrot.slane %v12602_v16, 3  ;;  %v12529_v4 = vld [vmem:[%s15173_s2 + $0x370] sm:$0xff]  }
 0x2a3   : > { %11270 = vmatprep.subr.bf16.mxu0 %v12511_v3 }
 0x2a5   : > { %11255 = vmatmul.mubr.bf16.gmra.mrb[56].mxu0 %v3804_v7  ;;  %v4475_v7 = vrot.slane %v12588_v30, 3  ;;  %v12605_v30 = vld [vmem:[%s12944_s12 + $0x40] sm:$0xe0] }
 0x2a6   : > { %11271 = vmatpush3.bf16.msra.mxu0 %v12511_v3  ;;  %11258 = vmatprep.mubr.bf16.mxu0 %v3807_v38  ;;  %v12587_v3 = vld [vmem:[%s12944_s12 + $0x30] sm:$0xf8]  ;;  %v12522_v38 = vld [vmem:[%s15173_s2 + $0x338] sm:$0xff]  }
 0x2a7   : > { %11272 = vmatprep.subr.bf16.mxu0 %v12512_v39  ;;  %v4474_v34 = vrot.slane %v12587_v3, 3 }
 0x2a9   : > { %v4476_v29 = vsel %vm3786_vm5, %v4474_v34, %v4475_v7  ;;  %v15212_v34 = vld [vmem:[#allocation13_spill] sm:$0xff]  ;;  %v4889_v7 = vrot.slane %v12605_v30, 5 }
 0x2aa   : > { %11273 = vmatpush3.bf16.msra.mxu0 %v12512_v39  ;;  %v4263_v39 = vsel %vm4239_vm6, %v4261_v37, %v4262_v18  ;;  %v12604_v37 = vld [vmem:[%s12944_s12 + $0x38] sm:$0x1f] }
 0x2ab   : > { %11274 = vmatprep.subr.bf16.mxu0 %v12513_v22  ;;  %v4887_v18 = vrot.slane %v12604_v37, 5 }
 0x2ad   : > { %11259 = vmatmul.mubr.bf16.gmra.mrb[60].mxu0 %v3810_v61  ;;  %v4481_v61 = vrot.slane %v12592_v59, 3  ;;  %v12609_v59 = vld [vmem:[%s12944_s12 + $0x60] sm:$0xe0] }
 0x2ae   : > { %11275 = vmatpush3.bf16.msra.mxu0 %v12513_v22  ;;  %11278 = vmatprep.mubr.bf16.mxu0 %v4242_v42  ;;  %v12591_v22 = vld [vmem:[%s12944_s12 + $0x50] sm:$0xf8]  ;;  %v12524_v42 = vld [vmem:[%s15173_s2 + $0x348] sm:$0xff]  }
 0x2af   : > { %11276 = vmatprep.subr.bf16.mxu0 %v12514_v25  ;;  %v4480_v17 = vrot.slane %v12591_v22, 3  ;;  %v12540_v22 = vld [vmem:[%s15173_s2 + $0x3c8] sm:$0xff]  }
 0x2b1   : > { %v4482_v6 = vsel %vm3786_vm5, %v4480_v17, %v4481_v61  ;;  %v4895_v61 = vrot.slane %v12609_v59, 5 }
 0x2b2   : > { %11277 = vmatpush3.bf16.msra.mxu0 %v12514_v25  ;;  %v4479_v25 = vsel %vm3786_vm5, %v4477_v41, %v4478_v40  ;;  %v4892_v41 = vrot.slane %v12607_v50, 5  ;;  %v4893_v40 = vrot.slane %v12608_v44, 5 }
 0x2b3   : > { %11294 = vmatprep.subr.bf16.mxu0 %v12515_v8 }
 0x2b4   : > { %v4894_v17 = vsel %vm4239_vm6, %v4892_v41, %v4893_v40  ;;  %v12550_v41 = vld [vmem:[%s15173_s2 + $0x418] sm:$0xff]   ;;  %v9805_v40 = vld [vmem:[%s12944_s12 + $0xa0] sm:$0xf8] }
 0x2b5   : > { %11279 = vmatmul.mubr.bf16.vlgmr.msra.gmra.mrb[48].mxu0 %v4245_v27  ;;  %v4487_v27 = vrot.slane %v12596_v57, 3  ;;  %v12613_v57 = vld [vmem:[%s12944_s12 + $0x80] sm:$0xe0]  ;;  %v5146_v59 = vrot.slane %v9805_v40, 3 }
 0x2b6   : > { %11295 = vmatpush3.bf16.msra.mxu0 %v12515_v8  ;;  %11282 = vmatprep.mubr.bf16.mxu0 %v4248_v26  ;;  %v12595_v8 = vld [vmem:[%s12944_s12 + $0x70] sm:$0xf8]  ;;  %v12526_v26 = vld [vmem:[%s15173_s2 + $0x358] sm:$0xff]  }
 0x2b7   : > { %11296 = vmatprep.subr.bf16.mxu0 %v12516_v0  ;;  %v4486_v43 = vrot.slane %v12595_v8, 3  ;;  %v12542_v8 = vld [vmem:[%s15173_s2 + $0x3d8] sm:$0xff]  }
 0x2b9   : > { %v4488_v55 = vsel %vm3786_vm5, %v4486_v43, %v4487_v27  ;;  %v4901_v27 = vrot.slane %v12613_v57, 5 }
 0x2ba   : > { %11297 = vmatpush3.bf16.msra.mxu0 %v12516_v0  ;;  %v4485_v0 = vsel %vm3786_vm5, %v4483_v52, %v4484_v31  ;;  %v4898_v52 = vrot.slane %v12611_v53, 5  ;;  %v4899_v31 = vrot.slane %v12612_v24, 5 }
 0x2bb   : > { %11298 = vmatprep.subr.bf16.mxu0 %v12517_v13 }
 0x2bc   : > { %v4900_v43 = vsel %vm4239_vm6, %v4898_v52, %v4899_v31  ;;  %v12552_v52 = vld [vmem:[%s15173_s2 + $0x428] sm:$0xff]   ;;  %v9809_v31 = vld [vmem:[%s12944_s12 + $0xc0] sm:$0xf8] }
 0x2bd   : > { %11283 = vmatmul.mubr.bf16.gmra.mrb[52].mxu0 %v4251_v12  ;;  %v4493_v12 = vrot.slane %v12600_v33, 3  ;;  %v9795_v33 = vld [vmem:[%s12944_s12 + $0x50] sm:$0xf8]  ;;  %v5152_v57 = vrot.slane %v9809_v31, 3  ;;  %v12558_v31 = vld [vmem:[%s15173_s2 + $0x458] sm:$0xff]  }
 0x2be   : > { %11299 = vmatpush3.bf16.msra.mxu0 %v12517_v13  ;;  %11286 = vmatprep.mubr.bf16.mxu0 %v4254_v45  ;;  %v12599_v13 = vld [vmem:[%s12944_s12 + $0x90] sm:$0xf8]  ;;  %v12528_v45 = vld [vmem:[%s15173_s2 + $0x368] sm:$0xff]   ;;  %v5131_v16 = vrot.slane %v9795_v33, 3 }
 0x2bf   : > { %11300 = vmatprep.subr.bf16.mxu0 %v12518_v19  ;;  %v4492_v21 = vrot.slane %v12599_v13, 3  ;;  %v12544_v13 = vld [vmem:[%s15173_s2 + $0x3e8] sm:$0xff]  }
 0x2c1   : > { %v4494_v28 = vsel %vm3786_vm5, %v4492_v21, %v4493_v12  ;;  %v9796_v12 = vld [vmem:[%s12944_s12 + $0x58] sm:$0x7] }
 0x2c2   : > { %11301 = vmatpush3.bf16.msra.mxu0 %v12518_v19  ;;  %v4491_v19 = vsel %vm3786_vm5, %v4489_v11, %v4490_v48  ;;  %v4904_v11 = vrot.slane %v12615_v36, 5  ;;  %v4905_v48 = vrot.slane %v12616_v2, 5  ;;  %v15006_v36 = vld [vmem:[%s15175_s4 + $0x3] ss:$0 sm:$0xff] }
 0x2c3   : > { %11302 = vmatprep.subr.bf16.mxu0 %v12519_v47 }
 0x2c4   : > { %v4906_v21 = vsel %vm4239_vm6, %v4904_v11, %v4905_v48  ;;  %v12554_v48 = vld [vmem:[%s15173_s2 + $0x438] sm:$0xff]  }
 0x2c5   : > { %11287 = vmatmul.mubr.bf16.gmra.mrb[56].mxu0 %v4257_v35  ;;  %v12532_v35 = vld [vmem:[%s15173_s2 + $0x388] sm:$0xff]  }
 0x2c6   : > { %11303 = vmatpush3.bf16.msra.mxu0 %v12519_v47  ;;  %11290 = vmatprep.mubr.bf16.mxu0 %v4260_v9  ;;  %v4497_v47 = vsel %vm3786_vm5, %v4495_v60, %v4496_v1  ;;  %v15210_v9 = vld [vmem:[#allocation11_spill] sm:$0xff]  ;;  %v12545_v60 = vld [vmem:[%s15173_s2 + $0x3f0] sm:$0xff]   ;;  %v5132_v1 = vrot.slane %v9796_v12, 3 }
 0x2c7   : > { %11304 = vmatprep.subr.bf16.mxu0 %v12520_v51 }
 0x2ca   : > { %11305 = vmatpush3.bf16.msra.mxu0 %v12520_v51  ;;  %v12534_v51 = vld [vmem:[%s15173_s2 + $0x398] sm:$0xff]  }
 0x2cb   : > { %11306 = vmatprep.subr.bf16.mxu0 %v12521_v54 }
 0x2cd   : > { %11291 = vmatmul.mubr.bf16.gmra.mrb[60].mxu0 %v4263_v39  ;;  %v12606_v39 = vld [vmem:[%s12944_s12 + $0x48] sm:$0x1f] }
 0x2ce   : > { %11307 = vmatpush3.bf16.msra.mxu0 %v12521_v54  ;;  %11310 = vmatprep.mubr.bf16.mxu0 %v4476_v29  ;;  %v12538_v54 = vld [vmem:[%s15173_s2 + $0x3b8] sm:$0xff]   ;;  %v12539_v29 = vld [vmem:[%s15173_s2 + $0x3c0] sm:$0xff]  }
 0x2cf   : > { %11308 = vmatprep.subr.bf16.mxu0 %v12522_v38 }
 0x2d2   : > { %11309 = vmatpush3.bf16.msra.mxu0 %v12522_v38  ;;  %v4890_v38 = vrot.slane %v12606_v39, 5  ;;  %v12549_v39 = vld [vmem:[%s15173_s2 + $0x410] sm:$0xff]  }
 0x2d3   : > { %11326 = vmatprep.subr.bf16.mxu0 %v12523_v46 }
 0x2d5   : > { %11311 = vmatmul.mubr.bf16.vlgmr.msra.gmra.mrb[48].mxu0 %v4479_v25  ;;  %v12610_v25 = vld [vmem:[%s12944_s12 + $0x68] sm:$0x1f] }
 0x2d6   : > { %11327 = vmatpush3.bf16.msra.mxu0 %v12523_v46  ;;  %11314 = vmatprep.mubr.bf16.mxu0 %v4482_v6  ;;  %v4891_v46 = vsel %vm4239_vm6, %v4889_v7, %v4890_v38  ;;  %v12541_v6 = vld [vmem:[%s15173_s2 + $0x3d0] sm:$0xff]  }
 0x2d7   : > { %11328 = vmatprep.subr.bf16.mxu0 %v12524_v42 }
 0x2da   : > { %11329 = vmatpush3.bf16.msra.mxu0 %v12524_v42  ;;  %v4896_v42 = vrot.slane %v12610_v25, 5  ;;  %v12551_v25 = vld [vmem:[%s15173_s2 + $0x420] sm:$0xff]  }
 0x2db   : > { %11330 = vmatprep.subr.bf16.mxu0 %v12525_v14 }
 0x2dd   : > { %11315 = vmatmul.mubr.bf16.gmra.mrb[52].mxu0 %v4485_v0  ;;  %v12614_v0 = vld [vmem:[%s12944_s12 + $0x88] sm:$0x1f] }
 0x2de   : > { %11331 = vmatpush3.bf16.msra.mxu0 %v12525_v14  ;;  %11318 = vmatprep.mubr.bf16.mxu0 %v4488_v55  ;;  %v4897_v14 = vsel %vm4239_vm6, %v4895_v61, %v4896_v42  ;;  %v12543_v55 = vld [vmem:[%s15173_s2 + $0x3e0] sm:$0xff]  }
 0x2df   : > { %11332 = vmatprep.subr.bf16.mxu0 %v12526_v26 }
 0x2e2   : > { %11333 = vmatpush3.bf16.msra.mxu0 %v12526_v26  ;;  %v4902_v26 = vrot.slane %v12614_v0, 5  ;;  %v12553_v0 = vld [vmem:[%s15173_s2 + $0x430] sm:$0xff]  }
 0x2e3   : > { %11334 = vmatprep.subr.bf16.mxu0 %v12527_v62 }
 0x2e5   : > { %11319 = vmatmul.mubr.bf16.gmra.mrb[56].mxu0 %v4491_v19  ;;  %v12617_v19 = vld [vmem:[%s12944_s12 + $0xa0] sm:$0xe0] }
 0x2e6   : > { %11335 = vmatpush3.bf16.msra.mxu0 %v12527_v62  ;;  %11322 = vmatprep.mubr.bf16.mxu0 %v4494_v28  ;;  %v4903_v62 = vsel %vm4239_vm6, %v4901_v27, %v4902_v26  ;;  %v12618_v28 = vld [vmem:[%s12944_s12 + $0xa8] sm:$0x1f] }
 0x2e7   : > { %11336 = vmatprep.subr.bf16.mxu0 %v12528_v45  ;;  %v4908_v23 = vrot.slane %v12618_v28, 5 }
 0x2ea   : > { %11337 = vmatpush3.bf16.msra.mxu0 %v12528_v45  ;;  %v4907_v45 = vrot.slane %v12617_v19, 5  ;;  %v9839_v19 = vld [vmem:[%s12944_s12 + $0x70] sm:$0xf0] }
 0x2eb   : > { %11338 = vmatprep.subr.bf16.mxu0 %v12529_v4 }
 0x2ed   : > { %11323 = vmatmul.mubr.bf16.gmra.mrb[60].mxu0 %v4497_v47  ;;  %v12546_v47 = vld [vmem:[%s15173_s2 + $0x3f8] sm:$0xff]  }
 0x2ee   : > { %11339 = vmatpush3.bf16.msra.mxu0 %v12529_v4  ;;  %11342 = vmatprep.mubr.bf16.mxu0 %v13093_v49  ;;  %v12533_v49 = vld [vmem:[%s15173_s2 + $0x390] sm:$0xff]   ;;  %v4909_v4 = vsel %vm4239_vm6, %v4907_v45, %v4908_v23  ;;  %v9840_v45 = vld [vmem:[%s12944_s12 + $0x78] sm:$0xf] }
 0x2ef   : > { %11340 = vmatprep.subr.bf16.mxu0 %v12530_v58 }
 0x2f2   : > { %11341 = vmatpush3.bf16.msra.mxu0 %v12530_v58  ;;  %v5133_v58 = vsel %vm3786_vm5, %v5131_v16, %v5132_v1 }
 0x2f3   : > { %11358 = vmatprep.subr.bf16.mxu0 %v12531_v32 }
 0x2f5   : > { %11343 = vmatmul.mubr.bf16.vlgmr.msra.gmra.mrb[48].mxu0 %v13169_v63  ;;  %v12535_v63 = vld [vmem:[%s15173_s2 + $0x3a0] sm:$0xff]  }
 0x2f6   : > { %11359 = vmatpush3.bf16.msra.mxu0 %v12531_v32  ;;  %11346 = vmatprep.mubr.bf16.mxu0 %v13172_v56  ;;  %v12536_v56 = vld [vmem:[%s15173_s2 + $0x3a8] sm:$0xff]   ;;  %v9797_v32 = vld [vmem:[%s12944_s12 + $0x60] sm:$0xf8] }
 0x2f7   : > { %11360 = vmatprep.subr.bf16.mxu0 %v12532_v35 }
 0x2fa   : > { %11361 = vmatpush3.bf16.msra.mxu0 %v12532_v35  ;;  %v9798_v35 = vld [vmem:[%s12944_s12 + $0x68] sm:$0x7] }
 0x2fb   : > { %11362 = vmatprep.subr.bf16.mxu0 %v12533_v49 }
 0x2fd   : > { %11347 = vmatmul.mubr.bf16.gmra.mrb[52].mxu0 %v13212_v15  ;;  %v12537_v15 = vld [vmem:[%s15173_s2 + $0x3b0] sm:$0xff]  }
 0x2fe   : > { %11363 = vmatpush3.bf16.msra.mxu0 %v12533_v49  ;;  %11350 = vmatprep.mubr.bf16.mxu0 %v15206_v5  ;;  %v12603_v5 = vld [vmem:[%s12944_s12 + $0x30] sm:$0xe0] }
 0x2ff   : > { %11364 = vmatprep.subr.bf16.mxu0 %v12534_v51  ;;  %v4886_v10 = vrot.slane %v12603_v5, 5  ;;  %v9799_v49 = vld [vmem:[%s12944_s12 + $0x70] sm:$0xf8] }
 0x301   : > { %v4888_v3 = vsel %vm4239_vm6, %v4886_v10, %v4887_v18  ;;  %v12548_v10 = vld [vmem:[%s15173_s2 + $0x408] sm:$0xff]   ;;  %v9801_v18 = vld [vmem:[%s12944_s12 + $0x80] sm:$0xf8] }
 0x302   : > { %11365 = vmatpush3.bf16.msra.mxu0 %v12534_v51  ;;  %v9800_v51 = vld [vmem:[%s12944_s12 + $0x78] sm:$0x7]  ;;  %v5140_v30 = vrot.slane %v9801_v18, 3  ;;  %v9841_v18 = vld [vmem:[%s12944_s12 + $0x80] sm:$0xf0] }
 0x303   : > { %11366 = vmatprep.subr.bf16.mxu0 %v12535_v63 }
 0x305   : > { %11351 = vmatmul.mubr.bf16.gmra.mrb[56].mxu0 %v15210_v9  ;;  %v12547_v9 = vld [vmem:[%s15173_s2 + $0x400] sm:$0xff]  }
 0x306   : > { %11367 = vmatpush3.bf16.msra.mxu0 %v12535_v63  ;;  %11354 = vmatprep.mubr.bf16.mxu0 %v15211_v20  ;;  %v5134_v63 = vrot.slane %v9797_v32, 3  ;;  %v5137_v20 = vrot.slane %v9799_v49, 3  ;;  %v5379_v49 = vrot.slane %v9839_v19, 4  ;;  %v12559_v19 = vld [vmem:[%s15173_s2 + $0x460] sm:$0xff]  }
 0x307   : > { %11368 = vmatprep.subr.bf16.mxu0 %v12536_v56 }
 0x30a   : > { %11369 = vmatpush3.bf16.msra.mxu0 %v12536_v56  ;;  %v5135_v56 = vrot.slane %v9798_v35, 3  ;;  %v12555_v35 = vld [vmem:[%s15173_s2 + $0x440] sm:$0xff]  }
 0x30b   : > { %11370 = vmatprep.subr.bf16.mxu0 %v12537_v15 }
 0x30c   : > { %v5136_v5 = vsel %vm3786_vm5, %v5134_v63, %v5135_v56 }
 0x30d   : > { %11355 = vmatmul.mubr.bf16.gmra.mrb[60].mxu0 %v15212_v34  ;;  %v9804_v34 = vld [vmem:[%s12944_s12 + $0x98] sm:$0x7] }
 0x30e   : > { %11371 = vmatpush3.bf16.msra.mxu0 %v12537_v15  ;;  %11374 = vmatprep.mubr.bf16.mxu0 %v4888_v3  ;;  %v5138_v15 = vrot.slane %v9800_v51, 3  ;;  %v9803_v3 = vld [vmem:[%s12944_s12 + $0x90] sm:$0xf8]  ;;  %v5380_v51 = vrot.slane %v9840_v45, 4 }
 0x30f   : > { %11372 = vmatprep.subr.bf16.mxu0 %v12538_v54  ;;  %v5143_v38 = vrot.slane %v9803_v3, 3 }
 0x310   : > { %v5139_v37 = vsel %vm3786_vm5, %v5137_v20, %v5138_v15 }
 0x312   : > { %11373 = vmatpush3.bf16.msra.mxu0 %v12538_v54  ;;  %v9802_v54 = vld [vmem:[%s12944_s12 + $0x88] sm:$0x7] }
 0x313   : > { %11390 = vmatprep.subr.bf16.mxu0 %v12539_v29  ;;  %v5141_v7 = vrot.slane %v9802_v54, 3  ;;  %v9842_v54 = vld [vmem:[%s12944_s12 + $0x88] sm:$0xf] }
 0x314   : > { %v5383_v40 = vrot.slane %v9842_v54, 4 }
 0x315   : > { %11375 = vmatmul.mubr.bf16.vlgmr.msra.gmra.mrb[48].mxu0 %v4891_v46  ;;  %v5142_v50 = vsel %vm3786_vm5, %v5140_v30, %v5141_v7  ;;  %v9806_v46 = vld [vmem:[%s12944_s12 + $0xa8] sm:$0x7]  ;;  %v9843_v30 = vld [vmem:[%s12944_s12 + $0x90] sm:$0xf0]  ;;  %v9844_v7 = vld [vmem:[%s12944_s12 + $0x98] sm:$0xf] }
 0x316   : > { %11391 = vmatpush3.bf16.msra.mxu0 %v12539_v29  ;;  %11378 = vmatprep.mubr.bf16.mxu0 %v4894_v17  ;;  %v5144_v29 = vrot.slane %v9804_v34, 3  ;;  %v9808_v17 = vld [vmem:[%s12944_s12 + $0xb8] sm:$0x7]  ;;  %v5147_v61 = vrot.slane %v9806_v46, 3 }
 0x317   : > { %11392 = vmatprep.subr.bf16.mxu0 %v12540_v22 }
 0x318   : > { %v5145_v44 = vsel %vm3786_vm5, %v5143_v38, %v5144_v29  ;;  %v5148_v53 = vsel %vm3786_vm5, %v5146_v59, %v5147_v61  ;;  %v5385_v59 = vrot.slane %v9843_v30, 4  ;;  %v5386_v61 = vrot.slane %v9844_v7, 4 }
 0x31a   : > { %11393 = vmatpush3.bf16.msra.mxu0 %v12540_v22  ;;  %v9807_v22 = vld [vmem:[%s12944_s12 + $0xb0] sm:$0xf8] }
 0x31b   : > { %11394 = vmatprep.subr.bf16.mxu0 %v12541_v6  ;;  %v5149_v42 = vrot.slane %v9807_v22, 3 }
 0x31d   : > { %11379 = vmatmul.mubr.bf16.gmra.mrb[52].mxu0 %v4897_v14  ;;  %v9810_v14 = vld [vmem:[%s12944_s12 + $0xc8] sm:$0x7] }
 0x31e   : > { %11395 = vmatpush3.bf16.msra.mxu0 %v12541_v6  ;;  %11382 = vmatprep.mubr.bf16.mxu0 %v4900_v43  ;;  %v5150_v6 = vrot.slane %v9808_v17, 3  ;;  %v9836_v43 = vld [vmem:[%s12944_s12 + $0x58] sm:$0xf]  ;;  %v5153_v27 = vrot.slane %v9810_v14, 3  ;;  %v12557_v17 = vld [vmem:[%s15173_s2 + $0x450] sm:$0xff]   ;;  %v5387_v14 = vsel %vm544_vm2, %v5385_v59, %v5386_v61 }
 0x31f   : > { %11396 = vmatprep.subr.bf16.mxu0 %v12542_v8  ;;  %v9878_v59 = vld [vmem:[%s12944_s12 + $0x68] sm:$0x1f]  ;;  %v9879_v61 = vld [vmem:[%s12944_s12 + $0x70] sm:$0xe0] }
 0x320   : > { %v5151_v24 = vsel %vm3786_vm5, %v5149_v42, %v5150_v6  ;;  %v5154_v11 = vsel %vm3786_vm5, %v5152_v57, %v5153_v27 }
 0x322   : > { %11397 = vmatpush3.bf16.msra.mxu0 %v12542_v8  ;;  %v9835_v8 = vld [vmem:[%s12944_s12 + $0x50] sm:$0xf0] }
 0x323   : > { %11398 = vmatprep.subr.bf16.mxu0 %v12543_v55  ;;  %v5373_v26 = vrot.slane %v9835_v8, 4  ;;  %v9845_v8 = vld [vmem:[%s12944_s12 + $0xa0] sm:$0xf0] }
 0x325   : > { %11383 = vmatmul.mubr.bf16.gmra.mrb[56].mxu0 %v4903_v62 }
 0x326   : > { %11399 = vmatpush3.bf16.msra.mxu0 %v12543_v55  ;;  %11386 = vmatprep.mubr.bf16.mxu0 %v4906_v21  ;;  %v5374_v55 = vrot.slane %v9836_v43, 4  ;;  %v9838_v21 = vld [vmem:[%s12944_s12 + $0x68] sm:$0xf] }
 0x327   : > { %11400 = vmatprep.subr.bf16.mxu0 %v12544_v13  ;;  %v9846_v43 = vld [vmem:[%s12944_s12 + $0xa8] sm:$0xf] }
 0x328   : > { %v5375_v62 = vsel %vm544_vm2, %v5373_v26, %v5374_v55  ;;  %v9848_v26 = vld [vmem:[%s12944_s12 + $0xb8] sm:$0xf] }
 0x32a   : > { %11401 = vmatpush3.bf16.msra.mxu0 %v12544_v13  ;;  %v9837_v13 = vld [vmem:[%s12944_s12 + $0x60] sm:$0xf0] }
 0x32b   : > { %11402 = vmatprep.subr.bf16.mxu0 %v12545_v60 }
 0x32d   : > { %11387 = vmatmul.mubr.bf16.gmra.mrb[60].mxu0 %v4909_v4  ;;  %v5376_v4 = vrot.slane %v9837_v13, 4  ;;  %v5388_v13 = vrot.slane %v9845_v8, 4 }
 0x32e   : > { %11403 = vmatpush3.bf16.msra.mxu0 %v12545_v60  ;;  %11406 = vmatprep.mubr.bf16.mxu0 %v5133_v58 }
 0x32f   : > { %11404 = vmatprep.subr.bf16.mxu0 %v12546_v47 }
 0x332   : > { %11405 = vmatpush3.bf16.msra.mxu0 %v12546_v47  ;;  %v5377_v47 = vrot.slane %v9838_v21, 4  ;;  %v5389_v21 = vrot.slane %v9846_v43, 4 }
 0x333   : > { %11422 = vmatprep.subr.bf16.mxu0 %v12547_v9 }
 0x334   : > { %v5378_v20 = vsel %vm544_vm2, %v5376_v4, %v5377_v47 }
 0x335   : > { %11407 = vmatmul.mubr.bf16.vlgmr.msra.gmra.mrb[48].mxu0 %v5136_v5 }
 0x336   : > { %11423 = vmatpush3.bf16.msra.mxu0 %v12547_v9  ;;  %11410 = vmatprep.mubr.bf16.mxu0 %v5139_v37  ;;  %v5381_v37 = vsel %vm544_vm2, %v5379_v49, %v5380_v51  ;;  %v9850_v49 = vld [vmem:[%s12944_s12 + $0xc8] sm:$0xf] }
 0x337   : > { %11424 = vmatprep.subr.bf16.mxu0 %v12548_v10 }
 0x33a   : > { %11425 = vmatpush3.bf16.msra.mxu0 %v12548_v10  ;;  %v12556_v10 = vld [vmem:[%s15173_s2 + $0x448] sm:$0xff]  }
 0x33b   : > { %11426 = vmatprep.subr.bf16.mxu0 %v12549_v39 }
 0x33d   : > { %11411 = vmatmul.mubr.bf16.gmra.mrb[52].mxu0 %v5142_v50 }
 0x33e   : > { %11427 = vmatpush3.bf16.msra.mxu0 %v12549_v39  ;;  %11414 = vmatprep.mubr.bf16.mxu0 %v5145_v44  ;;  %v5382_v44 = vrot.slane %v9841_v18, 4 }
 0x33f   : > { %11428 = vmatprep.subr.bf16.mxu0 %v12550_v41 }
 0x342   : > { %11429 = vmatpush3.bf16.msra.mxu0 %v12550_v41 }
 0x343   : > { %11430 = vmatprep.subr.bf16.mxu0 %v12551_v25 }
 0x345   : > { %11415 = vmatmul.mubr.bf16.gmra.mrb[56].mxu0 %v5148_v53  ;;  %v5384_v53 = vsel %vm544_vm2, %v5382_v44, %v5383_v40 }
 0x346   : > { %11431 = vmatpush3.bf16.msra.mxu0 %v12551_v25  ;;  %11418 = vmatprep.mubr.bf16.mxu0 %v5151_v24 }
 0x347   : > { %11432 = vmatprep.subr.bf16.mxu0 %v12552_v52 }
 0x34a   : > { %11433 = vmatpush3.bf16.msra.mxu0 %v12552_v52  ;;  %v11792_v2 = vpop.f32.mrb[16].mxu1 }
 0x34b   : > { %11434 = vmatprep.subr.bf16.mxu0 %v12553_v0  ;;  %v8703_v33 = vadd.f32 %v11792_v2, %v15006_v36  ;;  %v8617_v12 = vpop.f32.mrb[17].mxu1 }
 0x34c   : > { %v8701_v28 = vadd.f32 %v15006_v36, %v8617_v12  ;;  %v11793_v23 = vpop.f32.mrb[18].mxu1 }
 0x34d   : > { %11419 = vmatmul.mubr.bf16.gmra.mrb[60].mxu0 %v5154_v11  ;;  %v8719_v60 = vmax.f32 %v8703_v33, 0.0  ;;  %v8704_v16 = vadd.f32 %v11793_v23, %v15006_v36  ;;  %v8620_v1 = vpop.f32.mrb[19].mxu1 }
 0x34e   : > { %11435 = vmatpush3.bf16.msra.mxu0 %v12553_v0  ;;  %11438 = vmatprep.mubr.bf16.mxu0 %v5375_v62  ;;  %v8717_v58 = vmax.f32 %v8701_v28, 0.0  ;;  %v8702_v32 = vadd.f32 %v15006_v36, %v8620_v1  ;;  %v9847_v0 = vld [vmem:[%s12944_s12 + $0xb0] sm:$0xf0]  ;;  %v5392_v28 = vrot.slane %v9848_v26, 4  ;;  %v5390_v1 = vsel %vm544_vm2, %v5388_v13, %v5389_v21 }
 0x34f   : > { %11436 = vmatprep.subr.bf16.mxu0 %v12554_v48  ;;  %v8720_v63 = vmax.f32 %v8704_v16, 0.0  ;;  %v5391_v45 = vrot.slane %v9847_v0, 4  ;;  %v12564_v0 = vld [vmem:[#allocation4 + $0x88] sm:$0xff]   ;;  %v9883_v26 = vld [vmem:[%s12944_s12 + $0x90] sm:$0xe0] }
 0x350   : > { %v8718_v56 = vmax.f32 %v8702_v32, 0.0  ;;  %v12565_v13 = vld [vmem:[#allocation4 + $0x90] sm:$0xff]  }
 0x351   : > { %v15024_v9 = vpack.c.bf16 %v8720_v63, %v8719_v60  ;;  %v5393_v32 = vsel %vm544_vm2, %v5391_v45, %v5392_v28  ;;  %v12566_v45 = vld [vmem:[#allocation4 + $0x98] sm:$0xff]   ;;  %v9887_v28 = vld [vmem:[%s12944_s12 + $0xb0] sm:$0xe0] }
 0x352   : > { %11437 = vmatpush3.bf16.msra.mxu0 %v12554_v48  ;;  %v15027_v15 = vpack.c.bf16 %v8718_v56, %v8717_v58  ;;  %v11796_v5 = vpop.f32.mrb[20].mxu1  ;;  %v12560_v58 = vld [vmem:[%s15173_s2 + $0x468] sm:$0xff]   ;;  %v9875_v56 = vld [vmem:[%s12944_s12 + $0x50] sm:$0xe0] }
 0x353   : > { %11454 = vmatprep.subr.bf16.mxu0 %v12555_v35  ;;  %v8707_v3 = vadd.f32 %v11796_v5, %v15006_v36  ;;  %v8633_v34 = vpop.f32.mrb[21].mxu1 }
 0x354   : > { %v8705_v39 = vadd.f32 %v15006_v36, %v8633_v34  ;;  %v11797_v38 = vpop.f32.mrb[22].mxu1  ;;  %v5395_v34 = vrot.slane %v9850_v49, 4 }
 0x355   : > { %11439 = vmatmul.mubr.bf16.vlgmr.msra.gmra.mrb[48].mxu0 %v5378_v20  ;;  %v8723_v29 = vmax.f32 %v8707_v3, 0.0  ;;  %v8708_v50 = vadd.f32 %v11797_v38, %v15006_v36  ;;  %v8636_v41 = vpop.f32.mrb[23].mxu1  ;;  %v9876_v20 = vld [vmem:[%s12944_s12 + $0x58] sm:$0x1f]  ;;  %v5615_v38 = vrot.slane %v9875_v56, 5  ;;  %v12568_v56 = vld [vmem:[#allocation4 + $0xa8] sm:$0xff]  }
 0x356   : > { %11455 = vmatpush3.bf16.msra.mxu0 %v12555_v35  ;;  %11442 = vmatprep.mubr.bf16.mxu0 %v5381_v37  ;;  %v8721_v46 = vmax.f32 %v8705_v39, 0.0  ;;  %v8706_v22 = vadd.f32 %v15006_v36, %v8636_v41  ;;  %v9849_v35 = vld [vmem:[%s12944_s12 + $0xc0] sm:$0xf0]  ;;  %v12561_v39 = vld [vmem:[%s15173_s2 + $0x470] sm:$0xff]  }
 0x357   : > { %11456 = vmatprep.subr.bf16.mxu0 %v12556_v10  ;;  %v8724_v25 = vmax.f32 %v8708_v50, 0.0  ;;  %v5394_v3 = vrot.slane %v9849_v35, 4 }
 0x358   : > { %v8722_v42 = vmax.f32 %v8706_v22, 0.0 }
 0x359   : > { %v15044_v6 = vpack.c.bf16 %v8724_v25, %v8723_v29  ;;  %v5616_v29 = vrot.slane %v9876_v20, 5  ;;  %v5396_v40 = vsel %vm544_vm2, %v5394_v3, %v5395_v34  ;;  %v9880_v25 = vld [vmem:[%s12944_s12 + $0x78] sm:$0x1f]  ;;  %v15117_v3 = vld [vmem:[%s15175_s4 + $0x2] ss:$0 sm:$0xff] }
 0x35a   : > { %11457 = vmatpush3.bf16.msra.mxu0 %v12556_v10  ;;  %v15047_v52 = vpack.c.bf16 %v8722_v42, %v8721_v46  ;;  %v11800_v24 = vpop.f32.mrb[24].mxu1 }
 0x35b   : > { %11458 = vmatprep.subr.bf16.mxu0 %v12557_v17  ;;  %v8711_v57 = vadd.f32 %v11800_v24, %v15006_v36  ;;  %v8649_v27 = vpop.f32.mrb[25].mxu1  ;;  %v5617_v22 = vsel %vm4239_vm6, %v5615_v38, %v5616_v29  ;;  %v5621_v24 = vrot.slane %v9879_v61, 5 }
 0x35c   : > { %v8709_v55 = vadd.f32 %v15006_v36, %v8649_v27  ;;  %v11801_v11 = vpop.f32.mrb[26].mxu1  ;;  %v9882_v27 = vld [vmem:[%s12944_s12 + $0x88] sm:$0x1f] }
 0x35d   : > { %11443 = vmatmul.mubr.bf16.gmra.mrb[52].mxu0 %v5384_v53  ;;  %v8727_v2 = vmax.f32 %v8711_v57, 0.0  ;;  %v8712_v48 = vadd.f32 %v11801_v11, %v15006_v36  ;;  %v8652_v62 = vpop.f32.mrb[27].mxu1  ;;  %v5619_v53 = vrot.slane %v9878_v59, 5  ;;  %v9881_v57 = vld [vmem:[%s12944_s12 + $0x80] sm:$0xe0] }
 0x35e   : > { %11459 = vmatpush3.bf16.msra.mxu0 %v12557_v17  ;;  %11446 = vmatprep.mubr.bf16.mxu0 %v5387_v14  ;;  %v8725_v33 = vmax.f32 %v8709_v55, 0.0  ;;  %v8710_v12 = vadd.f32 %v15006_v36, %v8652_v62  ;;  %v9877_v17 = vld [vmem:[%s12944_s12 + $0x60] sm:$0xe0]  ;;  %v9884_v55 = vld [vmem:[%s12944_s12 + $0x98] sm:$0x1f]  ;;  %v5624_v11 = vrot.slane %v9881_v57, 5 }
 0x35f   : > { %11460 = vmatprep.subr.bf16.mxu0 %v12558_v31  ;;  %v8728_v23 = vmax.f32 %v8712_v48, 0.0  ;;  %v5618_v42 = vrot.slane %v9877_v17, 5  ;;  %v12563_v14 = vld [vmem:[#allocation4 + $0x80] sm:$0xff]   ;;  %v5627_v48 = vrot.slane %v9883_v26, 5  ;;  %v5628_v62 = vrot.slane %v9884_v55, 5  ;;  %v12573_v26 = vld [vmem:[#allocation4 + $0xd0] sm:$0xff]  }
 0x360   : > { %v8726_v60 = vmax.f32 %v8710_v12, 0.0  ;;  %v9885_v12 = vld [vmem:[%s12944_s12 + $0xa0] sm:$0xe0] }
 0x361   : > { %v15064_v16 = vpack.c.bf16 %v8728_v23, %v8727_v2  ;;  %v5620_v8 = vsel %vm4239_vm6, %v5618_v42, %v5619_v53  ;;  %v5625_v2 = vrot.slane %v9882_v27, 5  ;;  %v9888_v23 = vld [vmem:[%s12944_s12 + $0xb8] sm:$0x1f] }
 0x362   : > { %11461 = vmatpush3.bf16.msra.mxu0 %v12558_v31  ;;  %v15067_v4 = vpack.c.bf16 %v8726_v60, %v8725_v33  ;;  %v11804_v47 = vpop.f32.mrb[28].mxu1  ;;  %v5622_v31 = vrot.slane %v9880_v25, 5  ;;  %v5629_v33 = vsel %vm4239_vm6, %v5627_v48, %v5628_v62  ;;  %v5630_v60 = vrot.slane %v9885_v12, 5 }
 0x363   : > { %11462 = vmatprep.subr.bf16.mxu0 %v12559_v19  ;;  %v8715_v51 = vadd.f32 %v11804_v47, %v15006_v36  ;;  %v8665_v63 = vpop.f32.mrb[29].mxu1  ;;  %v5626_v21 = vsel %vm4239_vm6, %v5624_v11, %v5625_v2  ;;  %v5633_v47 = vrot.slane %v9887_v28, 5 }
 0x364   : > { %v8713_v5 = vadd.f32 %v15006_v36, %v8665_v63  ;;  %v11805_v10 = vpop.f32.mrb[30].mxu1  ;;  %v5623_v43 = vsel %vm4239_vm6, %v5621_v24, %v5622_v31  ;;  %v9890_v63 = vld [vmem:[%s12944_s12 + $0xc8] sm:$0x1f] }
 0x365   : > { %11447 = vmatmul.mubr.bf16.gmra.mrb[56].mxu0 %v5390_v1  ;;  %v8731_v37 = vmax.f32 %v8715_v51, 0.0  ;;  %v8716_v18 = vadd.f32 %v11805_v10, %v15006_v36  ;;  %v8668_v54 = vpop.f32.mrb[31].mxu1  ;;  %v9889_v51 = vld [vmem:[%s12944_s12 + $0xc0] sm:$0xe0]  ;;  %v12572_v24 = vld [vmem:[#allocation4 + $0xc8] sm:$0xff]  }
 0x366   : > { %11463 = vmatpush3.bf16.msra.mxu0 %v12559_v19  ;;  %11450 = vmatprep.mubr.bf16.mxu0 %v5393_v32  ;;  %v8729_v30 = vmax.f32 %v8713_v5, 0.0  ;;  %v8714_v7 = vadd.f32 %v15006_v36, %v8668_v54  ;;  %v12562_v36 = vld [vmem:[%s15173_s2 + $0x478] sm:$0xff]   ;;  %v9886_v19 = vld [vmem:[%s12944_s12 + $0xa8] sm:$0x1f]  ;;  %v12567_v32 = vld [vmem:[#allocation4 + $0xa0] sm:$0xff]   ;;  %v5636_v20 = vrot.slane %v9889_v51, 5 }
 0x367   : > { %11464 = vmatprep.subr.bf16.mxu0 %v12560_v58  ;;  %v8732_v50 = vmax.f32 %v8716_v18, 0.0  ;;  %v5631_v1 = vrot.slane %v9886_v19, 5  ;;  %v5637_v5 = vrot.slane %v9890_v63, 5  ;;  %v12570_v18 = vld [vmem:[#allocation4 + $0xb8] sm:$0xff]   ;;  %v12571_v54 = vld [vmem:[#allocation4 + $0xc0] sm:$0xff]  }
 0x368   : > { %v8730_v41 = vmax.f32 %v8714_v7, 0.0 }
 0x369   : > { %v15084_v44 = vpack.c.bf16 %v8732_v50, %v8731_v37  ;;  %v5632_v35 = vsel %vm4239_vm6, %v5630_v60, %v5631_v1  ;;  %v5638_v10 = vsel %vm4239_vm6, %v5636_v20, %v5637_v5  ;;  %v12569_v37 = vld [vmem:[#allocation4 + $0xb0] sm:$0xff]   ;;  %v12576_v20 = vld [vmem:[#allocation4 + $0xe8] sm:$0xff]  }
 0x36a   : > { %11465 = vmatpush3.bf16.msra.mxu0 %v12560_v58  ;;  %v15087_v46 = vpack.c.bf16 %v8730_v41, %v8729_v30  ;;  %v5634_v58 = vrot.slane %v9888_v23, 5 }
 0x36b   : > { %11466 = vmatprep.subr.bf16.mxu0 %v12561_v39 }
 0x36c   : > { %v5635_v49 = vsel %vm4239_vm6, %v5633_v47, %v5634_v58  ;;  %v12575_v47 = vld [vmem:[#allocation4 + $0xe0] sm:$0xff]  }
 0x36d   : > { %11451 = vmatmul.mubr.bf16.gmra.mrb[60].mxu0 %v5396_v40 }
 0x36e   : > { %11467 = vmatpush3.bf16.msra.mxu0 %v12561_v39  ;;  %11470 = vmatprep.mubr.bf16.mxu0 %v5617_v22 }
 0x36f   : > { %11468 = vmatprep.subr.bf16.mxu0 %v12562_v36 }
 0x372   : > { %11469 = vmatpush3.bf16.msra.mxu0 %v12562_v36 }
 0x373   : > { %11486 = vmatprep.subr.bf16.mxu0 %v12563_v14 }
 0x375   : > { %11471 = vmatmul.mubr.bf16.vlgmr.msra.gmra.mrb[48].mxu0 %v5620_v8 }
 0x376   : > { %11474 = vmatprep.mubr.bf16.mxu0 %v5623_v43  ;;  %11487 = vmatpush3.bf16.msra.mxu0 %v12563_v14 }
 0x377   : > { %11488 = vmatprep.subr.bf16.mxu0 %v12564_v0 }
 0x37a   : > { %11489 = vmatpush3.bf16.msra.mxu0 %v12564_v0 }
 0x37b   : > { %11490 = vmatprep.subr.bf16.mxu0 %v12565_v13 }
 0x37d   : > { %11475 = vmatmul.mubr.bf16.gmra.mrb[52].mxu0 %v5626_v21 }
 0x37e   : > { %11478 = vmatprep.mubr.bf16.mxu0 %v5629_v33  ;;  %11491 = vmatpush3.bf16.msra.mxu0 %v12565_v13  ;;  %v12574_v33 = vld [vmem:[#allocation4 + $0xd8] sm:$0xff]  }
 0x37f   : > { %11492 = vmatprep.subr.bf16.mxu0 %v12566_v45 }
 0x382   : > { %11493 = vmatpush3.bf16.msra.mxu0 %v12566_v45 }
 0x383   : > { %11494 = vmatprep.subr.bf16.mxu0 %v12567_v32 }
 0x385   : > { %11479 = vmatmul.mubr.bf16.gmra.mrb[56].mxu0 %v5632_v35 }
 0x386   : > { %11482 = vmatprep.mubr.bf16.mxu0 %v5635_v49  ;;  %11495 = vmatpush3.bf16.msra.mxu0 %v12567_v32 }
 0x387   : > { %11496 = vmatprep.subr.bf16.mxu0 %v12568_v56 }
 0x38a   : > { %11497 = vmatpush3.bf16.msra.mxu0 %v12568_v56 }
 0x38b   : > { %11498 = vmatprep.subr.bf16.mxu0 %v12569_v37 }
 0x38d   : > { %11483 = vmatmul.mubr.bf16.gmra.mrb[60].mxu0 %v5638_v10 }
 0x38e   : > { %11499 = vmatpush3.bf16.msra.mxu0 %v12569_v37 }
 0x38f   : > { %11500 = vmatprep.subr.bf16.mxu0 %v12570_v18 }
 0x392   : > { %11501 = vmatpush3.bf16.msra.mxu0 %v12570_v18 }
 0x393   : > { %11806 = vmatprep.subr.bf16.mxu0 %v12571_v54 }
 0x448   : > { %v11472_v34 = vpop.f32.mrb[48].mxu0 }
 0x449   : > { %v5832_v30 = vadd.f32 %v11472_v34, %v15117_v3  ;;  %v5746_v7 = vpop.f32.mrb[49].mxu0 }
 0x44a   : > { %v5830_v39 = vadd.f32 %v15117_v3, %v5746_v7  ;;  %v11473_v38 = vpop.f32.mrb[50].mxu0  ;;  %v12577_v7 = vld [vmem:[#allocation4 + $0xf0] sm:$0xff]  }
 0x44b   : > { %v5833_v29 = vadd.f32 %v11473_v38, %v15117_v3  ;;  %v5749_v50 = vpop.f32.mrb[51].mxu0  ;;  %v5848_v40 = vmax.f32 %v5832_v30, 0.0 }
 0x44c   : > { %v5831_v41 = vadd.f32 %v15117_v3, %v5749_v50  ;;  %v5846_v22 = vmax.f32 %v5830_v39, 0.0 }
 0x44d   : > { %v5849_v36 = vmax.f32 %v5833_v29, 0.0 }
 0x44e   : > { %v5847_v17 = vmax.f32 %v5831_v41, 0.0  ;;  %v12578_v41 = vld [vmem:[#allocation4 + $0xf8] sm:$0xff]  }
 0x44f   : > { %v5863_v59 = vpack.c.bf16 %v5849_v36, %v5848_v40 }
 0x450   : > { %v5862_v61 = vpack.c.bf16 %v5847_v17, %v5846_v22  ;;  %v11476_v25 = vpop.f32.mrb[52].mxu0 }
 0x451   : > { %v5836_v42 = vadd.f32 %v11476_v25, %v15117_v3  ;;  %v5762_v53 = vpop.f32.mrb[53].mxu0 }
 0x452   : > { %v5834_v31 = vadd.f32 %v15117_v3, %v5762_v53  ;;  %v11477_v14 = vpop.f32.mrb[54].mxu0  ;;  %11502 = vmatprep.mubr.bf16.mxu0 %v5862_v61 }
 0x453   : > { %v5837_v8 = vadd.f32 %v11477_v14, %v15117_v3  ;;  %v5765_v43 = vpop.f32.mrb[55].mxu0  ;;  %11503 = vmatmul.mubr.bf16.vlgmr.msra.gmra.mrb[32].mxu0 %v5863_v59  ;;  %v5852_v27 = vmax.f32 %v5836_v42, 0.0 }
 0x454   : > { %v5835_v57 = vadd.f32 %v15117_v3, %v5765_v43  ;;  %11807 = vmatpush3.bf16.msra.mxu0 %v12571_v54  ;;  %v5850_v55 = vmax.f32 %v5834_v31, 0.0 }
 0x455   : > { %v5853_v0 = vmax.f32 %v5837_v8, 0.0  ;;  %11808 = vmatprep.subr.bf16.mxu0 %v12572_v24 }
 0x456   : > { %v5851_v11 = vmax.f32 %v5835_v57, 0.0 }
 0x457   : > { %v5865_v2 = vpack.c.bf16 %v5853_v0, %v5852_v27 }
 0x458   : > { %v5864_v48 = vpack.c.bf16 %v5851_v11, %v5850_v55  ;;  %v11480_v62 = vpop.f32.mrb[56].mxu0  ;;  %11809 = vmatpush3.bf16.msra.mxu0 %v12572_v24 }
 0x459   : > { %v5840_v13 = vadd.f32 %v11480_v62, %v15117_v3  ;;  %v5778_v21 = vpop.f32.mrb[57].mxu0  ;;  %11810 = vmatprep.subr.bf16.mxu0 %v12573_v26 }
 0x45a   : > { %v5838_v12 = vadd.f32 %v15117_v3, %v5778_v21  ;;  %v11481_v19 = vpop.f32.mrb[58].mxu0  ;;  %11506 = vmatprep.mubr.bf16.mxu0 %v5864_v48 }
 0x45b   : > { %v5841_v45 = vadd.f32 %v11481_v19, %v15117_v3  ;;  %v5781_v28 = vpop.f32.mrb[59].mxu0  ;;  %11507 = vmatmul.mubr.bf16.gmra.mrb[36].mxu0 %v5865_v2  ;;  %v5856_v60 = vmax.f32 %v5840_v13, 0.0 }
 0x45c   : > { %v5839_v23 = vadd.f32 %v15117_v3, %v5781_v28  ;;  %11811 = vmatpush3.bf16.msra.mxu0 %v12573_v26  ;;  %v5854_v58 = vmax.f32 %v5838_v12, 0.0 }
 0x45d   : > { %v5857_v1 = vmax.f32 %v5841_v45, 0.0  ;;  %11812 = vmatprep.subr.bf16.mxu0 %v12574_v33 }
 0x45e   : > { %v5855_v32 = vmax.f32 %v5839_v23, 0.0 }
 0x45f   : > { %v5867_v35 = vpack.c.bf16 %v5857_v1, %v5856_v60 }
 0x460   : > { %v5866_v49 = vpack.c.bf16 %v5855_v32, %v5854_v58  ;;  %v11484_v51 = vpop.f32.mrb[60].mxu0  ;;  %11813 = vmatpush3.bf16.msra.mxu0 %v12574_v33 }
 0x461   : > { %v5844_v63 = vadd.f32 %v11484_v51, %v15117_v3  ;;  %v5794_v56 = vpop.f32.mrb[61].mxu0  ;;  %11814 = vmatprep.subr.bf16.mxu0 %v12575_v47 }
 0x462   : > { %v5842_v5 = vadd.f32 %v15117_v3, %v5794_v56  ;;  %v11485_v10 = vpop.f32.mrb[62].mxu0  ;;  %11510 = vmatprep.mubr.bf16.mxu0 %v5866_v49 }
 0x463   : > { %v5845_v37 = vadd.f32 %v11485_v10, %v15117_v3  ;;  %v5797_v18 = vpop.f32.mrb[63].mxu0  ;;  %11511 = vmatmul.mubr.bf16.gmra.mrb[40].mxu0 %v5867_v35  ;;  %v5860_v34 = vmax.f32 %v5844_v63, 0.0 }
 0x464   : > { %v5843_v54 = vadd.f32 %v15117_v3, %v5797_v18  ;;  %11815 = vmatpush3.bf16.msra.mxu0 %v12575_v47  ;;  %v5858_v39 = vmax.f32 %v5842_v5, 0.0 }
 0x465   : > { %v5861_v30 = vmax.f32 %v5845_v37, 0.0  ;;  %11816 = vmatprep.subr.bf16.mxu0 %v12576_v20 }
 0x466   : > { %v5859_v38 = vmax.f32 %v5843_v54, 0.0 }
 0x467   : > { %v5869_v29 = vpack.c.bf16 %v5861_v30, %v5860_v34 }
 0x468   : > { %v5868_v50 = vpack.c.bf16 %v5859_v38, %v5858_v39  ;;  %11817 = vmatpush3.bf16.msra.mxu0 %v12576_v20 }
 0x469   : > { %11818 = vmatprep.subr.bf16.mxu0 %v12577_v7 }
 0x46a   : > { %11514 = vmatprep.mubr.bf16.mxu0 %v5868_v50 }
 0x46b   : > { %11515 = vmatmul.mubr.bf16.gmra.mrb[44].mxu0 %v5869_v29 }
 0x46c   : > { %11819 = vmatpush3.bf16.msra.mxu0 %v12577_v7  ;;  %11822 = vmatprep.mubr.bf16.mxu0 %v15027_v15  ;;  %v10215_v15 = vld [vmem:[%s248_s30] ss:$0 sm:$0xff] }
 0x46d   : > { %11820 = vmatprep.subr.bf16.mxu0 %v12578_v41 }
 0x470   : > { %11821 = vmatpush3.bf16.msra.mxu0 %v12578_v41 }
 0x473   : > { %11823 = vmatmul.mubr.bf16.vlgmr.msra.gmra.mrb[32].mxu0 %v15024_v9 }
 0x474   : > { %11826 = vmatprep.mubr.bf16.mxu0 %v15047_v52 }
 0x47b   : > { %11827 = vmatmul.mubr.bf16.gmra.mrb[36].mxu0 %v15044_v6 }
 0x47c   : > { %11830 = vmatprep.mubr.bf16.mxu0 %v15067_v4 }
 0x483   : > { %11831 = vmatmul.mubr.bf16.gmra.mrb[40].mxu0 %v15064_v16 }
 0x484   : > { %11834 = vmatprep.mubr.bf16.mxu0 %v15087_v46 }
 0x48b   : > { %11835 = vmatmul.mubr.bf16.gmra.mrb[44].mxu0 %v15084_v44 }
 0x546   : > { %v11824_v3 = vpop.f32.mrb[32].mxu0 }
 0x547   : > { %v8927_v9 = vadd.f32 %v11824_v3, %v10215_v15  ;;  %v8839_v40 = vpop.f32.mrb[33].mxu0 }
 0x548   : > { %v8925_v52 = vadd.f32 %v10215_v15, %v8839_v40  ;;  %v11825_v6 = vpop.f32.mrb[34].mxu0 }
 0x549   : > { %v8928_v36 = vadd.f32 %v11825_v6, %v10215_v15  ;;  %v8842_v4 = vpop.f32.mrb[35].mxu0  ;;  %v8943_v16 = vmax.f32 %v8927_v9, 0.0 }
 0x54a   : > { %v8926_v22 = vadd.f32 %v10215_v15, %v8842_v4  ;;  %v8941_v46 = vmax.f32 %v8925_v52, 0.0 }
 0x54b   : > { %v8944_v17 = vmax.f32 %v8928_v36, 0.0 }
 0x54c   : > { %v8942_v59 = vmax.f32 %v8926_v22, 0.0 }
 0x54d   : > { %v10263_v44 = vpack.c.bf16 %v8944_v17, %v8943_v16 }
 0x54e   : > { %v10258_v61 = vpack.c.bf16 %v8942_v59, %v8941_v46  ;;  %v11828_v25 = vpop.f32.mrb[36].mxu0 }
 0x54f   : > { %10295 = vst [vmem:[%s12820_s19 + $0x8] sm:$0xff] %v10263_v44   ;;  %v8931_v42 = vadd.f32 %v11828_v25, %v10215_v15  ;;  %v8855_v53 = vpop.f32.mrb[37].mxu0 }
 0x550   : > { %10259 = vst [vmem:[%s12820_s19] sm:$0xff] %v10258_v61   ;;  %v8929_v24 = vadd.f32 %v10215_v15, %v8855_v53  ;;  %v11829_v31 = vpop.f32.mrb[38].mxu0 }
 0x551   : > { %v8932_v14 = vadd.f32 %v11829_v31, %v10215_v15  ;;  %v8858_v8 = vpop.f32.mrb[39].mxu0  ;;  %v8947_v57 = vmax.f32 %v8931_v42, 0.0 }
 0x552   : > { %v8930_v43 = vadd.f32 %v10215_v15, %v8858_v8  ;;  %v8945_v0 = vmax.f32 %v8929_v24, 0.0 }
 0x553   : > { %v8948_v27 = vmax.f32 %v8932_v14, 0.0 }
 0x554   : > { %v8946_v26 = vmax.f32 %v8930_v43, 0.0 }
 0x555   : > { %v10273_v55 = vpack.c.bf16 %v8948_v27, %v8947_v57 }
 0x556   : > { %v10268_v11 = vpack.c.bf16 %v8946_v26, %v8945_v0  ;;  %v11832_v2 = vpop.f32.mrb[40].mxu0 }
 0x557   : > { %10297 = vst [vmem:[%s12820_s19 + $0x18] sm:$0xff] %v10273_v55   ;;  %v8935_v48 = vadd.f32 %v11832_v2, %v10215_v15  ;;  %v8871_v62 = vpop.f32.mrb[41].mxu0 }
 0x558   : > { %10296 = vst [vmem:[%s12820_s19 + $0x10] sm:$0xff] %v10268_v11   ;;  %v8933_v13 = vadd.f32 %v10215_v15, %v8871_v62  ;;  %v11833_v21 = vpop.f32.mrb[42].mxu0 }
 0x559   : > { %v8936_v33 = vadd.f32 %v11833_v21, %v10215_v15  ;;  %v8874_v12 = vpop.f32.mrb[43].mxu0  ;;  %v8951_v45 = vmax.f32 %v8935_v48, 0.0 }
 0x55a   : > { %v8934_v19 = vadd.f32 %v10215_v15, %v8874_v12  ;;  %v8949_v23 = vmax.f32 %v8933_v13, 0.0 }
 0x55b   : > { %v8952_v28 = vmax.f32 %v8936_v33, 0.0 }
 0x55c   : > { %v8950_v60 = vmax.f32 %v8934_v19, 0.0 }
 0x55d   : > { %v10283_v1 = vpack.c.bf16 %v8952_v28, %v8951_v45 }
 0x55e   : > { %v10278_v47 = vpack.c.bf16 %v8950_v60, %v8949_v23  ;;  %v11836_v58 = vpop.f32.mrb[44].mxu0 }
 0x55f   : > { %10299 = vst [vmem:[%s12820_s19 + $0x28] sm:$0xff] %v10283_v1   ;;  %v8939_v32 = vadd.f32 %v11836_v58, %v10215_v15  ;;  %v8887_v35 = vpop.f32.mrb[45].mxu0 }
 0x560   : > { %10298 = vst [vmem:[%s12820_s19 + $0x20] sm:$0xff] %v10278_v47   ;;  %v8937_v49 = vadd.f32 %v10215_v15, %v8887_v35  ;;  %v11837_v51 = vpop.f32.mrb[46].mxu0 }
 0x561   : > { %v8940_v63 = vadd.f32 %v11837_v51, %v10215_v15  ;;  %v8890_v56 = vpop.f32.mrb[47].mxu0  ;;  %v8955_v5 = vmax.f32 %v8939_v32, 0.0 }
 0x562   : > { %v8938_v20 = vadd.f32 %v10215_v15, %v8890_v56  ;;  %v8953_v37 = vmax.f32 %v8937_v49, 0.0 }
 0x563   : > { %v8956_v10 = vmax.f32 %v8940_v63, 0.0 }
 0x564   : > { %v8954_v18 = vmax.f32 %v8938_v20, 0.0 }
 0x565   : > { %v10293_v54 = vpack.c.bf16 %v8956_v10, %v8955_v5 }
 0x566   : > { %v10288_v34 = vpack.c.bf16 %v8954_v18, %v8953_v37 }
 0x567   : > { %10301 = vst [vmem:[%s12820_s19 + $0x38] sm:$0xff] %v10293_v54  }
 0x568   : > { %10300 = vst [vmem:[%s12820_s19 + $0x30] sm:$0xff] %v10288_v34  }
 0x569 PF: > { %s17_s25 = sadd.s32 1, %s12691_s25   ;;  %s15213_s21 = smov %s12683_s23 }
 0x56a   : > { %p14_p1 = scmp.ge.s32.totalorder %s17_s25, 6   ;;  %s15214_s22 = smov %s12687_s24 }
 0x56b   : > { %s15215_s23 = smov %s15218_s27  ;;  %s15216_s24 = smov %s15222_s28 }
 0x56c   :  { %16 = sbr.rel (!%p14_p1) target bundleno = 3 (0x3), region = 206 }
 0x573   :  { %9069 = vsyncpa [#allocation5], 1 }
 0x574   :  { %9071 = vsyncpa [#allocation5 + $0x1], 1 }
 0x575   :  { %9072 = vsyncmov [#allocation3] }
 0x578   :  { %s9073_s8 = vpop.sfrf %9072 }
 0x579   :  { %p10234_p2 = scmp.ne.s32.totalorder %s9073_s8, 0 }
 0x57b   :  { %9077 = shalt.err (%p10234_p2)  }
 0x57c   :  { %9079 = vsyncmov [#allocation3 + $0x1] }
 0x57f   :  { %s9080_s30 = vpop.sfrf %9079 }
 0x580   :  { %p10235_p4 = scmp.ne.s32.totalorder %s9080_s30, 0 }
 0x582   :  { %9084 = shalt.err (%p10235_p4)  }

</bundles_post_ra>
